<compile_context>
chip_gen: v7x
topology: tpu7x:2x2x1
jax: 0.10.0
libtpu: 0.0.40
codegen_flags: <defaults>
</compile_context>

<pallas_src>
import math

import jax
import jax.numpy as jnp
from jax.experimental import pallas as pl
from jax.experimental.pallas import tpu as pltpu

DW_K = 5          # GhostConv "cheap" depthwise kernel size
DW_P = DW_K // 2  # padding = 2


def _silu(x):
    return x * jax.nn.sigmoid(x)


# ------------------------------ wrapper + kernel ------------------------------ #

def ghost_bottleneck_forward(x, params):
    """GhostBottleneck(c1, c2, k=3, s=1) forward. x: (N, c1, H, W) -> (N, c2, H, W)."""
    (w_pw1, b_pw1, w_dw1, b_dw1, w_pw2, b_pw2, w_dw2, b_dw2) = params
    N, c1, H, W = x.shape
    q1 = w_pw1.shape[0]          # GhostConv1 primary (1x1) channels
    c_half = w_pw2.shape[0]      # GhostConv1 total output channels (= c2 // 2)
    c2 = 2 * c_half
    # Identity shortcut (s=1) => residual add requires matching channel counts.
    assert c1 == c2, "GhostBottleneck(s=1) identity shortcut requires c1 == c2"
    assert c_half == 2 * q1 and w_pw1.shape[1] == c1 and w_pw2.shape[1] == c_half

    HW = H * W
    # Flat-layout depthwise geometry: 2-row H-halo + DW_P px of slack so every
    # dx-shifted window is an in-bounds contiguous lane slice.
    LEFT = DW_P * W + DW_P            # zero margin at each end of the pad scratch
    PS = HW + 2 * DW_P * W            # extent covered by the dy-offset windows
    PAD_W = PS + 2 * DW_P             # = LEFT + HW + LEFT

    f32 = jnp.float32

    # Column-validity masks for the 5 horizontal taps (periodic in W), built on
    # the host so the kernel only multiplies (no in-kernel iota / modulo).
    u = jnp.arange(PS, dtype=jnp.int32) % W
    masks = jnp.stack(
        [((u + (dx - DW_P) >= 0) & (u + (dx - DW_P) < W)).astype(f32)
         for dx in range(DW_K)],
        axis=0)                                                     # (5, PS)

    # All weights/biases as 2-D VMEM arrays (bias as a (C, 1) column).
    w_pw1 = w_pw1.astype(f32)
    w_pw2 = w_pw2.astype(f32)
    wd1 = w_dw1.reshape(q1, DW_K * DW_K).astype(f32)
    wd2 = w_dw2.reshape(c_half, DW_K * DW_K).astype(f32)
    bp1 = b_pw1.reshape(q1, 1).astype(f32)
    bp2 = b_pw2.reshape(c_half, 1).astype(f32)
    bd1 = b_dw1.reshape(q1, 1).astype(f32)
    bd2 = b_dw2.reshape(c_half, 1).astype(f32)

    x_flat = x.reshape(N, c1, HW)     # free reshape; lane-dense HBM blocks

    def kernel(x_ref,
               w_pw1_ref, b_pw1_ref, w_dw1_ref, b_dw1_ref,
               w_pw2_ref, b_pw2_ref, w_dw2_ref, b_dw2_ref,
               mask_ref,
               out_ref,
               g1_ref, pad1_ref, pad2_ref, shift_ref):

        def dwconv(v, pad_ref, w_ref, b_ref):
            """Depthwise 5x5 (pad 2, stride 1) on flat (C, H*W) channel rows."""
            C = v.shape[0]
            # Zero only the thin halo strips (never overwritten); the interior
            # is fully rewritten below -> no full-buffer memset per grid step.
            zero_strip = jnp.zeros((C, LEFT), f32)
            pad_ref[0:C, 0:LEFT] = zero_strip
            pad_ref[0:C, LEFT + HW:PAD_W] = zero_strip
            pad_ref[0:C, LEFT:LEFT + HW] = v
            acc = jnp.zeros((C, HW), f32)
            for dx in range(DW_K):
                # Hoisted horizontal shift + column mask: ONE shifted, masked
                # copy per dx; the 25 taps then only use dy*W address offsets.
                shifted = pad_ref[0:C, dx:dx + PS]
                if dx != DW_P:                       # dx == DW_P needs no mask
                    shifted = shifted * mask_ref[dx:dx + 1, :]
                shift_ref[0:C, :] = shifted
                for dy in range(DW_K):
                    t = dy * DW_K + dx
                    acc = acc + (w_ref[:, t:t + 1]
                                 * shift_ref[0:C, dy * W:dy * W + HW])
            return acc + b_ref[...]

        # ---- GhostConv1.cv1 : 1x1 conv (c1 -> q1) + BN + SiLU --------------
        if max(c1, q1) > 16:     # MXU path for realistic GhostNet widths
            y1 = jnp.dot(w_pw1_ref[...], x_ref[0].astype(f32),
                         preferred_element_type=f32)
        else:                    # VPU outer-product path for tiny C
            y1 = w_pw1_ref[:, 0:1] * x_ref[0, 0:1, :].astype(f32)
            for ci in range(1, c1):
                y1 = y1 + w_pw1_ref[:, ci:ci + 1] * x_ref[0, ci:ci + 1, :].astype(f32)
        y1 = _silu(y1 + b_pw1_ref[...])
        g1_ref[0:q1, :] = y1                          # first ghost half

        # ---- GhostConv1.cv2 : depthwise 5x5 (q1 ch) + BN + SiLU ------------
        y2 = _silu(dwconv(y1, pad1_ref, w_dw1_ref, b_dw1_ref))
        g1_ref[q1:c_half, :] = y2                     # second ghost half

        # ---- GhostConv2.cv1 : 1x1 conv (c_half -> c_half) + BN (no act) ----
        if c_half > 16:
            z1 = jnp.dot(w_pw2_ref[...], g1_ref[...], preferred_element_type=f32)
        else:
            z1 = w_pw2_ref[:, 0:1] * g1_ref[0:1, :]
            for ci in range(1, c_half):
                z1 = z1 + w_pw2_ref[:, ci:ci + 1] * g1_ref[ci:ci + 1, :]
        z1 = z1 + b_pw2_ref[...]
        out_ref[0, 0:c_half, :] = (
            z1 + x_ref[0, 0:c_half, :].astype(f32)).astype(out_ref.dtype)

        # ---- GhostConv2.cv2 : depthwise 5x5 + BN (no act) + residual -------
        z2 = dwconv(z1, pad2_ref, w_dw2_ref, b_dw2_ref)
        out_ref[0, c_half:c2, :] = (
            z2 + x_ref[0, c_half:c2, :].astype(f32)).astype(out_ref.dtype)

    def full2d(a):   # whole small array resident in VMEM every grid step
        return pl.BlockSpec(a.shape, lambda n: (0, 0))

    out_flat = pl.pallas_call(
        kernel,
        out_shape=jax.ShapeDtypeStruct((N, c2, HW), x.dtype),
        grid=(N,),
        in_specs=[
            pl.BlockSpec((1, c1, HW), lambda n: (n, 0, 0)),
            full2d(w_pw1), full2d(bp1), full2d(wd1), full2d(bd1),
            full2d(w_pw2), full2d(bp2), full2d(wd2), full2d(bd2),
            full2d(masks),
        ],
        out_specs=pl.BlockSpec((1, c2, HW), lambda n: (n, 0, 0)),
        scratch_shapes=[
            pltpu.VMEM((c_half, HW), f32),       # g1: ghost-cat 1 (pw2 input)
            pltpu.VMEM((q1, PAD_W), f32),        # H-halo pad for dw1
            pltpu.VMEM((c_half, PAD_W), f32),    # H-halo pad for dw2
            pltpu.VMEM((c_half, PS), f32),       # hoisted dx-shifted copy
        ],
        compiler_params=pltpu.CompilerParams(
            dimension_semantics=("parallel",),
            vmem_limit_bytes=64 * 1024 * 1024),
    )(x_flat, w_pw1, bp1, wd1, bd1, w_pw2, bp2, wd2, bd2, masks)

    return out_flat.reshape(N, c2, H, W)


# ----------------- deterministic parameter construction --------------------- #

def _fold_bn(w, gamma, beta, mean, var, eps=1e-5):
    scale = gamma / jnp.sqrt(var + eps)
    w_eff = w * scale.reshape((-1,) + (1,) * (w.ndim - 1))
    b_eff = beta - mean * scale
    return w_eff, b_eff


def make_conv_bn(key, shape):
    """Conv weight of `shape` (cout leading, bias=False) + BatchNorm2d(cout), folded."""
    cout = shape[0]
    k_w, k_g, k_b, k_m, k_v = jax.random.split(key, 5)
    fan_in = 1
    for d in shape[1:]:
        fan_in *= d
    w = jax.random.normal(k_w, shape, jnp.float32) / math.sqrt(max(fan_in, 1))
    gamma = jax.random.uniform(k_g, (cout,), jnp.float32, 0.5, 1.5)
    beta = jax.random.normal(k_b, (cout,), jnp.float32) * 0.1
    mean = jax.random.normal(k_m, (cout,), jnp.float32) * 0.1
    var = jax.random.uniform(k_v, (cout,), jnp.float32, 0.5, 1.5)
    return _fold_bn(w, gamma, beta, mean, var)


# -------------------------------- reference --------------------------------- #

def ghost_bottleneck_reference(x, params):
    (w_pw1, b_pw1, w_dw1, b_dw1, w_pw2, b_pw2, w_dw2, b_dw2) = params
    x = x.astype(jnp.float32)

    def pw(inp, w, b, act):
        y = jnp.einsum("nchw,oc->nohw", inp, w) + b[None, :, None, None]
        return jax.nn.silu(y) if act else y

    def dw(inp, w, b, act):
        c = inp.shape[1]
        y = jax.lax.conv_general_dilated(
            inp, w[:, None, :, :],
            window_strides=(1, 1),
            padding=((DW_P, DW_P), (DW_P, DW_P)),
            dimension_numbers=("NCHW", "OIHW", "NCHW"),
            feature_group_count=c,
        ) + b[None, :, None, None]
        return jax.nn.silu(y) if act else y

    y1 = pw(x, w_pw1, b_pw1, True)           # GhostConv1.cv1
    y2 = dw(y1, w_dw1, b_dw1, True)          # GhostConv1.cv2
    g1 = jnp.concatenate([y1, y2], axis=1)
    z1 = pw(g1, w_pw2, b_pw2, False)         # GhostConv2.cv1 (act=False)
    z2 = dw(z1, w_dw2, b_dw2, False)         # GhostConv2.cv2 (act=False)
    g2 = jnp.concatenate([z1, z2], axis=1)
    return g2 + x                            # shortcut = Identity (s=1)


# ---------------------------------- main ------------------------------------ #

if __name__ == "__main__":
    # GhostBottleneck(c1=8, c2=8, k=3, s=1); c_ = c2//2 = 4, ghost halves = 2 ch.
    N, c1, c2, H, W = 2, 8, 8, 16, 16
    c_half = c2 // 2
    q1 = c_half // 2

    root = jax.random.PRNGKey(0)
    k_x, k_pw1, k_dw1, k_pw2, k_dw2 = jax.random.split(root, 5)

    x = jax.random.normal(k_x, (N, c1, H, W), jnp.float32)
    w_pw1, b_pw1 = make_conv_bn(k_pw1, (q1, c1))              # GhostConv1.cv1 (1x1)
    w_dw1, b_dw1 = make_conv_bn(k_dw1, (q1, DW_K, DW_K))      # GhostConv1.cv2 (dw 5x5)
    w_pw2, b_pw2 = make_conv_bn(k_pw2, (c_half, c_half))      # GhostConv2.cv1 (1x1)
    w_dw2, b_dw2 = make_conv_bn(k_dw2, (c_half, DW_K, DW_K))  # GhostConv2.cv2 (dw 5x5)
    params = (w_pw1, b_pw1, w_dw1, b_dw1, w_pw2, b_pw2, w_dw2, b_dw2)

    out = jax.block_until_ready(ghost_bottleneck_forward(x, params))
    ref = jax.block_until_ready(ghost_bottleneck_reference(x, params))

    assert out.shape == (N, c2, H, W), out.shape
    err = float(jnp.max(jnp.abs(out - ref)))
    assert jnp.allclose(out, ref, rtol=1e-3, atol=1e-3), err
    print("KERNEL_OK")
</pallas_src>

<mosaic_0001>
module attributes {stable_mosaic.version = 11 : i64} {
  func.func @kernel(%arg0: i32, %arg1: memref<1x8x256xf32, #tpu.memory_space<vmem>>, %arg2: memref<2x8xf32, #tpu.memory_space<vmem>>, %arg3: memref<2x1xf32, #tpu.memory_space<vmem>>, %arg4: memref<2x25xf32, #tpu.memory_space<vmem>>, %arg5: memref<2x1xf32, #tpu.memory_space<vmem>>, %arg6: memref<4x4xf32, #tpu.memory_space<vmem>>, %arg7: memref<4x1xf32, #tpu.memory_space<vmem>>, %arg8: memref<4x25xf32, #tpu.memory_space<vmem>>, %arg9: memref<4x1xf32, #tpu.memory_space<vmem>>, %arg10: memref<5x320xf32, #tpu.memory_space<vmem>>, %arg11: memref<1x8x256xf32, #tpu.memory_space<vmem>>, %arg12: memref<4x256xf32, #tpu.memory_space<vmem>>, %arg13: memref<2x324xf32, #tpu.memory_space<vmem>>, %arg14: memref<4x324xf32, #tpu.memory_space<vmem>>, %arg15: memref<4x320xf32, #tpu.memory_space<vmem>>) attributes {dimension_semantics = [#tpu.dimension_semantics<parallel>], iteration_bounds = array<i64: 2>, scalar_prefetch = 0 : i64, scratch_operands = 4 : i64, tpu.core_type = #tpu.core_type<tc>, window_params = [{transform_indices = @transform_0, window_bounds = array<i64: 1, 8, 256>}, {pipeline_mode = #tpu.pipeline_mode<synchronous>, transform_indices = @transform_1, window_bounds = array<i64: 2, 8>}, {pipeline_mode = #tpu.pipeline_mode<synchronous>, transform_indices = @transform_2, window_bounds = array<i64: 2, 1>}, {pipeline_mode = #tpu.pipeline_mode<synchronous>, transform_indices = @transform_3, window_bounds = array<i64: 2, 25>}, {pipeline_mode = #tpu.pipeline_mode<synchronous>, transform_indices = @transform_4, window_bounds = array<i64: 2, 1>}, {pipeline_mode = #tpu.pipeline_mode<synchronous>, transform_indices = @transform_5, window_bounds = array<i64: 4, 4>}, {pipeline_mode = #tpu.pipeline_mode<synchronous>, transform_indices = @transform_6, window_bounds = array<i64: 4, 1>}, {pipeline_mode = #tpu.pipeline_mode<synchronous>, transform_indices = @transform_7, window_bounds = array<i64: 4, 25>}, {pipeline_mode = #tpu.pipeline_mode<synchronous>, transform_indices = @transform_8, window_bounds = array<i64: 4, 1>}, {pipeline_mode = #tpu.pipeline_mode<synchronous>, transform_indices = @transform_9, window_bounds = array<i64: 5, 320>}, {transform_indices = @transform_10, window_bounds = array<i64: 1, 8, 256>}]} {
    %c0 = arith.constant 0 : index
    %c0_0 = arith.constant 0 : index
    %0 = vector.load %arg2[%c0, %c0_0] : memref<2x8xf32, #tpu.memory_space<vmem>>, vector<2x1xf32>
    %c0_1 = arith.constant 0 : index
    %c0_2 = arith.constant 0 : index
    %c0_3 = arith.constant 0 : index
    %1 = vector.load %arg1[%c0_1, %c0_2, %c0_3] : memref<1x8x256xf32, #tpu.memory_space<vmem>>, vector<1x1x256xf32>
    %2 = vector.shape_cast %1 : vector<1x1x256xf32> to vector<1x256xf32>
    %3 = vector.broadcast %0 : vector<2x1xf32> to vector<2x256xf32>
    %4 = vector.broadcast %2 : vector<1x256xf32> to vector<2x256xf32>
    %5 = arith.mulf %3, %4 : vector<2x256xf32>
    %c0_4 = arith.constant 0 : index
    %c1 = arith.constant 1 : index
    %6 = vector.load %arg2[%c0_4, %c1] : memref<2x8xf32, #tpu.memory_space<vmem>>, vector<2x1xf32>
    %c0_5 = arith.constant 0 : index
    %c1_6 = arith.constant 1 : index
    %c0_7 = arith.constant 0 : index
    %7 = vector.load %arg1[%c0_5, %c1_6, %c0_7] : memref<1x8x256xf32, #tpu.memory_space<vmem>>, vector<1x1x256xf32>
    %8 = vector.shape_cast %7 : vector<1x1x256xf32> to vector<1x256xf32>
    %9 = vector.broadcast %6 : vector<2x1xf32> to vector<2x256xf32>
    %10 = vector.broadcast %8 : vector<1x256xf32> to vector<2x256xf32>
    %11 = arith.mulf %9, %10 : vector<2x256xf32>
    %12 = arith.addf %5, %11 : vector<2x256xf32>
    %c0_8 = arith.constant 0 : index
    %c2 = arith.constant 2 : index
    %13 = vector.load %arg2[%c0_8, %c2] : memref<2x8xf32, #tpu.memory_space<vmem>>, vector<2x1xf32>
    %c0_9 = arith.constant 0 : index
    %c2_10 = arith.constant 2 : index
    %c0_11 = arith.constant 0 : index
    %14 = vector.load %arg1[%c0_9, %c2_10, %c0_11] : memref<1x8x256xf32, #tpu.memory_space<vmem>>, vector<1x1x256xf32>
    %15 = vector.shape_cast %14 : vector<1x1x256xf32> to vector<1x256xf32>
    %16 = vector.broadcast %13 : vector<2x1xf32> to vector<2x256xf32>
    %17 = vector.broadcast %15 : vector<1x256xf32> to vector<2x256xf32>
    %18 = arith.mulf %16, %17 : vector<2x256xf32>
    %19 = arith.addf %12, %18 : vector<2x256xf32>
    %c0_12 = arith.constant 0 : index
    %c3 = arith.constant 3 : index
    %20 = vector.load %arg2[%c0_12, %c3] : memref<2x8xf32, #tpu.memory_space<vmem>>, vector<2x1xf32>
    %c0_13 = arith.constant 0 : index
    %c3_14 = arith.constant 3 : index
    %c0_15 = arith.constant 0 : index
    %21 = vector.load %arg1[%c0_13, %c3_14, %c0_15] : memref<1x8x256xf32, #tpu.memory_space<vmem>>, vector<1x1x256xf32>
    %22 = vector.shape_cast %21 : vector<1x1x256xf32> to vector<1x256xf32>
    %23 = vector.broadcast %20 : vector<2x1xf32> to vector<2x256xf32>
    %24 = vector.broadcast %22 : vector<1x256xf32> to vector<2x256xf32>
    %25 = arith.mulf %23, %24 : vector<2x256xf32>
    %26 = arith.addf %19, %25 : vector<2x256xf32>
    %c0_16 = arith.constant 0 : index
    %c4 = arith.constant 4 : index
    %27 = vector.load %arg2[%c0_16, %c4] : memref<2x8xf32, #tpu.memory_space<vmem>>, vector<2x1xf32>
    %c0_17 = arith.constant 0 : index
    %c4_18 = arith.constant 4 : index
    %c0_19 = arith.constant 0 : index
    %28 = vector.load %arg1[%c0_17, %c4_18, %c0_19] : memref<1x8x256xf32, #tpu.memory_space<vmem>>, vector<1x1x256xf32>
    %29 = vector.shape_cast %28 : vector<1x1x256xf32> to vector<1x256xf32>
    %30 = vector.broadcast %27 : vector<2x1xf32> to vector<2x256xf32>
    %31 = vector.broadcast %29 : vector<1x256xf32> to vector<2x256xf32>
    %32 = arith.mulf %30, %31 : vector<2x256xf32>
    %33 = arith.addf %26, %32 : vector<2x256xf32>
    %c0_20 = arith.constant 0 : index
    %c5 = arith.constant 5 : index
    %34 = vector.load %arg2[%c0_20, %c5] : memref<2x8xf32, #tpu.memory_space<vmem>>, vector<2x1xf32>
    %c0_21 = arith.constant 0 : index
    %c5_22 = arith.constant 5 : index
    %c0_23 = arith.constant 0 : index
    %35 = vector.load %arg1[%c0_21, %c5_22, %c0_23] : memref<1x8x256xf32, #tpu.memory_space<vmem>>, vector<1x1x256xf32>
    %36 = vector.shape_cast %35 : vector<1x1x256xf32> to vector<1x256xf32>
    %37 = vector.broadcast %34 : vector<2x1xf32> to vector<2x256xf32>
    %38 = vector.broadcast %36 : vector<1x256xf32> to vector<2x256xf32>
    %39 = arith.mulf %37, %38 : vector<2x256xf32>
    %40 = arith.addf %33, %39 : vector<2x256xf32>
    %c0_24 = arith.constant 0 : index
    %c6 = arith.constant 6 : index
    %41 = vector.load %arg2[%c0_24, %c6] : memref<2x8xf32, #tpu.memory_space<vmem>>, vector<2x1xf32>
    %c0_25 = arith.constant 0 : index
    %c6_26 = arith.constant 6 : index
    %c0_27 = arith.constant 0 : index
    %42 = vector.load %arg1[%c0_25, %c6_26, %c0_27] : memref<1x8x256xf32, #tpu.memory_space<vmem>>, vector<1x1x256xf32>
    %43 = vector.shape_cast %42 : vector<1x1x256xf32> to vector<1x256xf32>
    %44 = vector.broadcast %41 : vector<2x1xf32> to vector<2x256xf32>
    %45 = vector.broadcast %43 : vector<1x256xf32> to vector<2x256xf32>
    %46 = arith.mulf %44, %45 : vector<2x256xf32>
    %47 = arith.addf %40, %46 : vector<2x256xf32>
    %c0_28 = arith.constant 0 : index
    %c7 = arith.constant 7 : index
    %48 = vector.load %arg2[%c0_28, %c7] : memref<2x8xf32, #tpu.memory_space<vmem>>, vector<2x1xf32>
    %c0_29 = arith.constant 0 : index
    %c7_30 = arith.constant 7 : index
    %c0_31 = arith.constant 0 : index
    %49 = vector.load %arg1[%c0_29, %c7_30, %c0_31] : memref<1x8x256xf32, #tpu.memory_space<vmem>>, vector<1x1x256xf32>
    %50 = vector.shape_cast %49 : vector<1x1x256xf32> to vector<1x256xf32>
    %51 = vector.broadcast %48 : vector<2x1xf32> to vector<2x256xf32>
    %52 = vector.broadcast %50 : vector<1x256xf32> to vector<2x256xf32>
    %53 = arith.mulf %51, %52 : vector<2x256xf32>
    %54 = arith.addf %47, %53 : vector<2x256xf32>
    %c0_32 = arith.constant 0 : index
    %c0_33 = arith.constant 0 : index
    %55 = vector.load %arg3[%c0_32, %c0_33] : memref<2x1xf32, #tpu.memory_space<vmem>>, vector<2x1xf32>
    %56 = vector.broadcast %55 : vector<2x1xf32> to vector<2x256xf32>
    %57 = arith.addf %54, %56 : vector<2x256xf32>
    %58 = arith.negf %57 : vector<2x256xf32>
    %59 = math.exp %58 : vector<2x256xf32>
    %cst = arith.constant 1.000000e+00 : f32
    %60 = vector.broadcast %cst : f32 to vector<2x256xf32>
    %61 = arith.addf %60, %59 : vector<2x256xf32>
    %62 = arith.divf %60, %61 : vector<2x256xf32>
    %63 = arith.mulf %57, %62 : vector<2x256xf32>
    %c0_34 = arith.constant 0 : index
    %c0_35 = arith.constant 0 : index
    %64 = vector.load %arg12[%c0_34, %c0_35] : memref<4x256xf32, #tpu.memory_space<vmem>>, vector<2x256xf32>
    tpu.vector_store %arg12[%c0_34, %c0_35], %63 {strides = array<i32>} : memref<4x256xf32, #tpu.memory_space<vmem>>, vector<2x256xf32>,
    %cst_36 = arith.constant 0.000000e+00 : f32
    %65 = vector.broadcast %cst_36 : f32 to vector<2x34xf32>
    %c0_37 = arith.constant 0 : index
    %c0_38 = arith.constant 0 : index
    %66 = vector.load %arg13[%c0_37, %c0_38] : memref<2x324xf32, #tpu.memory_space<vmem>>, vector<2x34xf32>
    tpu.vector_store %arg13[%c0_37, %c0_38], %65 {strides = array<i32>} : memref<2x324xf32, #tpu.memory_space<vmem>>, vector<2x34xf32>,
    %c0_39 = arith.constant 0 : index
    %c290 = arith.constant 290 : index
    %67 = vector.load %arg13[%c0_39, %c290] : memref<2x324xf32, #tpu.memory_space<vmem>>, vector<2x34xf32>
    tpu.vector_store %arg13[%c0_39, %c290], %65 {strides = array<i32>} : memref<2x324xf32, #tpu.memory_space<vmem>>, vector<2x34xf32>,
    %c0_40 = arith.constant 0 : index
    %c34 = arith.constant 34 : index
    %68 = vector.load %arg13[%c0_40, %c34] : memref<2x324xf32, #tpu.memory_space<vmem>>, vector<2x256xf32>
    tpu.vector_store %arg13[%c0_40, %c34], %63 {strides = array<i32>} : memref<2x324xf32, #tpu.memory_space<vmem>>, vector<2x256xf32>,
    %cst_41 = arith.constant 0.000000e+00 : f32
    %69 = vector.broadcast %cst_41 : f32 to vector<2x256xf32>
    %c0_42 = arith.constant 0 : index
    %c0_43 = arith.constant 0 : index
    %70 = vector.load %arg13[%c0_42, %c0_43] : memref<2x324xf32, #tpu.memory_space<vmem>>, vector<2x320xf32>
    %c0_44 = arith.constant 0 : index
    %c0_45 = arith.constant 0 : index
    %71 = vector.load %arg10[%c0_44, %c0_45] : memref<5x320xf32, #tpu.memory_space<vmem>>, vector<1x320xf32>
    %72 = vector.broadcast %71 : vector<1x320xf32> to vector<2x320xf32>
    %73 = arith.mulf %70, %72 : vector<2x320xf32>
    %c0_46 = arith.constant 0 : index
    %c0_47 = arith.constant 0 : index
    %74 = vector.load %arg15[%c0_46, %c0_47] : memref<4x320xf32, #tpu.memory_space<vmem>>, vector<2x320xf32>
    tpu.vector_store %arg15[%c0_46, %c0_47], %73 {strides = array<i32>} : memref<4x320xf32, #tpu.memory_space<vmem>>, vector<2x320xf32>,
    %c0_48 = arith.constant 0 : index
    %c0_49 = arith.constant 0 : index
    %75 = vector.load %arg4[%c0_48, %c0_49] : memref<2x25xf32, #tpu.memory_space<vmem>>, vector<2x1xf32>
    %c0_50 = arith.constant 0 : index
    %c0_51 = arith.constant 0 : index
    %76 = vector.load %arg15[%c0_50, %c0_51] : memref<4x320xf32, #tpu.memory_space<vmem>>, vector<2x256xf32>
    %77 = vector.broadcast %75 : vector<2x1xf32> to vector<2x256xf32>
    %78 = arith.mulf %77, %76 : vector<2x256xf32>
    %79 = arith.addf %69, %78 : vector<2x256xf32>
    %c0_52 = arith.constant 0 : index
    %c5_53 = arith.constant 5 : index
    %80 = vector.load %arg4[%c0_52, %c5_53] : memref<2x25xf32, #tpu.memory_space<vmem>>, vector<2x1xf32>
    %c0_54 = arith.constant 0 : index
    %c16 = arith.constant 16 : index
    %81 = vector.load %arg15[%c0_54, %c16] : memref<4x320xf32, #tpu.memory_space<vmem>>, vector<2x256xf32>
    %82 = vector.broadcast %80 : vector<2x1xf32> to vector<2x256xf32>
    %83 = arith.mulf %82, %81 : vector<2x256xf32>
    %84 = arith.addf %79, %83 : vector<2x256xf32>
    %c0_55 = arith.constant 0 : index
    %c10 = arith.constant 10 : index
    %85 = vector.load %arg4[%c0_55, %c10] : memref<2x25xf32, #tpu.memory_space<vmem>>, vector<2x1xf32>
    %c0_56 = arith.constant 0 : index
    %c32 = arith.constant 32 : index
    %86 = vector.load %arg15[%c0_56, %c32] : memref<4x320xf32, #tpu.memory_space<vmem>>, vector<2x256xf32>
    %87 = vector.broadcast %85 : vector<2x1xf32> to vector<2x256xf32>
    %88 = arith.mulf %87, %86 : vector<2x256xf32>
    %89 = arith.addf %84, %88 : vector<2x256xf32>
    %c0_57 = arith.constant 0 : index
    %c15 = arith.constant 15 : index
    %90 = vector.load %arg4[%c0_57, %c15] : memref<2x25xf32, #tpu.memory_space<vmem>>, vector<2x1xf32>
    %c0_58 = arith.constant 0 : index
    %c48 = arith.constant 48 : index
    %91 = vector.load %arg15[%c0_58, %c48] : memref<4x320xf32, #tpu.memory_space<vmem>>, vector<2x256xf32>
    %92 = vector.broadcast %90 : vector<2x1xf32> to vector<2x256xf32>
    %93 = arith.mulf %92, %91 : vector<2x256xf32>
    %94 = arith.addf %89, %93 : vector<2x256xf32>
    %c0_59 = arith.constant 0 : index
    %c20 = arith.constant 20 : index
    %95 = vector.load %arg4[%c0_59, %c20] : memref<2x25xf32, #tpu.memory_space<vmem>>, vector<2x1xf32>
    %c0_60 = arith.constant 0 : index
    %c64 = arith.constant 64 : index
    %96 = vector.load %arg15[%c0_60, %c64] : memref<4x320xf32, #tpu.memory_space<vmem>>, vector<2x256xf32>
    %97 = vector.broadcast %95 : vector<2x1xf32> to vector<2x256xf32>
    %98 = arith.mulf %97, %96 : vector<2x256xf32>
    %99 = arith.addf %94, %98 : vector<2x256xf32>
    %c0_61 = arith.constant 0 : index
    %c1_62 = arith.constant 1 : index
    %100 = vector.load %arg13[%c0_61, %c1_62] : memref<2x324xf32, #tpu.memory_space<vmem>>, vector<2x320xf32>
    %c1_63 = arith.constant 1 : index
    %c0_64 = arith.constant 0 : index
    %101 = vector.load %arg10[%c1_63, %c0_64] : memref<5x320xf32, #tpu.memory_space<vmem>>, vector<1x320xf32>
    %102 = vector.broadcast %101 : vector<1x320xf32> to vector<2x320xf32>
    %103 = arith.mulf %100, %102 : vector<2x320xf32>
    %c0_65 = arith.constant 0 : index
    %c0_66 = arith.constant 0 : index
    %104 = vector.load %arg15[%c0_65, %c0_66] : memref<4x320xf32, #tpu.memory_space<vmem>>, vector<2x320xf32>
    tpu.vector_store %arg15[%c0_65, %c0_66], %103 {strides = array<i32>} : memref<4x320xf32, #tpu.memory_space<vmem>>, vector<2x320xf32>,
    %c0_67 = arith.constant 0 : index
    %c1_68 = arith.constant 1 : index
    %105 = vector.load %arg4[%c0_67, %c1_68] : memref<2x25xf32, #tpu.memory_space<vmem>>, vector<2x1xf32>
    %c0_69 = arith.constant 0 : index
    %c0_70 = arith.constant 0 : index
    %106 = vector.load %arg15[%c0_69, %c0_70] : memref<4x320xf32, #tpu.memory_space<vmem>>, vector<2x256xf32>
    %107 = vector.broadcast %105 : vector<2x1xf32> to vector<2x256xf32>
    %108 = arith.mulf %107, %106 : vector<2x256xf32>
    %109 = arith.addf %99, %108 : vector<2x256xf32>
    %c0_71 = arith.constant 0 : index
    %c6_72 = arith.constant 6 : index
    %110 = vector.load %arg4[%c0_71, %c6_72] : memref<2x25xf32, #tpu.memory_space<vmem>>, vector<2x1xf32>
    %c0_73 = arith.constant 0 : index
    %c16_74 = arith.constant 16 : index
    %111 = vector.load %arg15[%c0_73, %c16_74] : memref<4x320xf32, #tpu.memory_space<vmem>>, vector<2x256xf32>
    %112 = vector.broadcast %110 : vector<2x1xf32> to vector<2x256xf32>
    %113 = arith.mulf %112, %111 : vector<2x256xf32>
    %114 = arith.addf %109, %113 : vector<2x256xf32>
    %c0_75 = arith.constant 0 : index
    %c11 = arith.constant 11 : index
    %115 = vector.load %arg4[%c0_75, %c11] : memref<2x25xf32, #tpu.memory_space<vmem>>, vector<2x1xf32>
    %c0_76 = arith.constant 0 : index
    %c32_77 = arith.constant 32 : index
    %116 = vector.load %arg15[%c0_76, %c32_77] : memref<4x320xf32, #tpu.memory_space<vmem>>, vector<2x256xf32>
    %117 = vector.broadcast %115 : vector<2x1xf32> to vector<2x256xf32>
    %118 = arith.mulf %117, %116 : vector<2x256xf32>
    %119 = arith.addf %114, %118 : vector<2x256xf32>
    %c0_78 = arith.constant 0 : index
    %c16_79 = arith.constant 16 : index
    %120 = vector.load %arg4[%c0_78, %c16_79] : memref<2x25xf32, #tpu.memory_space<vmem>>, vector<2x1xf32>
    %c0_80 = arith.constant 0 : index
    %c48_81 = arith.constant 48 : index
    %121 = vector.load %arg15[%c0_80, %c48_81] : memref<4x320xf32, #tpu.memory_space<vmem>>, vector<2x256xf32>
    %122 = vector.broadcast %120 : vector<2x1xf32> to vector<2x256xf32>
    %123 = arith.mulf %122, %121 : vector<2x256xf32>
    %124 = arith.addf %119, %123 : vector<2x256xf32>
    %c0_82 = arith.constant 0 : index
    %c21 = arith.constant 21 : index
    %125 = vector.load %arg4[%c0_82, %c21] : memref<2x25xf32, #tpu.memory_space<vmem>>, vector<2x1xf32>
    %c0_83 = arith.constant 0 : index
    %c64_84 = arith.constant 64 : index
    %126 = vector.load %arg15[%c0_83, %c64_84] : memref<4x320xf32, #tpu.memory_space<vmem>>, vector<2x256xf32>
    %127 = vector.broadcast %125 : vector<2x1xf32> to vector<2x256xf32>
    %128 = arith.mulf %127, %126 : vector<2x256xf32>
    %129 = arith.addf %124, %128 : vector<2x256xf32>
    %c0_85 = arith.constant 0 : index
    %c2_86 = arith.constant 2 : index
    %130 = vector.load %arg13[%c0_85, %c2_86] : memref<2x324xf32, #tpu.memory_space<vmem>>, vector<2x320xf32>
    %c0_87 = arith.constant 0 : index
    %c0_88 = arith.constant 0 : index
    %131 = vector.load %arg15[%c0_87, %c0_88] : memref<4x320xf32, #tpu.memory_space<vmem>>, vector<2x320xf32>
    tpu.vector_store %arg15[%c0_87, %c0_88], %130 {strides = array<i32>} : memref<4x320xf32, #tpu.memory_space<vmem>>, vector<2x320xf32>,
    %c0_89 = arith.constant 0 : index
    %c2_90 = arith.constant 2 : index
    %132 = vector.load %arg4[%c0_89, %c2_90] : memref<2x25xf32, #tpu.memory_space<vmem>>, vector<2x1xf32>
    %c0_91 = arith.constant 0 : index
    %c0_92 = arith.constant 0 : index
    %133 = vector.load %arg15[%c0_91, %c0_92] : memref<4x320xf32, #tpu.memory_space<vmem>>, vector<2x256xf32>
    %134 = vector.broadcast %132 : vector<2x1xf32> to vector<2x256xf32>
    %135 = arith.mulf %134, %133 : vector<2x256xf32>
    %136 = arith.addf %129, %135 : vector<2x256xf32>
    %c0_93 = arith.constant 0 : index
    %c7_94 = arith.constant 7 : index
    %137 = vector.load %arg4[%c0_93, %c7_94] : memref<2x25xf32, #tpu.memory_space<vmem>>, vector<2x1xf32>
    %c0_95 = arith.constant 0 : index
    %c16_96 = arith.constant 16 : index
    %138 = vector.load %arg15[%c0_95, %c16_96] : memref<4x320xf32, #tpu.memory_space<vmem>>, vector<2x256xf32>
    %139 = vector.broadcast %137 : vector<2x1xf32> to vector<2x256xf32>
    %140 = arith.mulf %139, %138 : vector<2x256xf32>
    %141 = arith.addf %136, %140 : vector<2x256xf32>
    %c0_97 = arith.constant 0 : index
    %c12 = arith.constant 12 : index
    %142 = vector.load %arg4[%c0_97, %c12] : memref<2x25xf32, #tpu.memory_space<vmem>>, vector<2x1xf32>
    %c0_98 = arith.constant 0 : index
    %c32_99 = arith.constant 32 : index
    %143 = vector.load %arg15[%c0_98, %c32_99] : memref<4x320xf32, #tpu.memory_space<vmem>>, vector<2x256xf32>
    %144 = vector.broadcast %142 : vector<2x1xf32> to vector<2x256xf32>
    %145 = arith.mulf %144, %143 : vector<2x256xf32>
    %146 = arith.addf %141, %145 : vector<2x256xf32>
    %c0_100 = arith.constant 0 : index
    %c17 = arith.constant 17 : index
    %147 = vector.load %arg4[%c0_100, %c17] : memref<2x25xf32, #tpu.memory_space<vmem>>, vector<2x1xf32>
    %c0_101 = arith.constant 0 : index
    %c48_102 = arith.constant 48 : index
    %148 = vector.load %arg15[%c0_101, %c48_102] : memref<4x320xf32, #tpu.memory_space<vmem>>, vector<2x256xf32>
    %149 = vector.broadcast %147 : vector<2x1xf32> to vector<2x256xf32>
    %150 = arith.mulf %149, %148 : vector<2x256xf32>
    %151 = arith.addf %146, %150 : vector<2x256xf32>
    %c0_103 = arith.constant 0 : index
    %c22 = arith.constant 22 : index
    %152 = vector.load %arg4[%c0_103, %c22] : memref<2x25xf32, #tpu.memory_space<vmem>>, vector<2x1xf32>
    %c0_104 = arith.constant 0 : index
    %c64_105 = arith.constant 64 : index
    %153 = vector.load %arg15[%c0_104, %c64_105] : memref<4x320xf32, #tpu.memory_space<vmem>>, vector<2x256xf32>
    %154 = vector.broadcast %152 : vector<2x1xf32> to vector<2x256xf32>
    %155 = arith.mulf %154, %153 : vector<2x256xf32>
    %156 = arith.addf %151, %155 : vector<2x256xf32>
    %c0_106 = arith.constant 0 : index
    %c3_107 = arith.constant 3 : index
    %157 = vector.load %arg13[%c0_106, %c3_107] : memref<2x324xf32, #tpu.memory_space<vmem>>, vector<2x320xf32>
    %c3_108 = arith.constant 3 : index
    %c0_109 = arith.constant 0 : index
    %158 = vector.load %arg10[%c3_108, %c0_109] : memref<5x320xf32, #tpu.memory_space<vmem>>, vector<1x320xf32>
    %159 = vector.broadcast %158 : vector<1x320xf32> to vector<2x320xf32>
    %160 = arith.mulf %157, %159 : vector<2x320xf32>
    %c0_110 = arith.constant 0 : index
    %c0_111 = arith.constant 0 : index
    %161 = vector.load %arg15[%c0_110, %c0_111] : memref<4x320xf32, #tpu.memory_space<vmem>>, vector<2x320xf32>
    tpu.vector_store %arg15[%c0_110, %c0_111], %160 {strides = array<i32>} : memref<4x320xf32, #tpu.memory_space<vmem>>, vector<2x320xf32>,
    %c0_112 = arith.constant 0 : index
    %c3_113 = arith.constant 3 : index
    %162 = vector.load %arg4[%c0_112, %c3_113] : memref<2x25xf32, #tpu.memory_space<vmem>>, vector<2x1xf32>
    %c0_114 = arith.constant 0 : index
    %c0_115 = arith.constant 0 : index
    %163 = vector.load %arg15[%c0_114, %c0_115] : memref<4x320xf32, #tpu.memory_space<vmem>>, vector<2x256xf32>
    %164 = vector.broadcast %162 : vector<2x1xf32> to vector<2x256xf32>
    %165 = arith.mulf %164, %163 : vector<2x256xf32>
    %166 = arith.addf %156, %165 : vector<2x256xf32>
    %c0_116 = arith.constant 0 : index
    %c8 = arith.constant 8 : index
    %167 = vector.load %arg4[%c0_116, %c8] : memref<2x25xf32, #tpu.memory_space<vmem>>, vector<2x1xf32>
    %c0_117 = arith.constant 0 : index
    %c16_118 = arith.constant 16 : index
    %168 = vector.load %arg15[%c0_117, %c16_118] : memref<4x320xf32, #tpu.memory_space<vmem>>, vector<2x256xf32>
    %169 = vector.broadcast %167 : vector<2x1xf32> to vector<2x256xf32>
    %170 = arith.mulf %169, %168 : vector<2x256xf32>
    %171 = arith.addf %166, %170 : vector<2x256xf32>
    %c0_119 = arith.constant 0 : index
    %c13 = arith.constant 13 : index
    %172 = vector.load %arg4[%c0_119, %c13] : memref<2x25xf32, #tpu.memory_space<vmem>>, vector<2x1xf32>
    %c0_120 = arith.constant 0 : index
    %c32_121 = arith.constant 32 : index
    %173 = vector.load %arg15[%c0_120, %c32_121] : memref<4x320xf32, #tpu.memory_space<vmem>>, vector<2x256xf32>
    %174 = vector.broadcast %172 : vector<2x1xf32> to vector<2x256xf32>
    %175 = arith.mulf %174, %173 : vector<2x256xf32>
    %176 = arith.addf %171, %175 : vector<2x256xf32>
    %c0_122 = arith.constant 0 : index
    %c18 = arith.constant 18 : index
    %177 = vector.load %arg4[%c0_122, %c18] : memref<2x25xf32, #tpu.memory_space<vmem>>, vector<2x1xf32>
    %c0_123 = arith.constant 0 : index
    %c48_124 = arith.constant 48 : index
    %178 = vector.load %arg15[%c0_123, %c48_124] : memref<4x320xf32, #tpu.memory_space<vmem>>, vector<2x256xf32>
    %179 = vector.broadcast %177 : vector<2x1xf32> to vector<2x256xf32>
    %180 = arith.mulf %179, %178 : vector<2x256xf32>
    %181 = arith.addf %176, %180 : vector<2x256xf32>
    %c0_125 = arith.constant 0 : index
    %c23 = arith.constant 23 : index
    %182 = vector.load %arg4[%c0_125, %c23] : memref<2x25xf32, #tpu.memory_space<vmem>>, vector<2x1xf32>
    %c0_126 = arith.constant 0 : index
    %c64_127 = arith.constant 64 : index
    %183 = vector.load %arg15[%c0_126, %c64_127] : memref<4x320xf32, #tpu.memory_space<vmem>>, vector<2x256xf32>
    %184 = vector.broadcast %182 : vector<2x1xf32> to vector<2x256xf32>
    %185 = arith.mulf %184, %183 : vector<2x256xf32>
    %186 = arith.addf %181, %185 : vector<2x256xf32>
    %c0_128 = arith.constant 0 : index
    %c4_129 = arith.constant 4 : index
    %187 = vector.load %arg13[%c0_128, %c4_129] : memref<2x324xf32, #tpu.memory_space<vmem>>, vector<2x320xf32>
    %c4_130 = arith.constant 4 : index
    %c0_131 = arith.constant 0 : index
    %188 = vector.load %arg10[%c4_130, %c0_131] : memref<5x320xf32, #tpu.memory_space<vmem>>, vector<1x320xf32>
    %189 = vector.broadcast %188 : vector<1x320xf32> to vector<2x320xf32>
    %190 = arith.mulf %187, %189 : vector<2x320xf32>
    %c0_132 = arith.constant 0 : index
    %c0_133 = arith.constant 0 : index
    %191 = vector.load %arg15[%c0_132, %c0_133] : memref<4x320xf32, #tpu.memory_space<vmem>>, vector<2x320xf32>
    tpu.vector_store %arg15[%c0_132, %c0_133], %190 {strides = array<i32>} : memref<4x320xf32, #tpu.memory_space<vmem>>, vector<2x320xf32>,
    %c0_134 = arith.constant 0 : index
    %c4_135 = arith.constant 4 : index
    %192 = vector.load %arg4[%c0_134, %c4_135] : memref<2x25xf32, #tpu.memory_space<vmem>>, vector<2x1xf32>
    %c0_136 = arith.constant 0 : index
    %c0_137 = arith.constant 0 : index
    %193 = vector.load %arg15[%c0_136, %c0_137] : memref<4x320xf32, #tpu.memory_space<vmem>>, vector<2x256xf32>
    %194 = vector.broadcast %192 : vector<2x1xf32> to vector<2x256xf32>
    %195 = arith.mulf %194, %193 : vector<2x256xf32>
    %196 = arith.addf %186, %195 : vector<2x256xf32>
    %c0_138 = arith.constant 0 : index
    %c9 = arith.constant 9 : index
    %197 = vector.load %arg4[%c0_138, %c9] : memref<2x25xf32, #tpu.memory_space<vmem>>, vector<2x1xf32>
    %c0_139 = arith.constant 0 : index
    %c16_140 = arith.constant 16 : index
    %198 = vector.load %arg15[%c0_139, %c16_140] : memref<4x320xf32, #tpu.memory_space<vmem>>, vector<2x256xf32>
    %199 = vector.broadcast %197 : vector<2x1xf32> to vector<2x256xf32>
    %200 = arith.mulf %199, %198 : vector<2x256xf32>
    %201 = arith.addf %196, %200 : vector<2x256xf32>
    %c0_141 = arith.constant 0 : index
    %c14 = arith.constant 14 : index
    %202 = vector.load %arg4[%c0_141, %c14] : memref<2x25xf32, #tpu.memory_space<vmem>>, vector<2x1xf32>
    %c0_142 = arith.constant 0 : index
    %c32_143 = arith.constant 32 : index
    %203 = vector.load %arg15[%c0_142, %c32_143] : memref<4x320xf32, #tpu.memory_space<vmem>>, vector<2x256xf32>
    %204 = vector.broadcast %202 : vector<2x1xf32> to vector<2x256xf32>
    %205 = arith.mulf %204, %203 : vector<2x256xf32>
    %206 = arith.addf %201, %205 : vector<2x256xf32>
    %c0_144 = arith.constant 0 : index
    %c19 = arith.constant 19 : index
    %207 = vector.load %arg4[%c0_144, %c19] : memref<2x25xf32, #tpu.memory_space<vmem>>, vector<2x1xf32>
    %c0_145 = arith.constant 0 : index
    %c48_146 = arith.constant 48 : index
    %208 = vector.load %arg15[%c0_145, %c48_146] : memref<4x320xf32, #tpu.memory_space<vmem>>, vector<2x256xf32>
    %209 = vector.broadcast %207 : vector<2x1xf32> to vector<2x256xf32>
    %210 = arith.mulf %209, %208 : vector<2x256xf32>
    %211 = arith.addf %206, %210 : vector<2x256xf32>
    %c0_147 = arith.constant 0 : index
    %c24 = arith.constant 24 : index
    %212 = vector.load %arg4[%c0_147, %c24] : memref<2x25xf32, #tpu.memory_space<vmem>>, vector<2x1xf32>
    %c0_148 = arith.constant 0 : index
    %c64_149 = arith.constant 64 : index
    %213 = vector.load %arg15[%c0_148, %c64_149] : memref<4x320xf32, #tpu.memory_space<vmem>>, vector<2x256xf32>
    %214 = vector.broadcast %212 : vector<2x1xf32> to vector<2x256xf32>
    %215 = arith.mulf %214, %213 : vector<2x256xf32>
    %216 = arith.addf %211, %215 : vector<2x256xf32>
    %c0_150 = arith.constant 0 : index
    %c0_151 = arith.constant 0 : index
    %217 = vector.load %arg5[%c0_150, %c0_151] : memref<2x1xf32, #tpu.memory_space<vmem>>, vector<2x1xf32>
    %218 = vector.broadcast %217 : vector<2x1xf32> to vector<2x256xf32>
    %219 = arith.addf %216, %218 : vector<2x256xf32>
    %220 = arith.negf %219 : vector<2x256xf32>
    %221 = math.exp %220 : vector<2x256xf32>
    %cst_152 = arith.constant 1.000000e+00 : f32
    %222 = vector.broadcast %cst_152 : f32 to vector<2x256xf32>
    %223 = arith.addf %222, %221 : vector<2x256xf32>
    %224 = arith.divf %222, %223 : vector<2x256xf32>
    %225 = arith.mulf %219, %224 : vector<2x256xf32>
    %c2_153 = arith.constant 2 : index
    %c0_154 = arith.constant 0 : index
    %226 = vector.load %arg12[%c2_153, %c0_154] : memref<4x256xf32, #tpu.memory_space<vmem>>, vector<2x256xf32>
    tpu.vector_store %arg12[%c2_153, %c0_154], %225 {strides = array<i32>} : memref<4x256xf32, #tpu.memory_space<vmem>>, vector<2x256xf32>,
    %c0_155 = arith.constant 0 : index
    %c0_156 = arith.constant 0 : index
    %227 = vector.load %arg6[%c0_155, %c0_156] : memref<4x4xf32, #tpu.memory_space<vmem>>, vector<4x1xf32>
    %c0_157 = arith.constant 0 : index
    %c0_158 = arith.constant 0 : index
    %228 = vector.load %arg12[%c0_157, %c0_158] : memref<4x256xf32, #tpu.memory_space<vmem>>, vector<1x256xf32>
    %229 = vector.broadcast %227 : vector<4x1xf32> to vector<4x256xf32>
    %230 = vector.broadcast %228 : vector<1x256xf32> to vector<4x256xf32>
    %231 = arith.mulf %229, %230 : vector<4x256xf32>
    %c0_159 = arith.constant 0 : index
    %c1_160 = arith.constant 1 : index
    %232 = vector.load %arg6[%c0_159, %c1_160] : memref<4x4xf32, #tpu.memory_space<vmem>>, vector<4x1xf32>
    %c1_161 = arith.constant 1 : index
    %c0_162 = arith.constant 0 : index
    %233 = vector.load %arg12[%c1_161, %c0_162] : memref<4x256xf32, #tpu.memory_space<vmem>>, vector<1x256xf32>
    %234 = vector.broadcast %232 : vector<4x1xf32> to vector<4x256xf32>
    %235 = vector.broadcast %233 : vector<1x256xf32> to vector<4x256xf32>
    %236 = arith.mulf %234, %235 : vector<4x256xf32>
    %237 = arith.addf %231, %236 : vector<4x256xf32>
    %c0_163 = arith.constant 0 : index
    %c2_164 = arith.constant 2 : index
    %238 = vector.load %arg6[%c0_163, %c2_164] : memref<4x4xf32, #tpu.memory_space<vmem>>, vector<4x1xf32>
    %c2_165 = arith.constant 2 : index
    %c0_166 = arith.constant 0 : index
    %239 = vector.load %arg12[%c2_165, %c0_166] : memref<4x256xf32, #tpu.memory_space<vmem>>, vector<1x256xf32>
    %240 = vector.broadcast %238 : vector<4x1xf32> to vector<4x256xf32>
    %241 = vector.broadcast %239 : vector<1x256xf32> to vector<4x256xf32>
    %242 = arith.mulf %240, %241 : vector<4x256xf32>
    %243 = arith.addf %237, %242 : vector<4x256xf32>
    %c0_167 = arith.constant 0 : index
    %c3_168 = arith.constant 3 : index
    %244 = vector.load %arg6[%c0_167, %c3_168] : memref<4x4xf32, #tpu.memory_space<vmem>>, vector<4x1xf32>
    %c3_169 = arith.constant 3 : index
    %c0_170 = arith.constant 0 : index
    %245 = vector.load %arg12[%c3_169, %c0_170] : memref<4x256xf32, #tpu.memory_space<vmem>>, vector<1x256xf32>
    %246 = vector.broadcast %244 : vector<4x1xf32> to vector<4x256xf32>
    %247 = vector.broadcast %245 : vector<1x256xf32> to vector<4x256xf32>
    %248 = arith.mulf %246, %247 : vector<4x256xf32>
    %249 = arith.addf %243, %248 : vector<4x256xf32>
    %c0_171 = arith.constant 0 : index
    %c0_172 = arith.constant 0 : index
    %250 = vector.load %arg7[%c0_171, %c0_172] : memref<4x1xf32, #tpu.memory_space<vmem>>, vector<4x1xf32>
    %251 = vector.broadcast %250 : vector<4x1xf32> to vector<4x256xf32>
    %252 = arith.addf %249, %251 : vector<4x256xf32>
    %c0_173 = arith.constant 0 : index
    %c0_174 = arith.constant 0 : index
    %c0_175 = arith.constant 0 : index
    %253 = vector.load %arg1[%c0_173, %c0_174, %c0_175] : memref<1x8x256xf32, #tpu.memory_space<vmem>>, vector<1x4x256xf32>
    %254 = vector.shape_cast %253 : vector<1x4x256xf32> to vector<4x256xf32>
    %255 = arith.addf %252, %254 : vector<4x256xf32>
    %c0_176 = arith.constant 0 : index
    %c0_177 = arith.constant 0 : index
    %c0_178 = arith.constant 0 : index
    %256 = vector.load %arg11[%c0_176, %c0_177, %c0_178] : memref<1x8x256xf32, #tpu.memory_space<vmem>>, vector<1x4x256xf32>
    %257 = vector.shape_cast %256 : vector<1x4x256xf32> to vector<4x256xf32>
    %258 = vector.shape_cast %255 : vector<4x256xf32> to vector<1x4x256xf32>
    tpu.vector_store %arg11[%c0_176, %c0_177, %c0_178], %258 {strides = array<i32>} : memref<1x8x256xf32, #tpu.memory_space<vmem>>, vector<1x4x256xf32>,
    %cst_179 = arith.constant 0.000000e+00 : f32
    %259 = vector.broadcast %cst_179 : f32 to vector<4x34xf32>
    %c0_180 = arith.constant 0 : index
    %c0_181 = arith.constant 0 : index
    %260 = vector.load %arg14[%c0_180, %c0_181] : memref<4x324xf32, #tpu.memory_space<vmem>>, vector<4x34xf32>
    tpu.vector_store %arg14[%c0_180, %c0_181], %259 {strides = array<i32>} : memref<4x324xf32, #tpu.memory_space<vmem>>, vector<4x34xf32>,
    %c0_182 = arith.constant 0 : index
    %c290_183 = arith.constant 290 : index
    %261 = vector.load %arg14[%c0_182, %c290_183] : memref<4x324xf32, #tpu.memory_space<vmem>>, vector<4x34xf32>
    tpu.vector_store %arg14[%c0_182, %c290_183], %259 {strides = array<i32>} : memref<4x324xf32, #tpu.memory_space<vmem>>, vector<4x34xf32>,
    %c0_184 = arith.constant 0 : index
    %c34_185 = arith.constant 34 : index
    %262 = vector.load %arg14[%c0_184, %c34_185] : memref<4x324xf32, #tpu.memory_space<vmem>>, vector<4x256xf32>
    tpu.vector_store %arg14[%c0_184, %c34_185], %252 {strides = array<i32>} : memref<4x324xf32, #tpu.memory_space<vmem>>, vector<4x256xf32>,
    %cst_186 = arith.constant 0.000000e+00 : f32
    %263 = vector.broadcast %cst_186 : f32 to vector<4x256xf32>
    %c0_187 = arith.constant 0 : index
    %c0_188 = arith.constant 0 : index
    %264 = vector.load %arg14[%c0_187, %c0_188] : memref<4x324xf32, #tpu.memory_space<vmem>>, vector<4x320xf32>
    %c0_189 = arith.constant 0 : index
    %c0_190 = arith.constant 0 : index
    %265 = vector.load %arg10[%c0_189, %c0_190] : memref<5x320xf32, #tpu.memory_space<vmem>>, vector<1x320xf32>
    %266 = vector.broadcast %265 : vector<1x320xf32> to vector<4x320xf32>
    %267 = arith.mulf %264, %266 : vector<4x320xf32>
    %c0_191 = arith.constant 0 : index
    %c0_192 = arith.constant 0 : index
    %268 = vector.load %arg15[%c0_191, %c0_192] : memref<4x320xf32, #tpu.memory_space<vmem>>, vector<4x320xf32>
    tpu.vector_store %arg15[%c0_191, %c0_192], %267 {strides = array<i32>} : memref<4x320xf32, #tpu.memory_space<vmem>>, vector<4x320xf32>,
    %c0_193 = arith.constant 0 : index
    %c0_194 = arith.constant 0 : index
    %269 = vector.load %arg8[%c0_193, %c0_194] : memref<4x25xf32, #tpu.memory_space<vmem>>, vector<4x1xf32>
    %c0_195 = arith.constant 0 : index
    %c0_196 = arith.constant 0 : index
    %270 = vector.load %arg15[%c0_195, %c0_196] : memref<4x320xf32, #tpu.memory_space<vmem>>, vector<4x256xf32>
    %271 = vector.broadcast %269 : vector<4x1xf32> to vector<4x256xf32>
    %272 = arith.mulf %271, %270 : vector<4x256xf32>
    %273 = arith.addf %263, %272 : vector<4x256xf32>
    %c0_197 = arith.constant 0 : index
    %c5_198 = arith.constant 5 : index
    %274 = vector.load %arg8[%c0_197, %c5_198] : memref<4x25xf32, #tpu.memory_space<vmem>>, vector<4x1xf32>
    %c0_199 = arith.constant 0 : index
    %c16_200 = arith.constant 16 : index
    %275 = vector.load %arg15[%c0_199, %c16_200] : memref<4x320xf32, #tpu.memory_space<vmem>>, vector<4x256xf32>
    %276 = vector.broadcast %274 : vector<4x1xf32> to vector<4x256xf32>
    %277 = arith.mulf %276, %275 : vector<4x256xf32>
    %278 = arith.addf %273, %277 : vector<4x256xf32>
    %c0_201 = arith.constant 0 : index
    %c10_202 = arith.constant 10 : index
    %279 = vector.load %arg8[%c0_201, %c10_202] : memref<4x25xf32, #tpu.memory_space<vmem>>, vector<4x1xf32>
    %c0_203 = arith.constant 0 : index
    %c32_204 = arith.constant 32 : index
    %280 = vector.load %arg15[%c0_203, %c32_204] : memref<4x320xf32, #tpu.memory_space<vmem>>, vector<4x256xf32>
    %281 = vector.broadcast %279 : vector<4x1xf32> to vector<4x256xf32>
    %282 = arith.mulf %281, %280 : vector<4x256xf32>
    %283 = arith.addf %278, %282 : vector<4x256xf32>
    %c0_205 = arith.constant 0 : index
    %c15_206 = arith.constant 15 : index
    %284 = vector.load %arg8[%c0_205, %c15_206] : memref<4x25xf32, #tpu.memory_space<vmem>>, vector<4x1xf32>
    %c0_207 = arith.constant 0 : index
    %c48_208 = arith.constant 48 : index
    %285 = vector.load %arg15[%c0_207, %c48_208] : memref<4x320xf32, #tpu.memory_space<vmem>>, vector<4x256xf32>
    %286 = vector.broadcast %284 : vector<4x1xf32> to vector<4x256xf32>
    %287 = arith.mulf %286, %285 : vector<4x256xf32>
    %288 = arith.addf %283, %287 : vector<4x256xf32>
    %c0_209 = arith.constant 0 : index
    %c20_210 = arith.constant 20 : index
    %289 = vector.load %arg8[%c0_209, %c20_210] : memref<4x25xf32, #tpu.memory_space<vmem>>, vector<4x1xf32>
    %c0_211 = arith.constant 0 : index
    %c64_212 = arith.constant 64 : index
    %290 = vector.load %arg15[%c0_211, %c64_212] : memref<4x320xf32, #tpu.memory_space<vmem>>, vector<4x256xf32>
    %291 = vector.broadcast %289 : vector<4x1xf32> to vector<4x256xf32>
    %292 = arith.mulf %291, %290 : vector<4x256xf32>
    %293 = arith.addf %288, %292 : vector<4x256xf32>
    %c0_213 = arith.constant 0 : index
    %c1_214 = arith.constant 1 : index
    %294 = vector.load %arg14[%c0_213, %c1_214] : memref<4x324xf32, #tpu.memory_space<vmem>>, vector<4x320xf32>
    %c1_215 = arith.constant 1 : index
    %c0_216 = arith.constant 0 : index
    %295 = vector.load %arg10[%c1_215, %c0_216] : memref<5x320xf32, #tpu.memory_space<vmem>>, vector<1x320xf32>
    %296 = vector.broadcast %295 : vector<1x320xf32> to vector<4x320xf32>
    %297 = arith.mulf %294, %296 : vector<4x320xf32>
    %c0_217 = arith.constant 0 : index
    %c0_218 = arith.constant 0 : index
    %298 = vector.load %arg15[%c0_217, %c0_218] : memref<4x320xf32, #tpu.memory_space<vmem>>, vector<4x320xf32>
    tpu.vector_store %arg15[%c0_217, %c0_218], %297 {strides = array<i32>} : memref<4x320xf32, #tpu.memory_space<vmem>>, vector<4x320xf32>,
    %c0_219 = arith.constant 0 : index
    %c1_220 = arith.constant 1 : index
    %299 = vector.load %arg8[%c0_219, %c1_220] : memref<4x25xf32, #tpu.memory_space<vmem>>, vector<4x1xf32>
    %c0_221 = arith.constant 0 : index
    %c0_222 = arith.constant 0 : index
    %300 = vector.load %arg15[%c0_221, %c0_222] : memref<4x320xf32, #tpu.memory_space<vmem>>, vector<4x256xf32>
    %301 = vector.broadcast %299 : vector<4x1xf32> to vector<4x256xf32>
    %302 = arith.mulf %301, %300 : vector<4x256xf32>
    %303 = arith.addf %293, %302 : vector<4x256xf32>
    %c0_223 = arith.constant 0 : index
    %c6_224 = arith.constant 6 : index
    %304 = vector.load %arg8[%c0_223, %c6_224] : memref<4x25xf32, #tpu.memory_space<vmem>>, vector<4x1xf32>
    %c0_225 = arith.constant 0 : index
    %c16_226 = arith.constant 16 : index
    %305 = vector.load %arg15[%c0_225, %c16_226] : memref<4x320xf32, #tpu.memory_space<vmem>>, vector<4x256xf32>
    %306 = vector.broadcast %304 : vector<4x1xf32> to vector<4x256xf32>
    %307 = arith.mulf %306, %305 : vector<4x256xf32>
    %308 = arith.addf %303, %307 : vector<4x256xf32>
    %c0_227 = arith.constant 0 : index
    %c11_228 = arith.constant 11 : index
    %309 = vector.load %arg8[%c0_227, %c11_228] : memref<4x25xf32, #tpu.memory_space<vmem>>, vector<4x1xf32>
    %c0_229 = arith.constant 0 : index
    %c32_230 = arith.constant 32 : index
    %310 = vector.load %arg15[%c0_229, %c32_230] : memref<4x320xf32, #tpu.memory_space<vmem>>, vector<4x256xf32>
    %311 = vector.broadcast %309 : vector<4x1xf32> to vector<4x256xf32>
    %312 = arith.mulf %311, %310 : vector<4x256xf32>
    %313 = arith.addf %308, %312 : vector<4x256xf32>
    %c0_231 = arith.constant 0 : index
    %c16_232 = arith.constant 16 : index
    %314 = vector.load %arg8[%c0_231, %c16_232] : memref<4x25xf32, #tpu.memory_space<vmem>>, vector<4x1xf32>
    %c0_233 = arith.constant 0 : index
    %c48_234 = arith.constant 48 : index
    %315 = vector.load %arg15[%c0_233, %c48_234] : memref<4x320xf32, #tpu.memory_space<vmem>>, vector<4x256xf32>
    %316 = vector.broadcast %314 : vector<4x1xf32> to vector<4x256xf32>
    %317 = arith.mulf %316, %315 : vector<4x256xf32>
    %318 = arith.addf %313, %317 : vector<4x256xf32>
    %c0_235 = arith.constant 0 : index
    %c21_236 = arith.constant 21 : index
    %319 = vector.load %arg8[%c0_235, %c21_236] : memref<4x25xf32, #tpu.memory_space<vmem>>, vector<4x1xf32>
    %c0_237 = arith.constant 0 : index
    %c64_238 = arith.constant 64 : index
    %320 = vector.load %arg15[%c0_237, %c64_238] : memref<4x320xf32, #tpu.memory_space<vmem>>, vector<4x256xf32>
    %321 = vector.broadcast %319 : vector<4x1xf32> to vector<4x256xf32>
    %322 = arith.mulf %321, %320 : vector<4x256xf32>
    %323 = arith.addf %318, %322 : vector<4x256xf32>
    %c0_239 = arith.constant 0 : index
    %c2_240 = arith.constant 2 : index
    %324 = vector.load %arg14[%c0_239, %c2_240] : memref<4x324xf32, #tpu.memory_space<vmem>>, vector<4x320xf32>
    %c0_241 = arith.constant 0 : index
    %c0_242 = arith.constant 0 : index
    %325 = vector.load %arg15[%c0_241, %c0_242] : memref<4x320xf32, #tpu.memory_space<vmem>>, vector<4x320xf32>
    tpu.vector_store %arg15[%c0_241, %c0_242], %324 {strides = array<i32>} : memref<4x320xf32, #tpu.memory_space<vmem>>, vector<4x320xf32>,
    %c0_243 = arith.constant 0 : index
    %c2_244 = arith.constant 2 : index
    %326 = vector.load %arg8[%c0_243, %c2_244] : memref<4x25xf32, #tpu.memory_space<vmem>>, vector<4x1xf32>
    %c0_245 = arith.constant 0 : index
    %c0_246 = arith.constant 0 : index
    %327 = vector.load %arg15[%c0_245, %c0_246] : memref<4x320xf32, #tpu.memory_space<vmem>>, vector<4x256xf32>
    %328 = vector.broadcast %326 : vector<4x1xf32> to vector<4x256xf32>
    %329 = arith.mulf %328, %327 : vector<4x256xf32>
    %330 = arith.addf %323, %329 : vector<4x256xf32>
    %c0_247 = arith.constant 0 : index
    %c7_248 = arith.constant 7 : index
    %331 = vector.load %arg8[%c0_247, %c7_248] : memref<4x25xf32, #tpu.memory_space<vmem>>, vector<4x1xf32>
    %c0_249 = arith.constant 0 : index
    %c16_250 = arith.constant 16 : index
    %332 = vector.load %arg15[%c0_249, %c16_250] : memref<4x320xf32, #tpu.memory_space<vmem>>, vector<4x256xf32>
    %333 = vector.broadcast %331 : vector<4x1xf32> to vector<4x256xf32>
    %334 = arith.mulf %333, %332 : vector<4x256xf32>
    %335 = arith.addf %330, %334 : vector<4x256xf32>
    %c0_251 = arith.constant 0 : index
    %c12_252 = arith.constant 12 : index
    %336 = vector.load %arg8[%c0_251, %c12_252] : memref<4x25xf32, #tpu.memory_space<vmem>>, vector<4x1xf32>
    %c0_253 = arith.constant 0 : index
    %c32_254 = arith.constant 32 : index
    %337 = vector.load %arg15[%c0_253, %c32_254] : memref<4x320xf32, #tpu.memory_space<vmem>>, vector<4x256xf32>
    %338 = vector.broadcast %336 : vector<4x1xf32> to vector<4x256xf32>
    %339 = arith.mulf %338, %337 : vector<4x256xf32>
    %340 = arith.addf %335, %339 : vector<4x256xf32>
    %c0_255 = arith.constant 0 : index
    %c17_256 = arith.constant 17 : index
    %341 = vector.load %arg8[%c0_255, %c17_256] : memref<4x25xf32, #tpu.memory_space<vmem>>, vector<4x1xf32>
    %c0_257 = arith.constant 0 : index
    %c48_258 = arith.constant 48 : index
    %342 = vector.load %arg15[%c0_257, %c48_258] : memref<4x320xf32, #tpu.memory_space<vmem>>, vector<4x256xf32>
    %343 = vector.broadcast %341 : vector<4x1xf32> to vector<4x256xf32>
    %344 = arith.mulf %343, %342 : vector<4x256xf32>
    %345 = arith.addf %340, %344 : vector<4x256xf32>
    %c0_259 = arith.constant 0 : index
    %c22_260 = arith.constant 22 : index
    %346 = vector.load %arg8[%c0_259, %c22_260] : memref<4x25xf32, #tpu.memory_space<vmem>>, vector<4x1xf32>
    %c0_261 = arith.constant 0 : index
    %c64_262 = arith.constant 64 : index
    %347 = vector.load %arg15[%c0_261, %c64_262] : memref<4x320xf32, #tpu.memory_space<vmem>>, vector<4x256xf32>
    %348 = vector.broadcast %346 : vector<4x1xf32> to vector<4x256xf32>
    %349 = arith.mulf %348, %347 : vector<4x256xf32>
    %350 = arith.addf %345, %349 : vector<4x256xf32>
    %c0_263 = arith.constant 0 : index
    %c3_264 = arith.constant 3 : index
    %351 = vector.load %arg14[%c0_263, %c3_264] : memref<4x324xf32, #tpu.memory_space<vmem>>, vector<4x320xf32>
    %c3_265 = arith.constant 3 : index
    %c0_266 = arith.constant 0 : index
    %352 = vector.load %arg10[%c3_265, %c0_266] : memref<5x320xf32, #tpu.memory_space<vmem>>, vector<1x320xf32>
    %353 = vector.broadcast %352 : vector<1x320xf32> to vector<4x320xf32>
    %354 = arith.mulf %351, %353 : vector<4x320xf32>
    %c0_267 = arith.constant 0 : index
    %c0_268 = arith.constant 0 : index
    %355 = vector.load %arg15[%c0_267, %c0_268] : memref<4x320xf32, #tpu.memory_space<vmem>>, vector<4x320xf32>
    tpu.vector_store %arg15[%c0_267, %c0_268], %354 {strides = array<i32>} : memref<4x320xf32, #tpu.memory_space<vmem>>, vector<4x320xf32>,
    %c0_269 = arith.constant 0 : index
    %c3_270 = arith.constant 3 : index
    %356 = vector.load %arg8[%c0_269, %c3_270] : memref<4x25xf32, #tpu.memory_space<vmem>>, vector<4x1xf32>
    %c0_271 = arith.constant 0 : index
    %c0_272 = arith.constant 0 : index
    %357 = vector.load %arg15[%c0_271, %c0_272] : memref<4x320xf32, #tpu.memory_space<vmem>>, vector<4x256xf32>
    %358 = vector.broadcast %356 : vector<4x1xf32> to vector<4x256xf32>
    %359 = arith.mulf %358, %357 : vector<4x256xf32>
    %360 = arith.addf %350, %359 : vector<4x256xf32>
    %c0_273 = arith.constant 0 : index
    %c8_274 = arith.constant 8 : index
    %361 = vector.load %arg8[%c0_273, %c8_274] : memref<4x25xf32, #tpu.memory_space<vmem>>, vector<4x1xf32>
    %c0_275 = arith.constant 0 : index
    %c16_276 = arith.constant 16 : index
    %362 = vector.load %arg15[%c0_275, %c16_276] : memref<4x320xf32, #tpu.memory_space<vmem>>, vector<4x256xf32>
    %363 = vector.broadcast %361 : vector<4x1xf32> to vector<4x256xf32>
    %364 = arith.mulf %363, %362 : vector<4x256xf32>
    %365 = arith.addf %360, %364 : vector<4x256xf32>
    %c0_277 = arith.constant 0 : index
    %c13_278 = arith.constant 13 : index
    %366 = vector.load %arg8[%c0_277, %c13_278] : memref<4x25xf32, #tpu.memory_space<vmem>>, vector<4x1xf32>
    %c0_279 = arith.constant 0 : index
    %c32_280 = arith.constant 32 : index
    %367 = vector.load %arg15[%c0_279, %c32_280] : memref<4x320xf32, #tpu.memory_space<vmem>>, vector<4x256xf32>
    %368 = vector.broadcast %366 : vector<4x1xf32> to vector<4x256xf32>
    %369 = arith.mulf %368, %367 : vector<4x256xf32>
    %370 = arith.addf %365, %369 : vector<4x256xf32>
    %c0_281 = arith.constant 0 : index
    %c18_282 = arith.constant 18 : index
    %371 = vector.load %arg8[%c0_281, %c18_282] : memref<4x25xf32, #tpu.memory_space<vmem>>, vector<4x1xf32>
    %c0_283 = arith.constant 0 : index
    %c48_284 = arith.constant 48 : index
    %372 = vector.load %arg15[%c0_283, %c48_284] : memref<4x320xf32, #tpu.memory_space<vmem>>, vector<4x256xf32>
    %373 = vector.broadcast %371 : vector<4x1xf32> to vector<4x256xf32>
    %374 = arith.mulf %373, %372 : vector<4x256xf32>
    %375 = arith.addf %370, %374 : vector<4x256xf32>
    %c0_285 = arith.constant 0 : index
    %c23_286 = arith.constant 23 : index
    %376 = vector.load %arg8[%c0_285, %c23_286] : memref<4x25xf32, #tpu.memory_space<vmem>>, vector<4x1xf32>
    %c0_287 = arith.constant 0 : index
    %c64_288 = arith.constant 64 : index
    %377 = vector.load %arg15[%c0_287, %c64_288] : memref<4x320xf32, #tpu.memory_space<vmem>>, vector<4x256xf32>
    %378 = vector.broadcast %376 : vector<4x1xf32> to vector<4x256xf32>
    %379 = arith.mulf %378, %377 : vector<4x256xf32>
    %380 = arith.addf %375, %379 : vector<4x256xf32>
    %c0_289 = arith.constant 0 : index
    %c4_290 = arith.constant 4 : index
    %381 = vector.load %arg14[%c0_289, %c4_290] : memref<4x324xf32, #tpu.memory_space<vmem>>, vector<4x320xf32>
    %c4_291 = arith.constant 4 : index
    %c0_292 = arith.constant 0 : index
    %382 = vector.load %arg10[%c4_291, %c0_292] : memref<5x320xf32, #tpu.memory_space<vmem>>, vector<1x320xf32>
    %383 = vector.broadcast %382 : vector<1x320xf32> to vector<4x320xf32>
    %384 = arith.mulf %381, %383 : vector<4x320xf32>
    %c0_293 = arith.constant 0 : index
    %c0_294 = arith.constant 0 : index
    %385 = vector.load %arg15[%c0_293, %c0_294] : memref<4x320xf32, #tpu.memory_space<vmem>>, vector<4x320xf32>
    tpu.vector_store %arg15[%c0_293, %c0_294], %384 {strides = array<i32>} : memref<4x320xf32, #tpu.memory_space<vmem>>, vector<4x320xf32>,
    %c0_295 = arith.constant 0 : index
    %c4_296 = arith.constant 4 : index
    %386 = vector.load %arg8[%c0_295, %c4_296] : memref<4x25xf32, #tpu.memory_space<vmem>>, vector<4x1xf32>
    %c0_297 = arith.constant 0 : index
    %c0_298 = arith.constant 0 : index
    %387 = vector.load %arg15[%c0_297, %c0_298] : memref<4x320xf32, #tpu.memory_space<vmem>>, vector<4x256xf32>
    %388 = vector.broadcast %386 : vector<4x1xf32> to vector<4x256xf32>
    %389 = arith.mulf %388, %387 : vector<4x256xf32>
    %390 = arith.addf %380, %389 : vector<4x256xf32>
    %c0_299 = arith.constant 0 : index
    %c9_300 = arith.constant 9 : index
    %391 = vector.load %arg8[%c0_299, %c9_300] : memref<4x25xf32, #tpu.memory_space<vmem>>, vector<4x1xf32>
    %c0_301 = arith.constant 0 : index
    %c16_302 = arith.constant 16 : index
    %392 = vector.load %arg15[%c0_301, %c16_302] : memref<4x320xf32, #tpu.memory_space<vmem>>, vector<4x256xf32>
    %393 = vector.broadcast %391 : vector<4x1xf32> to vector<4x256xf32>
    %394 = arith.mulf %393, %392 : vector<4x256xf32>
    %395 = arith.addf %390, %394 : vector<4x256xf32>
    %c0_303 = arith.constant 0 : index
    %c14_304 = arith.constant 14 : index
    %396 = vector.load %arg8[%c0_303, %c14_304] : memref<4x25xf32, #tpu.memory_space<vmem>>, vector<4x1xf32>
    %c0_305 = arith.constant 0 : index
    %c32_306 = arith.constant 32 : index
    %397 = vector.load %arg15[%c0_305, %c32_306] : memref<4x320xf32, #tpu.memory_space<vmem>>, vector<4x256xf32>
    %398 = vector.broadcast %396 : vector<4x1xf32> to vector<4x256xf32>
    %399 = arith.mulf %398, %397 : vector<4x256xf32>
    %400 = arith.addf %395, %399 : vector<4x256xf32>
    %c0_307 = arith.constant 0 : index
    %c19_308 = arith.constant 19 : index
    %401 = vector.load %arg8[%c0_307, %c19_308] : memref<4x25xf32, #tpu.memory_space<vmem>>, vector<4x1xf32>
    %c0_309 = arith.constant 0 : index
    %c48_310 = arith.constant 48 : index
    %402 = vector.load %arg15[%c0_309, %c48_310] : memref<4x320xf32, #tpu.memory_space<vmem>>, vector<4x256xf32>
    %403 = vector.broadcast %401 : vector<4x1xf32> to vector<4x256xf32>
    %404 = arith.mulf %403, %402 : vector<4x256xf32>
    %405 = arith.addf %400, %404 : vector<4x256xf32>
    %c0_311 = arith.constant 0 : index
    %c24_312 = arith.constant 24 : index
    %406 = vector.load %arg8[%c0_311, %c24_312] : memref<4x25xf32, #tpu.memory_space<vmem>>, vector<4x1xf32>
    %c0_313 = arith.constant 0 : index
    %c64_314 = arith.constant 64 : index
    %407 = vector.load %arg15[%c0_313, %c64_314] : memref<4x320xf32, #tpu.memory_space<vmem>>, vector<4x256xf32>
    %408 = vector.broadcast %406 : vector<4x1xf32> to vector<4x256xf32>
    %409 = arith.mulf %408, %407 : vector<4x256xf32>
    %410 = arith.addf %405, %409 : vector<4x256xf32>
    %c0_315 = arith.constant 0 : index
    %c0_316 = arith.constant 0 : index
    %411 = vector.load %arg9[%c0_315, %c0_316] : memref<4x1xf32, #tpu.memory_space<vmem>>, vector<4x1xf32>
    %412 = vector.broadcast %411 : vector<4x1xf32> to vector<4x256xf32>
    %413 = arith.addf %410, %412 : vector<4x256xf32>
    %c0_317 = arith.constant 0 : index
    %c4_318 = arith.constant 4 : index
    %c0_319 = arith.constant 0 : index
    %414 = vector.load %arg1[%c0_317, %c4_318, %c0_319] : memref<1x8x256xf32, #tpu.memory_space<vmem>>, vector<1x4x256xf32>
    %415 = vector.shape_cast %414 : vector<1x4x256xf32> to vector<4x256xf32>
    %416 = arith.addf %413, %415 : vector<4x256xf32>
    %c0_320 = arith.constant 0 : index
    %c4_321 = arith.constant 4 : index
    %c0_322 = arith.constant 0 : index
    %417 = vector.load %arg11[%c0_320, %c4_321, %c0_322] : memref<1x8x256xf32, #tpu.memory_space<vmem>>, vector<1x4x256xf32>
    %418 = vector.shape_cast %417 : vector<1x4x256xf32> to vector<4x256xf32>
    %419 = vector.shape_cast %416 : vector<4x256xf32> to vector<1x4x256xf32>
    tpu.vector_store %arg11[%c0_320, %c4_321, %c0_322], %419 {strides = array<i32>} : memref<1x8x256xf32, #tpu.memory_space<vmem>>, vector<1x4x256xf32>,
    return
  }
  func.func @transform_0(%arg0: i32) -> (i32, i32, i32) {
    %c0_i32 = arith.constant 0 : i32
    %c0_i32_0 = arith.constant 0 : i32
    %c0_i32_1 = arith.constant 0 : i32
    return %arg0, %c0_i32, %c0_i32_0 : i32, i32, i32
  }
  func.func @transform_1(%arg0: i32) -> (i32, i32) {
    %c0_i32 = arith.constant 0 : i32
    %c0_i32_0 = arith.constant 0 : i32
    %c0_i32_1 = arith.constant 0 : i32
    return %c0_i32, %c0_i32_0 : i32, i32
  }
  func.func @transform_2(%arg0: i32) -> (i32, i32) {
    %c0_i32 = arith.constant 0 : i32
    %c0_i32_0 = arith.constant 0 : i32
    %c0_i32_1 = arith.constant 0 : i32
    return %c0_i32, %c0_i32_0 : i32, i32
  }
  func.func @transform_3(%arg0: i32) -> (i32, i32) {
    %c0_i32 = arith.constant 0 : i32
    %c0_i32_0 = arith.constant 0 : i32
    %c0_i32_1 = arith.constant 0 : i32
    return %c0_i32, %c0_i32_0 : i32, i32
  }
  func.func @transform_4(%arg0: i32) -> (i32, i32) {
    %c0_i32 = arith.constant 0 : i32
    %c0_i32_0 = arith.constant 0 : i32
    %c0_i32_1 = arith.constant 0 : i32
    return %c0_i32, %c0_i32_0 : i32, i32
  }
  func.func @transform_5(%arg0: i32) -> (i32, i32) {
    %c0_i32 = arith.constant 0 : i32
    %c0_i32_0 = arith.constant 0 : i32
    %c0_i32_1 = arith.constant 0 : i32
    return %c0_i32, %c0_i32_0 : i32, i32
  }
  func.func @transform_6(%arg0: i32) -> (i32, i32) {
    %c0_i32 = arith.constant 0 : i32
    %c0_i32_0 = arith.constant 0 : i32
    %c0_i32_1 = arith.constant 0 : i32
    return %c0_i32, %c0_i32_0 : i32, i32
  }
  func.func @transform_7(%arg0: i32) -> (i32, i32) {
    %c0_i32 = arith.constant 0 : i32
    %c0_i32_0 = arith.constant 0 : i32
    %c0_i32_1 = arith.constant 0 : i32
    return %c0_i32, %c0_i32_0 : i32, i32
  }
  func.func @transform_8(%arg0: i32) -> (i32, i32) {
    %c0_i32 = arith.constant 0 : i32
    %c0_i32_0 = arith.constant 0 : i32
    %c0_i32_1 = arith.constant 0 : i32
    return %c0_i32, %c0_i32_0 : i32, i32
  }
  func.func @transform_9(%arg0: i32) -> (i32, i32) {
    %c0_i32 = arith.constant 0 : i32
    %c0_i32_0 = arith.constant 0 : i32
    %c0_i32_1 = arith.constant 0 : i32
    return %c0_i32, %c0_i32_0 : i32, i32
  }
  func.func @transform_10(%arg0: i32) -> (i32, i32, i32) {
    %c0_i32 = arith.constant 0 : i32
    %c0_i32_0 = arith.constant 0 : i32
    %c0_i32_1 = arith.constant 0 : i32
    return %arg0, %c0_i32, %c0_i32_0 : i32, i32, i32
  }
}

</mosaic_0001>

<bundles_post_ra>
// kernel: tpu_custom_call.1
= control target key start
LH: loop header
LB: loop body
LE: loop exit
PB: predicated region body
PF: predicated region fallthrough
CT: control target
= control target key end

     0   :  { %s4684_s0 = inlined_call_operand.hbm [shape: f32[2,8,256], index: 0, kind: input, shape index: {}]   ;;  %s4685_s1 = inlined_call_operand.hbm [shape: f32[2,8], index: 1, kind: input, shape index: {}]   ;;  %s4686_s2 = inlined_call_operand.hbm [shape: f32[2,1], index: 2, kind: input, shape index: {}]   ;;  %s4687_s3 = inlined_call_operand.hbm [shape: f32[2,25], index: 3, kind: input, shape index: {}]   ;;  %s4688_s4 = inlined_call_operand.hbm [shape: f32[2,1], index: 4, kind: input, shape index: {}]   ;;  %s4689_s5 = inlined_call_operand.hbm [shape: f32[4,4], index: 5, kind: input, shape index: {}]   ;;  %s4690_s6 = inlined_call_operand.hbm [shape: f32[4,1], index: 6, kind: input, shape index: {}]   ;;  %s4691_s7 = inlined_call_operand.hbm [shape: f32[4,25], index: 7, kind: input, shape index: {}]   ;;  %s4692_s8 = inlined_call_operand.hbm [shape: f32[4,1], index: 8, kind: input, shape index: {}]   ;;  %s4693_s9 = inlined_call_operand.hbm [shape: f32[5,320], index: 9, kind: input, shape index: {}]   ;;  %s4694_s10 = inlined_call_operand.hbm [shape: f32[2,8,256], index: 10, kind: output, shape index: {}]  }
   0x1   :  { %4737 = sst [smem:[#allocation36_spill]] %s4685_s1 }
   0x2   :  { %4738 = sst [smem:[#allocation37_spill]] %s4694_s10 }
   0x3   :  { %15 = vsyncpa [#allocation7], 0 }
   0x4   :  { %17 = vsyncpa [#allocation7 + $0x1], 0 }
   0x5   :  { %18 = vsyncpa [#allocation10], 0 }
   0x6   :  { %19 = vsyncpa [#allocation13], 0 }
   0x7   :  { %20 = vsyncpa [#allocation16], 0 }
   0x8   :  { %21 = vsyncpa [#allocation19], 0 }
   0x9   :  { %22 = vsyncpa [#allocation22], 0 }
   0xa   :  { %23 = vsyncpa [#allocation8], 0 }
   0xb   :  { %25 = vsyncpa [#allocation8 + $0x1], 0  ;;  %s3443_s13 = smov 0   ;;  %s3445_s14 = smov 0  }
   0xc   :  { %s3447_s15 = smov 0   ;;  %s3449_s16 = smov 0  }
   0xd LB: > { %s3338_s17 = smov [#allocation9]   ;;  %s3464_s19 = sadd.s32 4294967295, %s3336_s16   ;;  %s3336_s16 = sphi %s3449_s16, %s4804_s16   ;;  %s3332_s15 = sphi %s3447_s15, %s4803_s15   ;;  %s3328_s14 = sphi %s3445_s14, %s4802_s14   ;;  %s3324_s13 = sphi %s3443_s13, %s4801_s13  }
   0xe   : > { %s290_s18 = sshll.u32 %s3338_s17, 4  ;;  %p2646_p0 = scmp.ge.s32.totalorder %s3336_s16, 1  ;;  %s3469_s18 = int_to_ptr.vmem [resolvable:$true] %s290_s18 }
   0xf   : > { %p4696_p1 = scmp.eq.s32.totalorder %s3464_s19, 0  ;;  %p277_p2 = scmp.lt.s32.totalorder %s3336_s16, 3 }
  0x10   : > { %s3339_s21 = smov [#allocation12]   ;;  %s3340_s23 = smov [#allocation15]  }
  0x11   : > { %p3471_p3 = pnand %p2646_p0, %p277_p2  ;;  %s312_s22 = sshll.u32 %s3339_s21, 4  ;;  %s3478_s22 = int_to_ptr.vmem [resolvable:$true] %s312_s22 }
  0x12   : > { %s334_s24 = sshll.u32 %s3340_s23, 4  ;;  %s3341_s26 = smov [#allocation18]   ;;  %s3486_s24 = int_to_ptr.vmem [resolvable:$true] %s334_s24 }
  0x13   : > { %s4739_s20 = scalar_select %p3471_p3, 1, 0 }
  0x14   : > { %p2731_p5 = pneg %p3471_p3  ;;  %s3488_s27 = sshll.u32 %s3341_s26, 4  ;;  %s357_s27 = int_to_ptr.vmem [resolvable:$true] %s3488_s27 }
  0x15   : > { %s4741_s1 = sld [smem:[#allocation36_spill]] }
  0x16   : > { %p3482_p6 = pnand %p2731_p5, %p4696_p1 }
  0x18   : > { %p3498_p8 = pneg %p3482_p6 }
  0x1b   : > { %s2968_s30 = scalar_lea.hbm %s4741_s1, 32 }
  0x1c   : > { %p2969_p7 = scmp.ne.s32.totalorder %s4741_s1, %s2968_s30  ;;  %p2975_p11 = scmp.lt.u32.totalorder %s2968_s30, %s4741_s1 }
  0x1e   : > { %p2971_p9 = pnand %p3498_p8, %p2969_p7 }
  0x20   : > { %p2972_p10 = pneg %p2971_p9 }
  0x22   : > { %p2977_p12 = pnand %p2975_p11, %p2972_p10 }
  0x24   : > { %2980 = shalt.err (!%p2977_p12)
}
  0x25   : > { %s2981_s26 = scalar_lea.vmem %s3469_s18, 32  ;;  %p2989_p5 = scmp.lt.s32.totalorder %s3469_s18, %s3469_s18 }
  0x26   : > { %p2982_p13 = scmp.ne.s32.totalorder %s3469_s18, %s2981_s26  ;;  %p2990_p4 = scmp.lt.s32.totalorder %s2981_s26, %s2981_s26 }
  0x28   : > { %p2984_p0 = pnand %p2982_p13, %p3498_p8  ;;  %p2991_p7 = por %p2990_p4, %p2989_p5 }
  0x2a   : > { %p2985_p2 = pneg %p2984_p0 }
  0x2c   : > { %p2992_p9 = pnand %p2991_p7, %p2985_p2 }
  0x2e   : > { %2995 = shalt.err (!%p2992_p9)
}
  0x2f   : > { %2734 = dma.hbm_to_vmem [thread:$0]  (!%p3482_p6), %s4741_s1, 32, %s3469_s18, [#allocation10]  }
  0x30   : > { %s2996_s12 = scalar_lea.hbm %s4687_s3, 32 }
  0x31   : > { %p2997_p10 = scmp.ne.s32.totalorder %s4687_s3, %s2996_s12  ;;  %p3003_p12 = scmp.lt.u32.totalorder %s2996_s12, %s4687_s3 }
  0x33   : > { %p2999_p4 = pnand %p2997_p10, %p3498_p8 }
  0x35   : > { %p3000_p11 = pneg %p2999_p4 }
  0x37   : > { %p3005_p13 = pnand %p3003_p12, %p3000_p11 }
  0x39   : > { %3008 = shalt.err (!%p3005_p13)
}
  0x3a   : > { %s3009_s18 = scalar_lea.vmem %s3478_s22, 32  ;;  %p3017_p7 = scmp.lt.s32.totalorder %s3478_s22, %s3478_s22 }
  0x3b   : > { %p3010_p0 = scmp.ne.s32.totalorder %s3478_s22, %s3009_s18  ;;  %p3018_p9 = scmp.lt.s32.totalorder %s3009_s18, %s3009_s18 }
  0x3d   : > { %p3012_p2 = pnand %p3010_p0, %p3498_p8  ;;  %p3019_p10 = por %p3018_p9, %p3017_p7 }
  0x3f   : > { %p3013_p5 = pneg %p3012_p2 }
  0x41   : > { %p3020_p4 = pnand %p3019_p10, %p3013_p5 }
  0x43   : > { %3023 = shalt.err (!%p3020_p4)
}
  0x44   : > { %2740 = dma.hbm_to_vmem [thread:$0]  (!%p3482_p6), %s4687_s3, 32, %s3478_s22, [#allocation13]  }
  0x45   : > { %s3024_s11 = scalar_lea.hbm %s4689_s5, 64 }
  0x46   : > { %p3025_p11 = scmp.ne.s32.totalorder %s4689_s5, %s3024_s11  ;;  %p3031_p0 = scmp.lt.u32.totalorder %s3024_s11, %s4689_s5 }
  0x48   : > { %p3027_p12 = pnand %p3025_p11, %p3498_p8 }
  0x4a   : > { %p3028_p13 = pneg %p3027_p12 }
  0x4c   : > { %p3033_p2 = pnand %p3031_p0, %p3028_p13 }
  0x4e   : > { %3036 = shalt.err (!%p3033_p2)
}
  0x4f   : > { %s3037_s22 = scalar_lea.vmem %s3486_s24, 64  ;;  %p3045_p10 = scmp.lt.s32.totalorder %s3486_s24, %s3486_s24 }
  0x50   : > { %p3038_p5 = scmp.ne.s32.totalorder %s3486_s24, %s3037_s22  ;;  %p3046_p4 = scmp.lt.s32.totalorder %s3037_s22, %s3037_s22 }
  0x52   : > { %p3040_p7 = pnand %p3038_p5, %p3498_p8  ;;  %p3047_p11 = por %p3046_p4, %p3045_p10 }
  0x54   : > { %p3041_p9 = pneg %p3040_p7 }
  0x56   : > { %p3048_p12 = pnand %p3047_p11, %p3041_p9 }
  0x58   : > { %3051 = shalt.err (!%p3048_p12)
}
  0x59   : > { %2746 = dma.hbm_to_vmem [thread:$0]  (!%p3482_p6), %s4689_s5, 64, %s3486_s24, [#allocation16]  }
  0x5a   : > { %s3342_s28 = smov [#allocation11]   ;;  %s3052_s12 = scalar_lea.hbm %s4691_s7, 64 }
  0x5b   : > { %s301_s29 = sshll.u32 %s3342_s28, 4  ;;  %p3053_p13 = scmp.ne.s32.totalorder %s4691_s7, %s3052_s12  ;;  %s302_s29 = int_to_ptr.vmem [resolvable:$true] %s301_s29 }
  0x5c   : > { %p3059_p5 = scmp.lt.u32.totalorder %s3052_s12, %s4691_s7 }
  0x5d   : > { %p3055_p0 = pnand %p3053_p13, %p3498_p8 }
  0x5f   : > { %p3056_p2 = pneg %p3055_p0 }
  0x61   : > { %p3061_p7 = pnand %p3059_p5, %p3056_p2 }
  0x63   : > { %3064 = shalt.err (!%p3061_p7)
}
  0x64   : > { %s3065_s24 = scalar_lea.vmem %s357_s27, 64  ;;  %p3073_p11 = scmp.lt.s32.totalorder %s357_s27, %s357_s27 }
  0x65   : > { %p3066_p9 = scmp.ne.s32.totalorder %s357_s27, %s3065_s24  ;;  %p3074_p12 = scmp.lt.s32.totalorder %s3065_s24, %s3065_s24 }
  0x67   : > { %p3068_p10 = pnand %p3066_p9, %p3498_p8  ;;  %p3075_p1 = por %p3074_p12, %p3073_p11 }
  0x69   : > { %p3069_p4 = pneg %p3068_p10 }
  0x6b   : > { %p3076_p3 = pnand %p3075_p1, %p3069_p4 }
  0x6d   : > { %3079 = shalt.err (!%p3076_p3)
}
  0x6e   : > { %2752 = dma.hbm_to_vmem [thread:$0]  (!%p3482_p6), %s4691_s7, 64, %s357_s27, [#allocation19]  }
  0x6f   : > { %s3080_s11 = scalar_lea.hbm %s4686_s2, 32 }
  0x70   : > { %p3081_p13 = scmp.ne.s32.totalorder %s4686_s2, %s3080_s11  ;;  %p3087_p3 = scmp.lt.u32.totalorder %s3080_s11, %s4686_s2 }
  0x72   : > { %p3083_p0 = pnand %p3081_p13, %p3498_p8 }
  0x74   : > { %p3084_p1 = pneg %p3083_p0 }
  0x76   : > { %p3089_p2 = pnand %p3087_p3, %p3084_p1 }
  0x78   : > { %3092 = shalt.err (!%p3089_p2)
}
  0x79   : > { %s3093_s22 = scalar_lea.vmem %s302_s29, 32  ;;  %p3101_p10 = scmp.lt.s32.totalorder %s302_s29, %s302_s29 }
  0x7a   : > { %p3094_p5 = scmp.ne.s32.totalorder %s302_s29, %s3093_s22  ;;  %p3102_p4 = scmp.lt.s32.totalorder %s3093_s22, %s3093_s22 }
  0x7c   : > { %p3096_p7 = pnand %p3094_p5, %p3498_p8  ;;  %p3103_p11 = por %p3102_p4, %p3101_p10 }
  0x7e   : > { %p3097_p9 = pneg %p3096_p7 }
  0x80   : > { %p3104_p12 = pnand %p3103_p11, %p3097_p9 }
  0x82   : > { %3107 = shalt.err (!%p3104_p12)
}
  0x83   : > { %2737 = dma.hbm_to_vmem [thread:$0]  (!%p3482_p6), %s4686_s2, 32, %s302_s29, [#allocation10]  }
  0x84   : > { %s3343_s18 = smov [#allocation14]   ;;  %s3344_s28 = smov [#allocation17]  }
  0x85   : > { %s323_s10 = sshll.u32 %s3343_s18, 4  ;;  %s345_s30 = sshll.u32 %s3344_s28, 4  ;;  %s324_s10 = int_to_ptr.vmem [resolvable:$true] %s323_s10  ;;  %s346_s30 = int_to_ptr.vmem [resolvable:$true] %s345_s30 }
  0x86   : > { %s3108_s21 = scalar_lea.hbm %s4688_s4, 32 }
  0x87   : > { %p3109_p13 = scmp.ne.s32.totalorder %s4688_s4, %s3108_s21  ;;  %p3115_p3 = scmp.lt.u32.totalorder %s3108_s21, %s4688_s4 }
  0x89   : > { %p3111_p0 = pnand %p3109_p13, %p3498_p8 }
  0x8b   : > { %p3112_p1 = pneg %p3111_p0 }
  0x8d   : > { %p3117_p2 = pnand %p3115_p3, %p3112_p1 }
  0x8f   : > { %3120 = shalt.err (!%p3117_p2)
}
  0x90   : > { %s3121_s29 = scalar_lea.vmem %s324_s10, 32  ;;  %p3129_p10 = scmp.lt.s32.totalorder %s324_s10, %s324_s10 }
  0x91   : > { %p3122_p5 = scmp.ne.s32.totalorder %s324_s10, %s3121_s29  ;;  %p3130_p4 = scmp.lt.s32.totalorder %s3121_s29, %s3121_s29 }
  0x93   : > { %p3124_p7 = pnand %p3122_p5, %p3498_p8  ;;  %p3131_p11 = por %p3130_p4, %p3129_p10 }
  0x95   : > { %p3125_p9 = pneg %p3124_p7 }
  0x97   : > { %p3132_p12 = pnand %p3131_p11, %p3125_p9 }
  0x99   : > { %3135 = shalt.err (!%p3132_p12)
}
  0x9a   : > { %2743 = dma.hbm_to_vmem [thread:$0]  (!%p3482_p6), %s4688_s4, 32, %s324_s10, [#allocation13]  }
  0x9b   : > { %s3136_s12 = scalar_lea.hbm %s4690_s6, 64 }
  0x9c   : > { %p3137_p13 = scmp.ne.s32.totalorder %s4690_s6, %s3136_s12  ;;  %p3143_p3 = scmp.lt.u32.totalorder %s3136_s12, %s4690_s6 }
  0x9e   : > { %p3139_p0 = pnand %p3137_p13, %p3498_p8 }
  0xa0   : > { %p3140_p1 = pneg %p3139_p0 }
  0xa2   : > { %p3145_p2 = pnand %p3143_p3, %p3140_p1 }
  0xa4   : > { %3148 = shalt.err (!%p3145_p2)
}
  0xa5   : > { %s3149_s27 = scalar_lea.vmem %s346_s30, 64  ;;  %p3157_p10 = scmp.lt.s32.totalorder %s346_s30, %s346_s30 }
  0xa6   : > { %p3150_p5 = scmp.ne.s32.totalorder %s346_s30, %s3149_s27  ;;  %p3158_p4 = scmp.lt.s32.totalorder %s3149_s27, %s3149_s27 }
  0xa8   : > { %p3152_p7 = pnand %p3150_p5, %p3498_p8  ;;  %p3159_p11 = por %p3158_p4, %p3157_p10 }
  0xaa   : > { %p3153_p9 = pneg %p3152_p7 }
  0xac   : > { %p3160_p12 = pnand %p3159_p11, %p3153_p9 }
  0xae   : > { %3163 = shalt.err (!%p3160_p12)
}
  0xaf   : > { %2749 = dma.hbm_to_vmem [thread:$0]  (!%p3482_p6), %s4690_s6, 64, %s346_s30, [#allocation16]  }
  0xb0   : > { %s3345_s24 = smov [#allocation20]   ;;  %s3346_s28 = smov [#allocation21]  }
  0xb1   : > { %s367_s18 = sshll.u32 %s3345_s24, 4  ;;  %s378_s11 = sshll.u32 %s3346_s28, 4  ;;  %s368_s18 = int_to_ptr.vmem [resolvable:$true] %s367_s18  ;;  %s379_s11 = int_to_ptr.vmem [resolvable:$true] %s378_s11 }
  0xb2   : > { %s3164_s23 = scalar_lea.hbm %s4692_s8, 64 }
  0xb3   : > { %p3165_p13 = scmp.ne.s32.totalorder %s4692_s8, %s3164_s23  ;;  %p3171_p3 = scmp.lt.u32.totalorder %s3164_s23, %s4692_s8 }
  0xb5   : > { %p3167_p0 = pnand %p3165_p13, %p3498_p8 }
  0xb7   : > { %p3168_p1 = pneg %p3167_p0 }
  0xb9   : > { %p3173_p2 = pnand %p3171_p3, %p3168_p1 }
  0xbb   : > { %3176 = shalt.err (!%p3173_p2)
}
  0xbc   : > { %s3177_s30 = scalar_lea.vmem %s368_s18, 64  ;;  %p3185_p10 = scmp.lt.s32.totalorder %s368_s18, %s368_s18 }
  0xbd   : > { %p3178_p5 = scmp.ne.s32.totalorder %s368_s18, %s3177_s30  ;;  %p3186_p4 = scmp.lt.s32.totalorder %s3177_s30, %s3177_s30 }
  0xbf   : > { %p3180_p7 = pnand %p3178_p5, %p3498_p8  ;;  %p3187_p11 = por %p3186_p4, %p3185_p10 }
  0xc1   : > { %p3181_p9 = pneg %p3180_p7 }
  0xc3   : > { %p3188_p12 = pnand %p3187_p11, %p3181_p9 }
  0xc5   : > { %3191 = shalt.err (!%p3188_p12)
}
  0xc6   : > { %2755 = dma.hbm_to_vmem [thread:$0]  (!%p3482_p6), %s4692_s8, 64, %s368_s18, [#allocation19]  }
  0xc7   : > { %s3192_s21 = scalar_lea.hbm %s4693_s9, 384 }
  0xc8   : > { %p3193_p13 = scmp.ne.s32.totalorder %s4693_s9, %s3192_s21  ;;  %p3199_p3 = scmp.lt.u32.totalorder %s3192_s21, %s4693_s9 }
  0xca   : > { %p3195_p0 = pnand %p3193_p13, %p3498_p8 }
  0xcc   : > { %p3196_p1 = pneg %p3195_p0 }
  0xce   : > { %p3201_p2 = pnand %p3199_p3, %p3196_p1 }
  0xd0   : > { %3204 = shalt.err (!%p3201_p2)
}
  0xd1   : > { %s3205_s10 = scalar_lea.vmem %s379_s11, 384  ;;  %p3213_p10 = scmp.lt.s32.totalorder %s379_s11, %s379_s11 }
  0xd2   : > { %p3206_p5 = scmp.ne.s32.totalorder %s379_s11, %s3205_s10  ;;  %p3214_p4 = scmp.lt.s32.totalorder %s3205_s10, %s3205_s10 }
  0xd4   : > { %p3208_p7 = pnand %p3206_p5, %p3498_p8  ;;  %p3215_p11 = por %p3214_p4, %p3213_p10 }
  0xd6   : > { %p3209_p9 = pneg %p3208_p7 }
  0xd8   : > { %p3216_p12 = pnand %p3215_p11, %p3209_p9 }
  0xda   : > { %3219 = shalt.err (!%p3216_p12)
}
  0xdb   : > { %2758 = dma.hbm_to_vmem [thread:$0]  (!%p3482_p6), %s4693_s9, 384, %s379_s11, [#allocation22]  }
  0xdc   : > { %s2645_s17 = sadd.s32 4294967294, %s3336_s16   ;;  %s3676_s25 = sadd.s32 1, %s3336_s16  }
  0xdd   : > { %s38_s29 = sadd.s32 1, %s3332_s15  ;;  %s35_s24 = ssub.s32 %s3336_s16, %s3676_s25 }
  0xde   : > { %p45_p8 = scmp.ne.s32.totalorder %s3332_s15, %s3328_s14  ;;  %p36_p13 = scmp.eq.s32.totalorder %s35_s24, 0 }
  0xdf   : > { %p46_p0 = scmp.eq.s32.totalorder %s3336_s16, 0  ;;  %p51_p1 = scmp.ne.s32.totalorder %s3328_s14, %s3324_s13 }
  0xe0   : > { %p264_p3 = scmp.eq.s32.totalorder %s3464_s19, 1  ;;  %p4743_p5 = scmp.eq.s32.totalorder %s3464_s19, 0 }
  0xe1   : > { %s3688_s28 = scalar_select %p36_p13, %s3332_s15, %s38_s29  }
  0xe2   : > { %p47_p2 = por %p46_p0, %p45_p8  ;;  %p3692_p7 = por %p4743_p5, %p51_p1 }
  0xe3   : > { %p3696_p6 = por %p264_p3, %p45_p8  ;;  %p270_p9 = scmp.eq.s32.totalorder %s2645_s17, 1 }
  0xe4   : > { %p2776_p10 = scmp.lt.s32.totalorder %s3336_s16, 2  ;;  %s389_s21 = sand.u32 1, %s3332_s15  }
  0xe5   : > { %s4745_s11 = scalar_select %p3696_p6, 1, 0 }
  0xe6   : > { %p3702_p4 = por %p270_p9, %p51_p1  ;;  %s2657_s26 = sshll.u32 %s389_s21, 4 }
  0xe7   : > { %s2689_s22 = sshll.u32 %s3336_s16, 8  ;;  %s393_s30 = scalar_lea.vmem [#allocation6], %s2657_s26 }
  0xe8   : > { %s4746_s23 = scalar_select %p3702_p4, 1, 0 }
  0xe9   : > { %s3710_s18 = scalar_lea.hbm %s4684_s0, %s2689_s22  ;;  %s401_s29 = sshll.u32 %s393_s30, 4  ;;  %s3716_s29 = int_to_ptr.vmem [resolvable:$true] %s401_s29 }
  0xea   : > { %p3712_p11 = pnand %p2776_p10, %p47_p2  ;;  %s390_s24 = scalar_lea.sflag [#allocation7], %s389_s21 }
  0xeb   : > { %s3220_s1 = scalar_lea.hbm %s3710_s18, 256  ;;  %s3225_s27 = scalar_lea.hbm %s4684_s0, 512 }
  0xec   : > { %p3221_p12 = scmp.ne.s32.totalorder %s3710_s18, %s3220_s1  ;;  %p3222_p8 = pneg %p3712_p11 }
  0xed   : > { %p3226_p1 = scmp.lt.u32.totalorder %s3710_s18, %s4684_s0  ;;  %p3227_p3 = scmp.lt.u32.totalorder %s3225_s27, %s3220_s1 }
  0xee   : > { %p3223_p13 = pnand %p3222_p8, %p3221_p12  ;;  %p3229_p5 = scmp.lt.u32.totalorder %s3220_s1, %s3710_s18 }
  0xef   : > { %p3228_p2 = por %p3227_p3, %p3226_p1 }
  0xf0   : > { %p3224_p0 = pneg %p3223_p13 }
  0xf1   : > { %p3230_p9 = por %p3229_p5, %p3228_p2 }
  0xf3   : > { %p3231_p10 = pnand %p3230_p9, %p3224_p0 }
  0xf5   : > { %3234 = shalt.err (!%p3231_p10)
}
  0xf6   : > { %s3235_s21 = scalar_lea.vmem %s3716_s29, 256  ;;  %s3347_s22 = smov [#allocation6]  }
  0xf7   : > { %p3236_p12 = scmp.ne.s32.totalorder %s3716_s29, %s3235_s21  ;;  %s3240_s26 = sshll.u32 %s3347_s22, 4  ;;  %s3241_s26 = int_to_ptr.vmem [resolvable:$false] %s3240_s26 }
  0xf8   : > { %s3242_s10 = scalar_lea.vmem %s3241_s26, 512  ;;  %p3243_p6 = scmp.lt.s32.totalorder %s3716_s29, %s3241_s26 }
  0xf9   : > { %p3238_p13 = pnand %p3236_p12, %p3222_p8  ;;  %p3244_p1 = scmp.lt.s32.totalorder %s3242_s10, %s3235_s21 }
  0xfb   : > { %p3239_p4 = pneg %p3238_p13  ;;  %p3245_p3 = por %p3244_p1, %p3243_p6 }
  0xfd   : > { %p3246_p2 = pnand %p3245_p3, %p3239_p4 }
  0xff   : > { %3249 = shalt.err (!%p3246_p2)
}
 0x100   : > { %2762 = dma.hbm_to_vmem [thread:$0]  (!%p3712_p11), %s3710_s18, 256, %s3716_s29, %s390_s24  }
 0x101   : > { %p4748_p0 = scmp.ne.s32.totalorder %s4739_s20, 0 }
 0x103   : > { %410 = sbr.rel (%p4748_p0) target bundleno = 1489 (0x5d1), region = 60 }
 0x10a   : > { %s3746_s1 = sand.u32 1, %s3328_s14  }
 0x10b   : > { %s2661_s27 = sshll.u32 %s3746_s1, 4  ;;  %s413_s30 = scalar_lea.sflag [#allocation7], %s3746_s1 }
 0x10c   : > { %s3752_s21 = scalar_lea.vmem [#allocation6], %s2661_s27 }
 0x10d   : > { %3295 = dma.done.wait (%p3692_p7), %s413_s30, 256  }
 0x10e   : > { %3297 = vsyncadd (%p3692_p7), %s413_s30, 4294967040  ;;  %p4749_p6 = scmp.eq.s32.totalorder %s3464_s19, 0 }
 0x110   : > { %3299 = dma.done.wait (%p4749_p6), [#allocation10], 64   ;;  %p4750_p4 = pmov %p4749_p6 }
 0x112   : > { %3301 = vsyncadd (%p4750_p4), [#allocation10], 4294967232  ;;  %p4751_p11 = pmov %p4750_p4 }
 0x113   : > { %p4752_p8 = pmov %p4750_p4 }
 0x114   : > { %3303 = dma.done.wait (%p4751_p11), [#allocation13], 64  }
 0x115   : > { %3305 = vsyncadd (%p4752_p8), [#allocation13], 4294967232  ;;  %p4753_p5 = pmov %p4750_p4 }
 0x116   : > { %p4754_p9 = pmov %p4750_p4 }
 0x117   : > { %3307 = dma.done.wait (%p4753_p5), [#allocation16], 128  }
 0x118   : > { %3309 = vsyncadd (%p4754_p9), [#allocation16], 4294967168  ;;  %p4755_p7 = pmov %p4750_p4 }
 0x119   : > { %p4756_p10 = pmov %p4750_p4 }
 0x11a   : > { %3311 = dma.done.wait (%p4755_p7), [#allocation19], 128  }
 0x11b   : > { %3313 = vsyncadd (%p4756_p10), [#allocation19], 4294967168  ;;  %p4757_p12 = pmov %p4750_p4 }
 0x11c   : > { %p4758_p13 = pmov %p4750_p4 }
 0x11d   : > { %3315 = dma.done.wait (%p4757_p12), [#allocation22], 384  }
 0x11e   : > { %3317 = vsyncadd (%p4758_p13), [#allocation22], 4294966912  ;;  %v4725_v0 = vmov 2   ;;  %v4726_v1 = vmov 0   ;;  %v497_v2 = vlaneseq  ;;  %v489_v3 = vld [vmem:[#allocation9] sm:$0x3] }
 0x11f   : > { %2869 = vset.pattern.permute.xlu1 %v4725_v0  ;;  %2867 = vset.pattern.permute.xlu0 %v4726_v1  ;;  %v4727_v5 = vmov 3   ;;  %v4721_v6 = vmov 1   ;;  %v3352_v9 = vmov 1983009808   ;;  %v4706_v16 = vmov 4   ;;  %s3357_s20 = smov 1  }
 0x120   : > { %533 = vperm.xlu1 %2869, %v489_v3   ;;  %493 = vperm.xlu0 %2867, %v489_v3   ;;  %v498_v4 = vshrl.u32 %v497_v2, 7  ;;  %v688_v10 = vunpack.c.l.s4 %v3352_v9  ;;  %v880_v11 = vld [vmem:[#allocation21 + $0x1] ss:$8 sm:$0x7]  ;;  %v3354_v17 = vmov 5   ;;  %v3355_v23 = vmov 6  }
 0x121   : > { %v656_v18 = vld [vmem:[#allocation11] sm:$0x3]  ;;  %v1389_v22 = vld [vmem:[#allocation21 + $0x4] ss:$8 sm:$0x7]  ;;  %v4718_v28 = vmov 7  }
 0x122   : > { %v3782_v7 = vsub.s32 0, %v498_v4  ;;  %v3784_v8 = vsub.s32 1, %v498_v4  ;;  %v689_v12 = vunpack.c.0.s8 %v688_v10  ;;  %v3786_v13 = vsub.s32 2, %v498_v4  ;;  %v760_v34 = vld [vmem:[#allocation12] sm:$0x3]  ;;  %s3358_s12 = smov 4  }
 0x123   : > { %v4723_v36 = vmov 15   ;;  %v826_v37 = vld [vmem:[#allocation12] sm:$0x3]  ;;  %v4722_v39 = vmov 20   ;;  %v4720_v42 = vmov 11   ;;  %v4719_v47 = vmov 16  }
 0x124   : > { %2870 = vset.pattern.permute.xlu1 %v4727_v5  ;;  %2868 = vset.pattern.permute.xlu0 %v4721_v6  ;;  %4759 = vst [vmem:[#allocation31_spill] sm:$0xff] %v3782_v7  ;;  %4760 = vst [vmem:[#allocation32_spill] sm:$0xff] %v3784_v8  ;;  %v885_v14 = vrot.slane %v880_v11, %v3782_v7  ;;  %v889_v15 = vrot.slane %v880_v11, %v3784_v8  ;;  %v852_v38 = vld [vmem:[#allocation12] sm:$0x3]  ;;  %s3363_s18 = smov 3   ;;  %v4724_v54 = vmov 10  }
 0x125   : > { %554 = vperm.xlu1 %2870, %v489_v3   ;;  %512 = vperm.xlu0 %2868, %v489_v3   ;;  %4761 = vst [vmem:[#allocation33_spill] sm:$0xff] %v3786_v13  ;;  %v3792_v19 = vsub.s32 %v689_v12, %v498_v4  ;;  %v893_v20 = vrot.slane %v880_v11, %v3786_v13  ;;  %v947_v40 = vld [vmem:[#allocation12] sm:$0x3]  ;;  %v1207_v43 = vld [vmem:[#allocation21 + $0x3] ss:$8 sm:$0x7] }
 0x126   : > { %v894_v21 = vcombine.low %v885_v14, %v889_v15  ;;  %v1394_v26 = vrot.slane %v1389_v22, %v3782_v7  ;;  %v1398_v27 = vrot.slane %v1389_v22, %v3784_v8  ;;  %v1402_v30 = vrot.slane %v1389_v22, %v3786_v13  ;;  %v986_v41 = vld [vmem:[#allocation12] sm:$0x3]  ;;  %v1569_v2 = vld [vmem:[#allocation14] sm:$0x3]  ;;  %s3369_s29 = smov 34   ;;  %s4701_s17 = smov 126  }
 0x127   : > { %v908_v25 = vrot.slane %v893_v20, %v3792_v19  ;;  %v1212_v44 = vrot.slane %v1207_v43, %v3782_v7  ;;  %v1216_v45 = vrot.slane %v1207_v43, %v3784_v8  ;;  %v1220_v46 = vrot.slane %v1207_v43, %v3786_v13  ;;  %v774_v52 = vld [vmem:[#allocation12] sm:$0x3]  ;;  %v490_v4 = vld [vmem:[%s3752_s21] ss:$8 sm:$0x3]  ;;  %s4699_s24 = smov 127  }
 0x128   : > { %v901_v24 = vrot.slane %v894_v21, %v3792_v19  ;;  %v1403_v31 = vcombine.low %v1394_v26, %v1398_v27  ;;  %v1417_v33 = vrot.slane %v1402_v30, %v3792_v19  ;;  %v800_v53 = vld [vmem:[#allocation12] sm:$0x3]  ;;  %v4710_v58 = vmov 17   ;;  %v2672_v9 = vld [vmem:[%s3752_s21 + $0x1] ss:$8 sm:$0x3] }
 0x129   : > { %2871 = vset.pattern.permute.xlu1 %v4706_v16  ;;  %2872 = vset.pattern.permute.xlu0 %v3354_v17  ;;  %v1221_v48 = vcombine.low %v1212_v44, %v1216_v45  ;;  %v1235_v49 = vrot.slane %v1220_v46, %v3792_v19  ;;  %v961_v55 = vld [vmem:[#allocation12] sm:$0x3]  ;;  %v4707_v61 = vmov 18   ;;  %v4715_v63 = vmov 19   ;;  %s3381_s22 = smov 124   ;;  %s3382_s26 = smov 125  }
 0x12a   : > { %575 = vperm.xlu1 %2871, %v489_v3   ;;  %596 = vperm.xlu0 %2872, %v489_v3   ;;  %v909_v29 = vcombine.low %v901_v24, %v908_v25  ;;  %v1410_v32 = vrot.slane %v1403_v31, %v3792_v19  ;;  %v1105_v56 = vld [vmem:[#allocation12] sm:$0x3]  ;;  %vm683_vm0 = vcmask 271360   ;;  %vm685_vm1 = vcmask 550160   ;;  %s3383_s10 = smov 80   ;;  %s3384_s30 = smov 64  }
 0x12b   : > { %v1228_v50 = vrot.slane %v1221_v48, %v3792_v19  ;;  %v1155_v57 = vld [vmem:[#allocation12] sm:$0x3]  ;;  %v2673_v12 = vld [vmem:[%s3752_s21 + $0x2] ss:$8 sm:$0x3]  ;;  %v500_v14 = vrot.slane %v490_v4, %v3782_v7  ;;  %v504_v15 = vrot.slane %v490_v4, %v3784_v8  ;;  %v519_v20 = vrot.slane %v2672_v9, %v3782_v7  ;;  %p4798_p3 = scmp.ne.s32.totalorder %s4745_s11, 0 }
 0x12c   : > { %v1418_v35 = vcombine.low %v1410_v32, %v1417_v33  ;;  %v1273_v59 = vld [vmem:[#allocation12] sm:$0x3]  ;;  %v523_v21 = vrot.slane %v2672_v9, %v3784_v8  ;;  %v540_v22 = vrot.slane %v2673_v12, %v3782_v7  ;;  %v544_v24 = vrot.slane %v2673_v12, %v3784_v8 }
 0x12d   : > { %v1236_v51 = vcombine.low %v1228_v50, %v1235_v49  ;;  %v1337_v60 = vld [vmem:[#allocation12] sm:$0x3]  ;;  %vm700_vm2 = vcmask 1041680   ;;  %vm701_vm3 = vcmask 1043458   ;;  %vm703_vm5 = vcmask 275460  }
 0x12e   : > { %2873 = vset.pattern.permute.xlu1 %v3355_v23  ;;  %2875 = vset.pattern.permute.xlu0 %v4726_v1  ;;  %v1519_v62 = vld [vmem:[#allocation12] sm:$0x3]  ;;  %vm702_vm4 = vmor %vm701_vm3, %vm700_vm2  ;;  %vm697_vm6 = vcmask 277504   ;;  %vm913_vm8 = vcmask 7168   ;;  %vm1422_vm9 = vcmask 31744   ;;  %vm1240_vm10 = vcmask 23552  }
 0x12f   : > { %617 = vperm.xlu1 %2873, %v489_v3   ;;  %659 = vperm.xlu0 %2875, %v656_v18   ;;  %v2674_v18 = vld [vmem:[%s3752_s21 + $0x3] ss:$8 sm:$0x3]  ;;  %v2675_v25 = vld [vmem:[%s3752_s21 + $0x4] ss:$8 sm:$0x3]  ;;  %vm704_vm7 = vmor %vm703_vm5, %vm702_vm4 }
 0x130   : > { %v561_v26 = vrot.slane %v2674_v18, %v3782_v7  ;;  %v565_v27 = vrot.slane %v2674_v18, %v3784_v8  ;;  %vm758_vm11 = vcmask 517120   ;;  %vm939_vm12 = vcmask 1043456  }
 0x131   : > { %vm941_vm13 = vcmask 1039360   ;;  %vm4736_vm14 = vcmask 1031168   ;;  %vm4735_vm15 = vcmask 1022976   ;;  %vm817_vm2 = vcmask 785408  }
 0x132   : > { %vm843_vm3 = vcmask 654336   ;;  %vm869_vm4 = vcmask 523264   ;;  %vm1694_vm5 = vcmask 273408  }
 0x133   : > { %2874 = vset.pattern.permute.xlu1 %v4718_v28  ;;  %2877 = vset.pattern.permute.xlu0 %v3354_v17 }
 0x134   : > { %638 = vperm.xlu1 %2874, %v489_v3   ;;  %1237 = vrot.lane.b32.xlu0 %v1236_v51, %s3363_s18  ;;  %v4713_v3 = vmov 0.0  }
 0x135   : > { %684 = vst.msk [vmem:[#allocation3] sm:$0x3] %vm683_vm0, %v4713_v3  ;;  %vm1449_vm0 = vcmask 1014784  }
 0x136   : > { %686 = vst.msk [vmem:[#allocation3 + $0x4] sm:$0x3] %vm685_vm1, %v4713_v3  ;;  %vm791_vm1 = vcmask 916480  }
 0x138   : > { %910 = vrot.lane.b32.xlu1 %v909_v29, %s3357_s20  ;;  %779 = vperm.xlu0 %2877, %v774_v52  }
 0x139   : > { %2876 = vset.pattern.permute.xlu1 %v4726_v1 }
 0x13c   : > { %764 = vperm.xlu1 %2876, %v760_v34   ;;  %2878 = vset.pattern.permute.xlu0 %v4724_v54 }
 0x13d   : > { %805 = vperm.xlu0 %2878, %v800_v53  }
 0x140   : > { %1419 = vrot.lane.b32.xlu1 %v1418_v35, %s3358_s12  ;;  %v2676_v35 = vld [vmem:[%s3752_s21 + $0x5] ss:$8 sm:$0x3] }
 0x141   : > { %2879 = vset.pattern.permute.xlu1 %v4723_v36  ;;  %2882 = vset.pattern.permute.xlu0 %v3355_v23  ;;  %v603_v45 = vrot.slane %v2676_v35, %v3782_v7  ;;  %v607_v46 = vrot.slane %v2676_v35, %v3784_v8 }
 0x142   : > { %966 = vperm.xlu0 %2882, %v961_v55   ;;  %v2677_v55 = vld [vmem:[%s3752_s21 + $0x6] ss:$8 sm:$0x3] }
 0x143   : > { %v624_v4 = vrot.slane %v2677_v55, %v3782_v7  ;;  %v628_v9 = vrot.slane %v2677_v55, %v3784_v8  ;;  %v4712_v55 = vmov 21  }
 0x144   : > { %831 = vperm.xlu1 %2879, %v826_v37   ;;  %v582_v37 = vrot.slane %v2675_v25, %v3782_v7 }
 0x146   : > { %2887 = vset.pattern.permute.xlu0 %v4718_v28 }
 0x147   : > { %1110 = vperm.xlu0 %2887, %v1105_v56  }
 0x148   : > { %2880 = vset.pattern.permute.xlu1 %v4722_v39 }
 0x149   : > { %857 = vperm.xlu1 %2880, %v852_v38   ;;  %v586_v38 = vrot.slane %v2675_v25, %v3784_v8 }
 0x14b   : > { %2889 = vset.pattern.permute.xlu0 %v4710_v58 }
 0x14c   : > { %1160 = vperm.xlu0 %2889, %v1155_v57  }
 0x14d   : > { %2881 = vset.pattern.permute.xlu1 %v4721_v6 }
 0x14e   : > { %951 = vperm.xlu1 %2881, %v947_v40  }
 0x150   : > { %2891 = vset.pattern.permute.xlu0 %v4727_v5 }
 0x151   : > { %1277 = vperm.xlu0 %2891, %v1273_v59  }
 0x152   : > { %2883 = vset.pattern.permute.xlu1 %v4720_v42 }
 0x153   : > { %991 = vperm.xlu1 %2883, %v986_v41  }
 0x155   : > { %2894 = vset.pattern.permute.xlu0 %v4707_v61 }
 0x156   : > { %1342 = vperm.xlu0 %2894, %v1337_v60  }
 0x157   : > { %2884 = vset.pattern.permute.xlu1 %v4719_v47 }
 0x15a   : > { %2899 = vset.pattern.permute.xlu0 %v4715_v63 }
 0x15b   : > { %1524 = vperm.xlu0 %2899, %v1519_v62  }
 0x15f   : > { %2901 = vset.pattern.permute.xlu0 %v4726_v1 }
 0x160   : > { %1572 = vperm.xlu0 %2901, %v1569_v2  }
 0x164   : > { %2903 = vset.pattern.permute.xlu0 %v4721_v6 }
 0x19f   : > { %v534_v10 = vpop.permute.xlu1 %533  ;;  %v494_v11 = vpop.permute.xlu0 %493 }
 0x1a0   : > { %v507_v31 = vmul.f32 %v500_v14, %v494_v11  ;;  %v508_v32 = vmul.f32 %v504_v15, %v494_v11  ;;  %v547_v40 = vmul.f32 %v540_v22, %v534_v10  ;;  %v548_v41 = vmul.f32 %v544_v24, %v534_v10  ;;  %v2678_v10 = vld [vmem:[%s3752_s21 + $0x7] ss:$8 sm:$0x3] }
 0x1a1   : > { %v645_v15 = vrot.slane %v2678_v10, %v3782_v7  ;;  %v649_v18 = vrot.slane %v2678_v10, %v3784_v8  ;;  %v4717_v10 = vmov 13  }
 0x1a4   : > { %v555_v29 = vpop.permute.xlu1 %554  ;;  %v513_v30 = vpop.permute.xlu0 %512 }
 0x1a5   : > { %v526_v33 = vmul.f32 %v519_v20, %v513_v30  ;;  %v527_v34 = vmul.f32 %v523_v21, %v513_v30  ;;  %v568_v48 = vmul.f32 %v561_v26, %v555_v29  ;;  %v569_v49 = vmul.f32 %v565_v27, %v555_v29 }
 0x1a7   : > { %v528_v43 = vadd.f32 %v526_v33, %v507_v31  ;;  %v529_v44 = vadd.f32 %v527_v34, %v508_v32 }
 0x1a9   : > { %v549_v50 = vadd.f32 %v547_v40, %v528_v43  ;;  %v550_v51 = vadd.f32 %v548_v41, %v529_v44  ;;  %v576_v52 = vpop.permute.xlu1 %575  ;;  %v597_v53 = vpop.permute.xlu0 %596 }
 0x1aa   : > { %v589_v56 = vmul.f32 %v582_v37, %v576_v52  ;;  %v590_v57 = vmul.f32 %v586_v38, %v576_v52  ;;  %v610_v62 = vmul.f32 %v603_v45, %v597_v53  ;;  %v611_v2 = vmul.f32 %v607_v46, %v597_v53  ;;  %v1011_v52 = vld [vmem:[#allocation12] sm:$0x3] }
 0x1ab   : > { %v570_v59 = vadd.f32 %v568_v48, %v549_v50  ;;  %v571_v60 = vadd.f32 %v569_v49, %v550_v51  ;;  %v1036_v53 = vld [vmem:[#allocation12] sm:$0x3] }
 0x1ad   : > { %v591_v11 = vadd.f32 %v589_v56, %v570_v59  ;;  %v592_v12 = vadd.f32 %v590_v57, %v571_v60  ;;  %v1091_v56 = vld [vmem:[#allocation12] sm:$0x3]  ;;  %v4711_v59 = vmov 12  }
 0x1ae   : > { %v618_v14 = vpop.permute.xlu1 %617  ;;  %v660_v31 = vpop.permute.xlu0 %659  ;;  %v1130_v57 = vld [vmem:[#allocation12] sm:$0x3] }
 0x1af   : > { %v612_v20 = vadd.f32 %v610_v62, %v591_v11  ;;  %v613_v21 = vadd.f32 %v611_v2, %v592_v12  ;;  %v631_v22 = vmul.f32 %v624_v4, %v618_v14  ;;  %v632_v24 = vmul.f32 %v628_v9, %v618_v14  ;;  %v1180_v60 = vld [vmem:[#allocation12] sm:$0x3] }
 0x1b0   : > { %v4709_v62 = vmov 22   ;;  %v1287_v2 = vld [vmem:[#allocation12] sm:$0x3]  ;;  %v4708_v4 = vmov 8   ;;  %v4716_v12 = vmov 23  }
 0x1b1   : > { %v633_v26 = vadd.f32 %v631_v22, %v612_v20  ;;  %v634_v27 = vadd.f32 %v632_v24, %v613_v21  ;;  %v1312_v9 = vld [vmem:[#allocation12] sm:$0x3]  ;;  %v4704_v21 = vmov 14   ;;  %v4703_v24 = vmov 24  }
 0x1b2   : > { %v1362_v11 = vld [vmem:[#allocation12] sm:$0x3] }
 0x1b3   : > { %v639_v25 = vpop.permute.xlu1 %638  ;;  %v1455_v14 = vld [vmem:[#allocation12] sm:$0x3] }
 0x1b4   : > { %v652_v29 = vmul.f32 %v645_v15, %v639_v25  ;;  %v653_v30 = vmul.f32 %v649_v18, %v639_v25  ;;  %v1469_v15 = vld [vmem:[#allocation12] sm:$0x3]  ;;  %v4705_v18 = vmov 9  }
 0x1b5   : > { %v1494_v20 = vld [vmem:[#allocation12] sm:$0x3] }
 0x1b6   : > { %v654_v32 = vadd.f32 %v652_v29, %v633_v26  ;;  %v655_v33 = vadd.f32 %v653_v30, %v634_v27  ;;  %v1544_v22 = vld [vmem:[#allocation12] sm:$0x3] }
 0x1b7   : > { %v911_v25 = vpop.permute.xlu1 %910 }
 0x1b8   : > { %v662_v34 = vadd.f32 %v660_v31, %v654_v32  ;;  %v663_v35 = vadd.f32 %v660_v31, %v655_v33  ;;  %v707_v32 = vld [vmem:[#allocation21] ss:$8 sm:$0x7] }
 0x1ba   : > { %v2679_v37 = vmul.f32 -1.442695, %v662_v34  ;;  %v2680_v38 = vmul.f32 -1.442695, %v663_v35 }
 0x1bb   : > { %v3869_v26 = vpop.permute.xlu1 %764 }
 0x1bc   : > { %2952 = vpow2.f32 %v2679_v37  ;;  %v720_v37 = vrot.slane %v707_v32, %v3786_v13 }
 0x1bd   : > { %2954 = vpow2.f32 %v2680_v38 }
 0x1bf   : > { %v1420_v27 = vpop.permute.xlu1 %1419 }
 0x1c3   : > { %v3871_v29 = vpop.permute.xlu1 %831 }
 0x1c6   : > { %v2953_v40 = vpop.eup %2952 }
 0x1c7   : > { %v2955_v41 = vpop.eup %2954  ;;  %v670_v43 = vadd.f32 1.0, %v2953_v40 }
 0x1c8   : > { %v671_v44 = vadd.f32 1.0, %v2955_v41  ;;  %v3873_v30 = vpop.permute.xlu1 %857 }
 0x1c9   : > { %2956 = vrcp.f32 %v670_v43 }
 0x1ca   : > { %2958 = vrcp.f32 %v671_v44 }
 0x1cd   : > { %v3875_v31 = vpop.permute.xlu1 %951 }
 0x1d2   : > { %v3877_v33 = vpop.permute.xlu1 %991 }
 0x1d3   : > { %v2957_v45 = vpop.eup %2956 }
 0x1d4   : > { %v2959_v46 = vpop.eup %2958  ;;  %v676_v48 = vmul.f32 %v2957_v45, %v662_v34  ;;  %v712_v34 = vrot.slane %v707_v32, %v3782_v7  ;;  %v735_v45 = vrot.slane %v720_v37, %v3792_v19 }
 0x1d5   : > { %v677_v49 = vmul.f32 %v2959_v46, %v663_v35  ;;  %v716_v35 = vrot.slane %v707_v32, %v3784_v8  ;;  %v912_v46 = vrot.slane %v911_v25, 6 }
 0x1d7   : > { %v680_v50 = vcombine.low %v676_v48, %v677_v49  ;;  %v721_v38 = vcombine.low %v712_v34, %v716_v35  ;;  %v1421_v48 = vrot.slane %v1420_v27, 6 }
 0x1d9   : > { %v693_v51 = vrot.slane %v680_v50, %v3792_v19  ;;  %682 = vst [vmem:[#allocation2] sm:$0x33] %v680_v50  ;;  %v728_v44 = vrot.slane %v721_v38, %v3792_v19  ;;  %v1238_v50 = vpop.permute.xlu0 %1237 }
 0x1db   : > { %694 = vrot.lane.b32.xlu1 %v693_v51, %s3369_s29  ;;  %v736_v49 = vcombine.low %v728_v44, %v735_v45  ;;  %v914_v51 = vsel %vm913_vm8, %v912_v46, %v911_v25 }
 0x1df   : > { %1016 = vperm.xlu1 %2884, %v1011_v52  }
 0x1e3   : > { %2885 = vset.pattern.permute.xlu1 %v4712_v55 }
 0x1e4   : > { %1041 = vperm.xlu1 %2885, %v1036_v53  }
 0x1e8   : > { %2886 = vset.pattern.permute.xlu1 %v4725_v0 }
 0x1e9   : > { %1095 = vperm.xlu1 %2886, %v1091_v56   ;;  %v1423_v56 = vsel %vm1422_vm9, %v1421_v48, %v1420_v27 }
 0x1ed   : > { %2888 = vset.pattern.permute.xlu1 %v4711_v59 }
 0x1ee   : > { %1135 = vperm.xlu1 %2888, %v1130_v57  }
 0x1f2   : > { %2890 = vset.pattern.permute.xlu1 %v4709_v62 }
 0x1f3   : > { %1185 = vperm.xlu1 %2890, %v1180_v60   ;;  %v1239_v60 = vrot.slane %v1238_v50, 6 }
 0x1f5   : > { %v1241_v35 = vsel %vm1240_vm10, %v1239_v60, %v1238_v50 }
 0x1f7   : > { %2892 = vset.pattern.permute.xlu1 %v4708_v4 }
 0x1f8   : > { %1292 = vperm.xlu1 %2892, %v1287_v2  }
 0x1fc   : > { %2893 = vset.pattern.permute.xlu1 %v4717_v10 }
 0x1fd   : > { %1317 = vperm.xlu1 %2893, %v1312_v9  }
 0x201   : > { %2895 = vset.pattern.permute.xlu1 %v4716_v12 }
 0x202   : > { %1367 = vperm.xlu1 %2895, %v1362_v11  }
 0x206   : > { %2896 = vset.pattern.permute.xlu1 %v4706_v16 }
 0x207   : > { %1459 = vperm.xlu1 %2896, %v1455_v14  }
 0x20b   : > { %2897 = vset.pattern.permute.xlu1 %v4705_v18 }
 0x20c   : > { %1474 = vperm.xlu1 %2897, %v1469_v15  }
 0x210   : > { %2898 = vset.pattern.permute.xlu1 %v4704_v21 }
 0x211   : > { %1499 = vperm.xlu1 %2898, %v1494_v20  }
 0x215   : > { %2900 = vset.pattern.permute.xlu1 %v4703_v24 }
 0x216   : > { %1549 = vperm.xlu1 %2900, %v1544_v22  }
 0x21a   : > { %2902 = vset.pattern.permute.xlu1 %v4726_v1 }
 0x24d   : > { %v695_v40 = vpop.permute.xlu1 %694 }
 0x24e   : > { %v696_v41 = vrot.slane %v695_v40, 6 }
 0x250   : > { %v698_v43 = vsel %vm697_vm6, %v696_v41, %v695_v40 }
 0x251   : > { %705 = vst.msk [vmem:[#allocation3] sm:$0x3f] %vm704_vm7, %v698_v43  ;;  %vm1696_vm7 = vcmask 552208  }
 0x258   : > { %v706_v52 = vld [vmem:[#allocation3] sm:$0x3f] }
 0x259   : > { %v1061_v53 = vld [vmem:[#allocation3] sm:$0x3f]  ;;  %v738_v57 = vmul.f32 %v736_v49, %v706_v52 }
 0x25a   : > { %v1070_v2 = vrot.slane %v1061_v53, %v3792_v19  ;;  %v878_v9 = vld [vmem:[#allocation3] sm:$0x3f]  ;;  %v1063_v32 = vcombine.high %v1061_v53, %v1061_v53 }
 0x25b   : > { %v1387_v11 = vld [vmem:[#allocation3] sm:$0x3f]  ;;  %v916_v14 = vmul.f32 %v914_v51, %v878_v9  ;;  %v740_v20 = vcombine.high %v738_v57, %v738_v57  ;;  %2681 = vst.sshfl [vmem:[#allocation5] sm:$0xf pattern:$0x76325410] %v738_v57 }
 0x25c   : > { %v1425_v15 = vmul.f32 %v1423_v56, %v1387_v11  ;;  %1078 = vrot.lane.b32.xlu0 %v1070_v2, %s4701_s17  ;;  %v1205_v34 = vld [vmem:[#allocation3] sm:$0x3f]  ;;  %v1077_v41 = vrot.slane %v1063_v32, %v3792_v19 }
 0x25d   : > { %v925_v22 = vrot.slane %v916_v14, %v3792_v19  ;;  %v918_v25 = vcombine.high %v916_v14, %v916_v14  ;;  %v754_v27 = vrot.slane %v740_v20, %v3792_v19  ;;  %v1243_v40 = vmul.f32 %v1241_v35, %v1205_v34 }
 0x25e   : > { %v1427_v38 = vcombine.high %v1425_v15, %v1425_v15  ;;  %v1434_v46 = vrot.slane %v1425_v15, %v3792_v19  ;;  %v3918_v14 = vpop.permute.xlu1 %1016 }
 0x25f   : > { %933 = vrot.lane.b32.xlu1 %v925_v22, %s4699_s24  ;;  %v932_v37 = vrot.slane %v918_v25, %v3792_v19  ;;  %759 = vst.msk [vmem:[#allocation5 + $0x8] sm:$0x3] %vm758_vm11, %v754_v27  ;;  %v1252_v44 = vrot.slane %v1243_v40, %v3792_v19  ;;  %v1245_v48 = vcombine.high %v1243_v40, %v1243_v40  ;;  %v3924_v22 = vpop.permute.xlu0 %779 }
 0x260   : > { %v1441_v43 = vrot.slane %v1427_v38, %v3792_v19 }
 0x261   : > { %935 = vrot.lane.b32.xlu0 %v932_v37, %s4699_s24  ;;  %v1259_v51 = vrot.slane %v1245_v48, %v3792_v19  ;;  %s3385_s24 = smov 112  }
 0x262   : > { %v827_v45 = vld [vmem:[#allocation5] sm:$0x33] }
 0x263   : > { %1080 = vrot.lane.b32.xlu1 %v1077_v41, %s4701_s17  ;;  %v853_v49 = vld [vmem:[#allocation5] sm:$0x33]  ;;  %s3386_s17 = smov 96   ;;  %v836_v2 = vcombine.high %v827_v45, %v827_v45  ;;  %v3920_v15 = vpop.permute.xlu1 %1041  ;;  %v3928_v32 = vpop.permute.xlu0 %805 }
 0x264   : > { %v775_v50 = vld [vmem:[#allocation5] sm:$0x33]  ;;  %v862_v9 = vcombine.high %v853_v49, %v853_v49 }
 0x265   : > { %1444 = vrot.lane.b32.xlu0 %v1441_v43, %s3381_s22  ;;  %v784_v52 = vcombine.high %v775_v50, %v775_v50  ;;  %v801_v56 = vld [vmem:[#allocation5] sm:$0x33] }
 0x266   : > { %v802_v53 = vld [vmem:[#allocation5 + $0x8] sm:$0x3]  ;;  %v810_v60 = vcombine.high %v801_v56, %v801_v56 }
 0x267   : > { %1260 = vrot.lane.b32.xlu1 %v1252_v44, %s3382_s26  ;;  %v828_v57 = vld [vmem:[#allocation5 + $0x8] sm:$0x3]  ;;  %v3932_v34 = vpop.permute.xlu0 %966 }
 0x268   : > { %v854_v19 = vld [vmem:[#allocation5 + $0x8] sm:$0x3]  ;;  %v3922_v20 = vpop.permute.xlu1 %1095 }
 0x269   : > { %837 = vrot.lane.b32.xlu0 %v827_v45, %s3383_s10  ;;  %v776_v11 = vld [vmem:[#allocation5 + $0x8] sm:$0x3] }
 0x26b   : > { %1442 = vrot.lane.b32.xlu1 %v1434_v46, %s3381_s22  ;;  %v3936_v37 = vpop.permute.xlu0 %1110 }
 0x26d   : > { %863 = vrot.lane.b32.xlu0 %v853_v49, %s3384_s30  ;;  %v3926_v25 = vpop.permute.xlu1 %1135 }
 0x26f   : > { %1262 = vrot.lane.b32.xlu1 %v1259_v51, %s3382_s26  ;;  %v3940_v40 = vpop.permute.xlu0 %1160 }
 0x271   : > { %787 = vrot.lane.b32.xlu0 %v784_v52, %s3385_s24 }
 0x272   : > { %v3930_v27 = vpop.permute.xlu1 %1185 }
 0x273   : > { %785 = vrot.lane.b32.xlu1 %v775_v50, %s3385_s24  ;;  %v3944_v43 = vpop.permute.xlu0 %1277 }
 0x275   : > { %815 = vrot.lane.b32.xlu0 %v802_v53, %s3386_s17 }
 0x277   : > { %811 = vrot.lane.b32.xlu1 %v801_v56, %s3386_s17  ;;  %v3934_v35 = vpop.permute.xlu1 %1292  ;;  %v3948_v45 = vpop.permute.xlu0 %1342 }
 0x279   : > { %841 = vrot.lane.b32.xlu0 %v828_v57, %s3383_s10 }
 0x27b   : > { %813 = vrot.lane.b32.xlu1 %v810_v60, %s3386_s17  ;;  %v3952_v48 = vpop.permute.xlu0 %1524 }
 0x27c   : > { %v3938_v38 = vpop.permute.xlu1 %1317 }
 0x27d   : > { %867 = vrot.lane.b32.xlu0 %v854_v19, %s3384_s30 }
 0x27f   : > { %839 = vrot.lane.b32.xlu1 %v836_v2, %s3383_s10  ;;  %v3956_v50 = vpop.permute.xlu0 %1572 }
 0x280   : > { %4762 = vst [vmem:[#allocation34_spill] sm:$0xff] %v3956_v50 }
 0x281   : > { %v3942_v41 = vpop.permute.xlu1 %1367 }
 0x283   : > { %865 = vrot.lane.b32.xlu1 %v862_v9, %s3384_s30  ;;  %v3962_v9 = vld [vmem:[#allocation5] sm:$0x33] }
 0x286   : > { %v3946_v44 = vpop.permute.xlu1 %1459 }
 0x287   : > { %789 = vrot.lane.b32.xlu1 %v776_v11, %s3385_s24 }
 0x28b   : > { %v3950_v46 = vpop.permute.xlu1 %1474 }
 0x290   : > { %v3954_v49 = vpop.permute.xlu1 %1499 }
 0x295   : > { %v3958_v51 = vpop.permute.xlu1 %1549 }
 0x296   : > { %4763 = vst [vmem:[#allocation35_spill] sm:$0xff] %v3958_v51 }
 0x2ce   : > { %v1079_v52 = vpop.permute.xlu0 %1078 }
 0x2cf   : > { %v1082_v18 = vrot.slane %v1079_v52, 4 }
 0x2d1   : > { %v934_v53 = vpop.permute.xlu1 %933 }
 0x2d2   : > { %v937_v57 = vrot.slane %v934_v53, 4 }
 0x2d3   : > { %v936_v56 = vpop.permute.xlu0 %935 }
 0x2d4   : > { %v938_v60 = vrot.slane %v936_v56, 4  ;;  %946 = vst.msk [vmem:[#allocation5 + $0x8] sm:$0x3] %vm758_vm11, %v936_v56 }
 0x2d5   : > { %v1081_v19 = vpop.permute.xlu1 %1080 }
 0x2d6   : > { %v940_v2 = vsel %vm939_vm12, %v937_v57, %v938_v60  ;;  %v1083_v24 = vrot.slane %v1081_v19, 4 }
 0x2d7   : > { %v942_v11 = vsel %vm941_vm13, %v934_v53, %v940_v2 }
 0x2d8   : > { %945 = vst [vmem:[#allocation5] sm:$0x33] %v942_v11  ;;  %v1084_v56 = vsel %vm939_vm12, %v1082_v18, %v1083_v24 }
 0x2d9   : > { %v1261_v21 = vpop.permute.xlu1 %1260  ;;  %v1086_v2 = vsel %vm4736_vm14, %v1079_v52, %v1084_v56  ;;  %vm1734_vm14 = vcmask 519168  }
 0x2da   : > { %v1264_v18 = vrot.slane %v1261_v21, 4 }
 0x2db   : > { %v963_v16 = vld [vmem:[#allocation5 + $0x8] sm:$0x3] }
 0x2dc   : > { %v988_v61 = vld [vmem:[#allocation5 + $0x8] sm:$0x3]  ;;  %976 = vrot.lane.b32.xlu0 %v963_v16, %s3385_s24 }
 0x2dd   : > { %v1013_v4 = vld [vmem:[#allocation5 + $0x8] sm:$0x3]  ;;  %v1443_v58 = vpop.permute.xlu1 %1442 }
 0x2de   : > { %v1038_v62 = vld [vmem:[#allocation5 + $0x8] sm:$0x3] }
 0x2df   : > { %1090 = vst.msk [vmem:[#allocation5 + $0x8] sm:$0x3] %vm758_vm11, %v1081_v19  ;;  %v3968_v57 = vld [vmem:[#allocation5] sm:$0x33] }
 0x2e0   : > { %v962_v60 = vld [vmem:[#allocation5] sm:$0x33]  ;;  %1001 = vrot.lane.b32.xlu0 %v988_v61, %s3386_s17 }
 0x2e1   : > { %v987_v53 = vld [vmem:[#allocation5] sm:$0x33]  ;;  %v971_v11 = vcombine.high %v962_v60, %v962_v60  ;;  %v1263_v3 = vpop.permute.xlu1 %1262 }
 0x2e2   : > { %v1012_v59 = vld [vmem:[#allocation5] sm:$0x33]  ;;  %v1265_v16 = vrot.slane %v1263_v3, 4  ;;  %v996_v24 = vcombine.high %v987_v53, %v987_v53 }
 0x2e3   : > { %v1037_v55 = vld [vmem:[#allocation5] sm:$0x33]  ;;  %974 = vrot.lane.b32.xlu1 %v971_v11, %s3385_s24  ;;  %v1021_v61 = vcombine.high %v1012_v59, %v1012_v59 }
 0x2e4   : > { %1089 = vst [vmem:[#allocation5] sm:$0x33] %v1086_v2  ;;  %1026 = vrot.lane.b32.xlu0 %v1013_v4, %s3383_s10  ;;  %v1266_v52 = vsel %vm939_vm12, %v1264_v18, %v1265_v16  ;;  %v1445_v4 = vpop.permute.xlu0 %1444  ;;  %v1446_v16 = vrot.slane %v1443_v58, 4 }
 0x2e5   : > { %v1268_v28 = vsel %vm4735_vm15, %v1261_v21, %v1266_v52  ;;  %v1447_v18 = vrot.slane %v1445_v4, 4 }
 0x2e6   : > { %v1132_v19 = vld [vmem:[#allocation5 + $0x8] sm:$0x3] }
 0x2e7   : > { %v1107_v63 = vld [vmem:[#allocation5 + $0x8] sm:$0x3]  ;;  %999 = vrot.lane.b32.xlu1 %v996_v24, %s3386_s17  ;;  %v1448_v36 = vsel %vm939_vm12, %v1446_v16, %v1447_v18 }
 0x2e8   : > { %v1157_v12 = vld [vmem:[#allocation5 + $0x8] sm:$0x3]  ;;  %1051 = vrot.lane.b32.xlu0 %v1038_v62, %s3384_s30 }
 0x2e9   : > { %v1182_v10 = vld [vmem:[#allocation5 + $0x8] sm:$0x3] }
 0x2ea   : > { %1272 = vst.msk [vmem:[#allocation5 + $0x8] sm:$0x3] %vm758_vm11, %v1263_v3  ;;  %v1046_v3 = vcombine.high %v1037_v55, %v1037_v55 }
 0x2eb   : > { %v1106_v56 = vld [vmem:[#allocation5] sm:$0x33]  ;;  %1024 = vrot.lane.b32.xlu1 %v1021_v61, %s3383_s10 }
 0x2ec   : > { %v3978_v2 = vld [vmem:[#allocation5] sm:$0x33]  ;;  %972 = vrot.lane.b32.xlu0 %v962_v60, %s3385_s24  ;;  %v1450_v60 = vsel %vm1449_vm0, %v1443_v58, %v1448_v36  ;;  %v1115_v36 = vcombine.high %v1106_v56, %v1106_v56 }
 0x2ed   : > { %v1131_v11 = vld [vmem:[#allocation5] sm:$0x33] }
 0x2ee   : > { %v1156_v47 = vld [vmem:[#allocation5] sm:$0x33] }
 0x2ef   : > { %v1181_v42 = vld [vmem:[#allocation5] sm:$0x33]  ;;  %1049 = vrot.lane.b32.xlu1 %v1046_v3, %s3384_s30  ;;  %v1165_v58 = vcombine.high %v1156_v47, %v1156_v47  ;;  %v4026_v3 = vpop.permute.xlu1 %785 }
 0x2f0   : > { %1271 = vst [vmem:[#allocation5] sm:$0x33] %v1268_v28  ;;  %997 = vrot.lane.b32.xlu0 %v987_v53, %s3386_s17 }
 0x2f1   : > { %v1289_v24 = vld [vmem:[#allocation5 + $0x8] sm:$0x3] }
 0x2f2   : > { %v1314_v62 = vld [vmem:[#allocation5 + $0x8] sm:$0x3] }
 0x2f3   : > { %v1339_v6 = vld [vmem:[#allocation5 + $0x8] sm:$0x3]  ;;  %1145 = vrot.lane.b32.xlu1 %v1132_v19, %s3386_s17 }
 0x2f4   : > { %v1364_v39 = vld [vmem:[#allocation5 + $0x8] sm:$0x3]  ;;  %1022 = vrot.lane.b32.xlu0 %v1012_v59, %s3383_s10  ;;  %v1190_v59 = vcombine.high %v1181_v42, %v1181_v42 }
 0x2f5   : > { %1454 = vst.msk [vmem:[#allocation5 + $0x8] sm:$0x3] %vm758_vm11, %v1445_v4  ;;  %vm1707_vm11 = vcmask 1043728  }
 0x2f7   : > { %v3987_v21 = vld [vmem:[#allocation5] sm:$0x33]  ;;  %1116 = vrot.lane.b32.xlu1 %v1106_v56, %s3385_s24 }
 0x2f8   : > { %v1288_v28 = vld [vmem:[#allocation5] sm:$0x33]  ;;  %1047 = vrot.lane.b32.xlu0 %v1037_v55, %s3384_s30  ;;  %v1140_v55 = vcombine.high %v1131_v11, %v1131_v11 }
 0x2f9   : > { %v1313_v52 = vld [vmem:[#allocation5] sm:$0x33] }
 0x2fa   : > { %v1338_v61 = vld [vmem:[#allocation5] sm:$0x33] }
 0x2fb   : > { %v1363_v54 = vld [vmem:[#allocation5] sm:$0x33]  ;;  %1141 = vrot.lane.b32.xlu1 %v1131_v11, %s3386_s17 }
 0x2fc   : > { %1453 = vst [vmem:[#allocation5] sm:$0x33] %v1450_v60  ;;  %1120 = vrot.lane.b32.xlu0 %v1107_v63, %s3385_s24  ;;  %v1297_v63 = vcombine.high %v1288_v28, %v1288_v28  ;;  %v1471_v19 = vld [vmem:[#allocation5 + $0x8] sm:$0x3] }
 0x2fd   : > { %v1496_v11 = vld [vmem:[#allocation5 + $0x8] sm:$0x3] }
 0x2fe   : > { %v1546_v60 = vld [vmem:[#allocation5 + $0x8] sm:$0x3] }
 0x2ff   : > { %1166 = vrot.lane.b32.xlu1 %v1156_v47, %s3383_s10  ;;  %v1322_v47 = vcombine.high %v1313_v52, %v1313_v52 }
 0x300   : > { %1170 = vrot.lane.b32.xlu0 %v1157_v12, %s3383_s10  ;;  %v1521_v12 = vld [vmem:[#allocation5 + $0x8] sm:$0x3] }
 0x303   : > { %1118 = vrot.lane.b32.xlu1 %v1115_v36, %s3385_s24  ;;  %v1470_v53 = vld [vmem:[#allocation5] sm:$0x33] }
 0x304   : > { %1195 = vrot.lane.b32.xlu0 %v1182_v10, %s3384_s30  ;;  %v1372_v10 = vcombine.high %v1363_v54, %v1363_v54  ;;  %v1545_v56 = vld [vmem:[#allocation5] sm:$0x33]  ;;  %v1479_v4 = vcombine.high %v1470_v53, %v1470_v53 }
 0x305   : > { %v1495_v16 = vld [vmem:[#allocation5] sm:$0x33] }
 0x307   : > { %1168 = vrot.lane.b32.xlu1 %v1165_v58, %s3383_s10 }
 0x308   : > { %1191 = vrot.lane.b32.xlu0 %v1181_v42, %s3384_s30  ;;  %v1347_v42 = vcombine.high %v1338_v61, %v1338_v61 }
 0x30b   : > { %1193 = vrot.lane.b32.xlu1 %v1190_v59, %s3384_s30  ;;  %v1680_v59 = vld [vmem:[#allocation17] sm:$0xf] }
 0x30c   : > { %1143 = vrot.lane.b32.xlu0 %v1140_v55, %s3386_s17 }
 0x30f   : > { %1298 = vrot.lane.b32.xlu1 %v1288_v28, %s3385_s24  ;;  %v4033_v28 = vpop.permute.xlu1 %811 }
 0x310   : > { %1302 = vrot.lane.b32.xlu0 %v1289_v24, %s3385_s24 }
 0x313   : > { %1300 = vrot.lane.b32.xlu1 %v1297_v63, %s3385_s24  ;;  %v4040_v58 = vpop.permute.xlu1 %813 }
 0x314   : > { %1327 = vrot.lane.b32.xlu0 %v1314_v62, %s3386_s17 }
 0x317   : > { %1325 = vrot.lane.b32.xlu1 %v1322_v47, %s3386_s17  ;;  %v4045_v63 = vpop.permute.xlu1 %839  ;;  %v1852_v47 = vld [vmem:[#allocation21 + $0x1] ss:$8 sm:$0x7] }
 0x318   : > { %1352 = vrot.lane.b32.xlu0 %v1339_v6, %s3383_s10  ;;  %v1520_v6 = vld [vmem:[#allocation5] sm:$0x33] }
 0x319   : > { %v1529_v24 = vcombine.high %v1520_v6, %v1520_v6 }
 0x31b   : > { %1350 = vrot.lane.b32.xlu1 %v1347_v42, %s3383_s10  ;;  %v1857_v42 = vrot.slane %v1852_v47, %v3782_v7 }
 0x31c   : > { %1377 = vrot.lane.b32.xlu0 %v1364_v39, %s3384_s30  ;;  %v4019_v39 = vpop.permute.xlu0 %837 }
 0x31f   : > { %1375 = vrot.lane.b32.xlu1 %v1372_v10, %s3384_s30  ;;  %v1861_v10 = vrot.slane %v1852_v47, %v3784_v8 }
 0x320   : > { %1323 = vrot.lane.b32.xlu0 %v1313_v52, %s3386_s17  ;;  %v4024_v18 = vpop.permute.xlu0 %863  ;;  %v1554_v52 = vcombine.high %v1545_v56, %v1545_v56 }
 0x323   : > { %1534 = vrot.lane.b32.xlu1 %v1521_v12, %s3383_s10  ;;  %v1750_v12 = vld [vmem:[#allocation18] sm:$0xf] }
 0x324   : > { %1348 = vrot.lane.b32.xlu0 %v1338_v61, %s3383_s10  ;;  %v4031_v62 = vpop.permute.xlu0 %787  ;;  %v1597_v61 = vld [vmem:[#allocation15] sm:$0xf] }
 0x327   : > { %1480 = vrot.lane.b32.xlu1 %v1470_v53, %s3385_s24  ;;  %v2138_v53 = vld [vmem:[#allocation21 + $0x3] ss:$8 sm:$0x7] }
 0x328   : > { %1373 = vrot.lane.b32.xlu0 %v1363_v54, %s3384_s30  ;;  %v1504_v54 = vcombine.high %v1495_v16, %v1495_v16  ;;  %v4038_v36 = vpop.permute.xlu0 %815 }
 0x32b   : > { %1530 = vrot.lane.b32.xlu1 %v1520_v6, %s3383_s10 }
 0x32c   : > { %1484 = vrot.lane.b32.xlu0 %v1471_v19, %s3385_s24  ;;  %v4043_v55 = vpop.permute.xlu0 %841  ;;  %v4054_v19 = vpop.permute.xlu1 %865 }
 0x32f   : > { %1555 = vrot.lane.b32.xlu1 %v1545_v56, %s3384_s30  ;;  %v1736_v56 = vld [vmem:[#allocation18] sm:$0xf] }
 0x330   : > { %1509 = vrot.lane.b32.xlu0 %v1496_v11, %s3386_s17  ;;  %v4052_v6 = vpop.permute.xlu0 %867  ;;  %v1866_v11 = vcombine.low %v1857_v42, %v1861_v10  ;;  %v1775_v42 = vld [vmem:[#allocation18] sm:$0xf] }
 0x333   : > { %1482 = vrot.lane.b32.xlu1 %v1479_v4, %s3385_s24  ;;  %v2143_v4 = vrot.slane %v2138_v53, %v3782_v7 }
 0x334   : > { %1505 = vrot.lane.b32.xlu0 %v1495_v16, %s3386_s17  ;;  %v2147_v16 = vrot.slane %v2138_v53, %v3784_v8 }
 0x337   : > { %1507 = vrot.lane.b32.xlu1 %v1504_v54, %s3386_s17  ;;  %v1865_v54 = vrot.slane %v1852_v47, %v3786_v13 }
 0x338   : > { %1532 = vrot.lane.b32.xlu0 %v1529_v24, %s3383_s10 }
 0x33b   : > { %1557 = vrot.lane.b32.xlu1 %v1554_v52, %s3384_s30  ;;  %v790_v52 = vpop.permute.xlu1 %789 }
 0x33c   : > { %1559 = vrot.lane.b32.xlu0 %v1546_v60, %s3384_s30  ;;  %v2294_v60 = vld [vmem:[#allocation21 + $0x4] ss:$8 sm:$0x7] }
 0x33d   : > { %v2307_v47 = vrot.slane %v2294_v60, %v3786_v13 }
 0x33f   : > { %1601 = vperm.xlu1 %2902, %v1597_v61  }
 0x340   : > { %1620 = vperm.xlu0 %2903, %v1597_v61  }
 0x343   : > { %2904 = vset.pattern.permute.xlu1 %v4725_v0  ;;  %v4766_v0 = vmov 20  }
 0x344   : > { %1641 = vperm.xlu1 %2904, %v1597_v61   ;;  %2906 = vset.pattern.permute.xlu0 %v4726_v1 }
 0x345   : > { %1683 = vperm.xlu0 %2906, %v1680_v59   ;;  %v4764_v59 = vmov 10  }
 0x348   : > { %2905 = vset.pattern.permute.xlu1 %v4727_v5  ;;  %v768_v5 = vcombine.high %v3962_v9, %v3962_v9 }
 0x349   : > { %1662 = vperm.xlu1 %2905, %v1597_v61   ;;  %2908 = vset.pattern.permute.xlu0 %v3354_v17  ;;  %v2152_v17 = vcombine.low %v2143_v4, %v2147_v16  ;;  %v2151_v16 = vrot.slane %v2138_v53, %v3786_v13 }
 0x34a   : > { %1755 = vperm.xlu0 %2908, %v1750_v12  }
 0x34d   : > { %2907 = vset.pattern.permute.xlu1 %v4726_v1 }
 0x34e   : > { %1740 = vperm.xlu1 %2907, %v1736_v56   ;;  %v4060_v24 = vpop.permute.xlu0 %976  ;;  %1867 = vrot.lane.b32.xlu0 %v1866_v11, %s3357_s20  ;;  %v4765_v11 = vmov 15  }
 0x34f   : > { %2913 = vset.pattern.permute.xlu0 %v3355_v23  ;;  %v1800_v23 = vld [vmem:[#allocation18] sm:$0xf] }
 0x352   : > { %1869 = vrot.lane.b32.xlu1 %v1865_v54, %s3357_s20  ;;  %v4065_v61 = vpop.permute.xlu0 %1001  ;;  %2153 = vrot.lane.b32.xlu0 %v2152_v17, %s3363_s18  ;;  %v2299_v54 = vrot.slane %v2294_v60, %v3782_v7  ;;  %v2303_v17 = vrot.slane %v2294_v60, %v3784_v8  ;;  %v793_v60 = vsel %vm791_vm1, %v4031_v62, %v790_v52  ;;  %v4767_v8 = vmov 1   ;;  %s4279_s20 = scalar_lea.vmem [#allocation23], %s2661_s27  ;;  %s4793_s27 = smov 126  }
 0x353   : > { %2909 = vset.pattern.permute.xlu1 %v4764_v59  ;;  %v819_v52 = vsel %vm817_vm2, %v4040_v58, %v4038_v36  ;;  %v845_v36 = vsel %vm843_vm3, %v4045_v63, %v4043_v55 }
 0x354   : > { %v823_v51 = vmul.f32 %v819_v52, %v3928_v32  ;;  %v849_v55 = vmul.f32 %v845_v36, %v3871_v29 }
 0x355   : > { %v4070_v10 = vpop.permute.xlu1 %974 }
 0x356   : > { %1780 = vperm.xlu1 %2909, %v1775_v42   ;;  %v4072_v12 = vpop.permute.xlu0 %1026  ;;  %2311 = vrot.lane.b32.xlu0 %v2307_v47, %s3358_s12  ;;  %v2308_v47 = vcombine.low %v2299_v54, %v2303_v17  ;;  %v1892_v54 = vld [vmem:[#allocation18] sm:$0xf]  ;;  %v771_v17 = vmul.f32 %v768_v5, %v3869_v26 }
 0x359   : > { %v4075_v56 = vpop.permute.xlu1 %999 }
 0x35a   : > { %2910 = vset.pattern.permute.xlu1 %v4765_v11  ;;  %v4078_v4 = vpop.permute.xlu0 %1051 }
 0x35b   : > { %1805 = vperm.xlu1 %2910, %v1800_v23   ;;  %v1825_v23 = vld [vmem:[#allocation18] sm:$0xf] }
 0x35d   : > { %v4083_v59 = vpop.permute.xlu1 %1024 }
 0x35e   : > { %v973_v42 = vpop.permute.xlu0 %972 }
 0x35f   : > { %2155 = vrot.lane.b32.xlu1 %v2151_v16, %s3363_s18  ;;  %s2489_s18 = sshll.u32 %s4279_s20, 4  ;;  %s4640_s18 = int_to_ptr.vmem [resolvable:$true] %s2489_s18 }
 0x360   : > { %2911 = vset.pattern.permute.xlu1 %v4766_v0  ;;  %v797_v0 = vmul.f32 %v793_v60, %v3924_v22  ;;  %v1931_v60 = vld [vmem:[#allocation18] sm:$0xf] }
 0x361   : > { %v4087_v1 = vpop.permute.xlu1 %1049 }
 0x362   : > { %v998_v11 = vpop.permute.xlu0 %997  ;;  %v799_v7 = vadd.f32 %v797_v0, %v771_v17  ;;  %v4768_v0 = vmov 11  }
 0x363   : > { %2309 = vrot.lane.b32.xlu1 %v2308_v47, %s3358_s12  ;;  %s4794_s12 = smov 127  }
 0x364   : > { %v825_v17 = vadd.f32 %v823_v51, %v799_v7  ;;  %v870_v7 = vsel %vm869_vm4, %v4024_v18, %v4054_v19 }
 0x365   : > { %v4090_v53 = vpop.permute.xlu1 %1145 }
 0x366   : > { %v1023_v13 = vpop.permute.xlu0 %1022 }
 0x367   : > { %1830 = vperm.xlu1 %2911, %v1825_v23   ;;  %v792_v23 = vsel %vm791_vm1, %v4026_v3, %v4031_v62  ;;  %v844_v62 = vsel %vm843_vm3, %v4019_v39, %v4045_v63  ;;  %v851_v63 = vadd.f32 %v849_v55, %v825_v17 }
 0x368   : > { %v848_v39 = vmul.f32 %v844_v62, %v3871_v29 }
 0x369   : > { %v4097_v16 = vpop.permute.xlu1 %1116 }
 0x36a   : > { %v1048_v47 = vpop.permute.xlu0 %1047 }
 0x36b   : > { %2912 = vset.pattern.permute.xlu1 %v4767_v8  ;;  %v818_v8 = vsel %vm817_vm2, %v4033_v28, %v4040_v58  ;;  %v770_v28 = vmul.f32 %v3869_v26, %v3962_v9  ;;  %v4769_v26 = vmov 16   ;;  %v874_v9 = vmul.f32 %v870_v7, %v3873_v30 }
 0x36c   : > { %1896 = vperm.xlu1 %2912, %v1892_v54   ;;  %v796_v54 = vmul.f32 %v792_v23, %v3924_v22  ;;  %v822_v58 = vmul.f32 %v818_v8, %v3928_v32  ;;  %v871_v22 = vsel %vm869_vm4, %v4054_v19, %v4052_v6  ;;  %v955_v8 = vcombine.high %v3968_v57, %v3968_v57 }
 0x36d   : > { %v4104_v50 = vpop.permute.xlu1 %1141  ;;  %v979_v6 = vsel %vm791_vm1, %v4070_v10, %v4060_v24  ;;  %v1029_v24 = vsel %vm843_vm3, %v4083_v59, %v4072_v12 }
 0x36e   : > { %v4110_v5 = vpop.permute.xlu0 %1120  ;;  %v798_v51 = vadd.f32 %v796_v54, %v770_v28  ;;  %v958_v17 = vmul.f32 %v955_v8, %v3875_v31  ;;  %v983_v62 = vmul.f32 %v979_v6, %v3932_v34  ;;  %v1906_v8 = vld [vmem:[#allocation18] sm:$0xf] }
 0x36f   : > { %1911 = vperm.xlu0 %2913, %v1906_v8   ;;  %v2267_v8 = vld [vmem:[#allocation18] sm:$0xf] }
 0x370   : > { %2914 = vset.pattern.permute.xlu1 %v4768_v0  ;;  %v824_v32 = vadd.f32 %v822_v58, %v798_v51  ;;  %v1004_v0 = vsel %vm817_vm2, %v4075_v56, %v4065_v61  ;;  %v1003_v58 = vsel %vm817_vm2, %v998_v11, %v4075_v56  ;;  %v1028_v51 = vsel %vm843_vm3, %v1023_v13, %v4083_v59 }
 0x371   : > { %v4120_v3 = vpop.permute.xlu1 %1166  ;;  %1936 = vperm.xlu1 %2914, %v1931_v60   ;;  %v875_v60 = vmul.f32 %v871_v22, %v3873_v30  ;;  %v978_v30 = vsel %vm791_vm1, %v973_v42, %v4070_v10  ;;  %v1008_v61 = vmul.f32 %v1004_v0, %v3877_v33  ;;  %v957_v10 = vmul.f32 %v3875_v31, %v3968_v57 }
 0x372   : > { %v4129_v52 = vpop.permute.xlu0 %1170  ;;  %v850_v19 = vadd.f32 %v848_v39, %v824_v32  ;;  %v982_v42 = vmul.f32 %v978_v30, %v3932_v34  ;;  %v1054_v22 = vsel %vm869_vm4, %v4087_v1, %v4078_v4  ;;  %v1033_v39 = vmul.f32 %v1029_v24, %v3918_v14 }
 0x373   : > { %v877_v29 = vadd.f32 %v875_v60, %v851_v63  ;;  %v1007_v11 = vmul.f32 %v1003_v58, %v3877_v33  ;;  %v1053_v31 = vsel %vm869_vm4, %v1048_v47, %v4087_v1  ;;  %v1032_v32 = vmul.f32 %v1028_v51, %v3918_v14 }
 0x374   : > { %v876_v54 = vadd.f32 %v874_v9, %v850_v19  ;;  %v1057_v59 = vmul.f32 %v1053_v31, %v3920_v15  ;;  %v1099_v60 = vcombine.high %v3978_v2, %v3978_v2  ;;  %v1101_v24 = vmul.f32 %v3922_v20, %v3978_v2  ;;  %v2178_v2 = vld [vmem:[#allocation18] sm:$0xf] }
 0x375   : > { %v1119_v23 = vpop.permute.xlu1 %1118  ;;  %2915 = vset.pattern.permute.xlu1 %v4769_v26  ;;  %v960_v55 = vadd.f32 %v958_v17, %v877_v29  ;;  %v1058_v26 = vmul.f32 %v1054_v22, %v3920_v15 }
 0x376   : > { %v4143_v18 = vpop.permute.xlu0 %1195  ;;  %v959_v56 = vadd.f32 %v957_v10, %v876_v54  ;;  %v1123_v1 = vsel %vm791_vm1, %v1119_v23, %v4110_v5  ;;  %v1122_v14 = vsel %vm791_vm1, %v4097_v16, %v1119_v23  ;;  %v1102_v15 = vmul.f32 %v1099_v60, %v3922_v20 }
 0x377   : > { %v985_v12 = vadd.f32 %v983_v62, %v960_v55  ;;  %v1127_v30 = vmul.f32 %v1123_v1, %v3936_v37  ;;  %v4770_v5 = vmov 7   ;;  %v2036_v62 = vld [vmem:[#allocation18] sm:$0xf]  ;;  %v1126_v16 = vmul.f32 %v1122_v14, %v3936_v37 }
 0x378   : > { %v984_v34 = vadd.f32 %v982_v42, %v959_v56  ;;  %2918 = vset.pattern.permute.xlu0 %v4770_v5  ;;  %v4771_v20 = vmov 3  }
 0x379   : > { %v4148_v36 = vpop.permute.xlu1 %1168  ;;  %v1010_v57 = vadd.f32 %v1008_v61, %v985_v12  ;;  %2041 = vperm.xlu0 %2918, %v2036_v62   ;;  %v4774_v62 = vmov 19  }
 0x37a   : > { %v4157_v28 = vpop.permute.xlu0 %1191  ;;  %v1009_v13 = vadd.f32 %v1007_v11, %v984_v34  ;;  %v1172_v37 = vsel %vm843_vm3, %v4120_v3, %v4148_v36  ;;  %v4772_v34 = vmov 13  }
 0x37b   : > { %v1035_v9 = vadd.f32 %v1033_v39, %v1010_v57 }
 0x37c   : > { %v1034_v6 = vadd.f32 %v1032_v32, %v1009_v13  ;;  %v1281_v32 = vcombine.high %v3987_v21, %v3987_v21 }
 0x37d   : > { %v1194_v7 = vpop.permute.xlu1 %1193  ;;  %v1060_v47 = vadd.f32 %v1058_v26, %v1035_v9  ;;  %2922 = vset.pattern.permute.xlu0 %v4771_v20  ;;  %v2217_v26 = vld [vmem:[#allocation18] sm:$0xf] }
 0x37e   : > { %v1144_v63 = vpop.permute.xlu0 %1143  ;;  %v1059_v0 = vadd.f32 %v1057_v59, %v1034_v6  ;;  %2182 = vperm.xlu0 %2922, %v2178_v2   ;;  %v1198_v11 = vsel %vm869_vm4, %v1194_v7, %v4143_v18  ;;  %v1197_v57 = vsel %vm869_vm4, %v4157_v28, %v1194_v7  ;;  %v1284_v60 = vmul.f32 %v1281_v32, %v3944_v43 }
 0x37f   : > { %v1148_v29 = vsel %vm817_vm2, %v1144_v63, %v4090_v53  ;;  %v1147_v17 = vsel %vm817_vm2, %v4104_v50, %v1144_v63  ;;  %v1104_v58 = vadd.f32 %v1102_v15, %v1060_v47  ;;  %v1173_v50 = vsel %vm843_vm3, %v4148_v36, %v4129_v52 }
 0x380   : > { %v1152_v53 = vmul.f32 %v1148_v29, %v3926_v25  ;;  %v1103_v55 = vadd.f32 %v1101_v24, %v1059_v0  ;;  %v1151_v10 = vmul.f32 %v1147_v17, %v3926_v25  ;;  %v1177_v39 = vmul.f32 %v1173_v50, %v3940_v40 }
 0x381   : > { %v4179_v4 = vpop.permute.xlu1 %1298  ;;  %v1129_v61 = vadd.f32 %v1127_v30, %v1104_v58  ;;  %v1176_v52 = vmul.f32 %v1172_v37, %v3940_v40  ;;  %v1202_v3 = vmul.f32 %v1198_v11, %v3930_v27  ;;  %v1201_v18 = vmul.f32 %v1197_v57, %v3930_v27 }
 0x382   : > { %v1303_v33 = vpop.permute.xlu0 %1302  ;;  %v1128_v22 = vadd.f32 %v1126_v16, %v1103_v55  ;;  %2924 = vset.pattern.permute.xlu0 %v4772_v34  ;;  %v4773_v7 = vmov 23   ;;  %v1283_v47 = vmul.f32 %v3944_v43, %v3987_v21  ;;  %v2398_v43 = vld [vmem:[#allocation18] sm:$0xf] }
 0x383   : > { %v1154_v51 = vadd.f32 %v1152_v53, %v1129_v61  ;;  %2222 = vperm.xlu0 %2924, %v2217_v26   ;;  %v4776_v26 = vmov 0.0  }
 0x384   : > { %v1153_v56 = vadd.f32 %v1151_v10, %v1128_v22  ;;  %v1456_v10 = vld [vmem:[#allocation5] sm:$0x33]  ;;  %1695 = vst.msk [vmem:[#allocation4] sm:$0xf] %vm1694_vm5, %v4776_v26 }
 0x385   : > { %v1301_v19 = vpop.permute.xlu1 %1300  ;;  %v1179_v63 = vadd.f32 %v1177_v39, %v1154_v51  ;;  %v4775_v51 = vmov 0   ;;  %v1463_v39 = vcombine.high %v1456_v10, %v1456_v10  ;;  %1697 = vst.msk [vmem:[#allocation4 + $0x8] sm:$0xf] %vm1696_vm7, %v4776_v26  ;;  %vm1708_vm7 = vcmask 1047556  }
 0x386   : > { %v1328_v54 = vpop.permute.xlu0 %1327  ;;  %v1178_v36 = vadd.f32 %v1176_v52, %v1153_v56  ;;  %v1305_v1 = vsel %vm791_vm1, %v1301_v19, %v1303_v33  ;;  %v1304_v27 = vsel %vm791_vm1, %v4179_v4, %v1301_v19  ;;  %vm1709_vm15 = vmor %vm1708_vm7, %vm1707_vm11 }
 0x387   : > { %v1204_v13 = vadd.f32 %v1202_v3, %v1179_v63  ;;  %2926 = vset.pattern.permute.xlu0 %v4773_v7  ;;  %v1309_v30 = vmul.f32 %v1305_v1, %v3934_v35  ;;  %v1308_v21 = vmul.f32 %v1304_v27, %v3934_v35  ;;  %v1466_v63 = vmul.f32 %v1463_v39, %v3946_v44 }
 0x388   : > { %v1203_v59 = vadd.f32 %v1201_v18, %v1178_v36  ;;  %2272 = vperm.xlu0 %2926, %v2267_v8  }
 0x389   : > { %v1326_v23 = vpop.permute.xlu1 %1325  ;;  %v1286_v6 = vadd.f32 %v1284_v60, %v1204_v13 }
 0x38a   : > { %v1353_v42 = vpop.permute.xlu0 %1352  ;;  %v1330_v29 = vsel %vm817_vm2, %v1326_v23, %v1328_v54  ;;  %v1285_v15 = vadd.f32 %v1283_v47, %v1203_v59 }
 0x38b   : > { %v1311_v24 = vadd.f32 %v1309_v30, %v1286_v6  ;;  %v1334_v4 = vmul.f32 %v1330_v29, %v3938_v38 }
 0x38c   : > { %2930 = vset.pattern.permute.xlu0 %v4774_v62  ;;  %v1310_v53 = vadd.f32 %v1308_v21, %v1285_v15 }
 0x38d   : > { %v1351_v12 = vpop.permute.xlu1 %1350  ;;  %2403 = vperm.xlu0 %2930, %v2398_v43  }
 0x38e   : > { %v1378_v25 = vpop.permute.xlu0 %1377  ;;  %v1355_v5 = vsel %vm843_vm3, %v1351_v12, %v1353_v42  ;;  %v1336_v42 = vadd.f32 %v1334_v4, %v1311_v24 }
 0x391   : > { %v1376_v31 = vpop.permute.xlu1 %1375  ;;  %2932 = vset.pattern.permute.xlu0 %v4775_v51  ;;  %v4779_v51 = vld [vmem:[#allocation31_spill] sm:$0xff] }
 0x392   : > { %v1324_v9 = vpop.permute.xlu0 %1323  ;;  %v1380_v58 = vsel %vm869_vm4, %v1376_v31, %v1378_v25 }
 0x393   : > { %v1329_v0 = vsel %vm817_vm2, %v1324_v9, %v1326_v23  ;;  %v1359_v23 = vmul.f32 %v1355_v5, %v3948_v45  ;;  %v1384_v35 = vmul.f32 %v1380_v58, %v3942_v41 }
 0x394   : > { %v1333_v19 = vmul.f32 %v1329_v0, %v3938_v38  ;;  %v4777_v0 = vld [vmem:[#allocation35_spill] sm:$0xff] }
 0x395   : > { %v4218_v40 = vpop.permute.xlu1 %1534  ;;  %v1361_v20 = vadd.f32 %v1359_v23, %v1336_v42 }
 0x396   : > { %v1349_v28 = vpop.permute.xlu0 %1348  ;;  %v1335_v50 = vadd.f32 %v1333_v19, %v1310_v53 }
 0x397   : > { %v1354_v33 = vsel %vm843_vm3, %v1349_v28, %v1351_v12  ;;  %v2448_v12 = vld [vmem:[#allocation20] sm:$0xf]  ;;  %v1386_v56 = vadd.f32 %v1384_v35, %v1361_v20  ;;  %v1618_v35 = vld [vmem:[#allocation2 + $0x1] ss:$4 sm:$0x3] }
 0x398   : > { %v1358_v55 = vmul.f32 %v1354_v33, %v3948_v45  ;;  %2451 = vperm.xlu0 %2932, %v2448_v12   ;;  %v1627_v12 = vrot.slane %v1618_v35, %v4779_v51  ;;  %v4780_v20 = vld [vmem:[#allocation32_spill] sm:$0xff] }
 0x399   : > { %v1481_v14 = vpop.permute.xlu1 %1480  ;;  %v1468_v36 = vadd.f32 %v1466_v63, %v1386_v56 }
 0x39a   : > { %v1374_v17 = vpop.permute.xlu0 %1373  ;;  %v1360_v2 = vadd.f32 %v1358_v55, %v1335_v50  ;;  %v1598_v50 = vld [vmem:[#allocation2] ss:$4 sm:$0x3] }
 0x39b   : > { %v1379_v16 = vsel %vm869_vm4, %v1374_v17, %v1376_v31  ;;  %v1612_v39 = vrot.slane %v1598_v50, %v4780_v20 }
 0x39c   : > { %v1383_v22 = vmul.f32 %v1379_v16, %v3942_v41  ;;  %v1465_v41 = vmul.f32 %v3946_v44, %v1456_v10 }
 0x39d   : > { %v1531_v54 = vpop.permute.xlu1 %1530 }
 0x39e   : > { %v1485_v61 = vpop.permute.xlu0 %1484  ;;  %v1385_v25 = vadd.f32 %v1383_v22, %v1360_v2  ;;  %v1631_v2 = vrot.slane %v1618_v35, %v4780_v20 }
 0x3a0   : > { %v1467_v3 = vadd.f32 %v1465_v41, %v1385_v25 }
 0x3a1   : > { %v1556_v38 = vpop.permute.xlu1 %1555 }
 0x3a2   : > { %v1510_v37 = vpop.permute.xlu0 %1509 }
 0x3a5   : > { %v1483_v45 = vpop.permute.xlu1 %1482 }
 0x3a6   : > { %v1486_v11 = vsel %vm791_vm1, %v1481_v14, %v1483_v45  ;;  %v1487_v52 = vsel %vm791_vm1, %v1483_v45, %v1485_v61  ;;  %v1506_v34 = vpop.permute.xlu0 %1505 }
 0x3a7   : > { %v1490_v31 = vmul.f32 %v1486_v11, %v3950_v46  ;;  %v1491_v57 = vmul.f32 %v1487_v52, %v3950_v46 }
 0x3a9   : > { %v1508_v32 = vpop.permute.xlu1 %1507  ;;  %v1492_v13 = vadd.f32 %v1490_v31, %v1467_v3  ;;  %v1493_v59 = vadd.f32 %v1491_v57, %v1468_v36 }
 0x3aa   : > { %v1511_v9 = vsel %vm817_vm2, %v1506_v34, %v1508_v32  ;;  %v1512_v18 = vsel %vm817_vm2, %v1508_v32, %v1510_v37  ;;  %v1533_v46 = vpop.permute.xlu0 %1532  ;;  %v1608_v37 = vrot.slane %v1598_v50, %v4779_v51 }
 0x3ab   : > { %v1515_v44 = vmul.f32 %v1511_v9, %v3954_v49  ;;  %v1516_v60 = vmul.f32 %v1512_v18, %v3954_v49  ;;  %v1536_v28 = vsel %vm843_vm3, %v1531_v54, %v1533_v46  ;;  %v1537_v7 = vsel %vm843_vm3, %v1533_v46, %v4218_v40  ;;  %v4778_v40 = vld [vmem:[#allocation34_spill] sm:$0xff] }
 0x3ac   : > { %v1540_v47 = vmul.f32 %v1536_v28, %v3952_v48  ;;  %v1541_v6 = vmul.f32 %v1537_v7, %v3952_v48  ;;  %v1688_v7 = vld [vmem:[%s3752_s21] sm:$0xf] }
 0x3ad   : > { %v1517_v8 = vadd.f32 %v1515_v44, %v1492_v13  ;;  %v1518_v1 = vadd.f32 %v1516_v60, %v1493_v59  ;;  %v1558_v14 = vpop.permute.xlu1 %1557 }
 0x3ae   : > { %v1561_v27 = vsel %vm869_vm4, %v1556_v38, %v1558_v14  ;;  %v1560_v30 = vpop.permute.xlu0 %1559 }
 0x3af   : > { %v1542_v29 = vadd.f32 %v1540_v47, %v1517_v8  ;;  %v1565_v15 = vmul.f32 %v1561_v27, %v4777_v0  ;;  %v1562_v49 = vsel %vm869_vm4, %v1558_v14, %v1560_v30  ;;  %v1543_v17 = vadd.f32 %v1541_v6, %v1518_v1  ;;  %v1689_v8 = vld [vmem:[%s3752_s21 + $0x8] sm:$0xf]  ;;  %v2022_v30 = vld [vmem:[#allocation18] sm:$0xf] }
 0x3b0   : > { %v1566_v33 = vmul.f32 %v1562_v49, %v4777_v0  ;;  %v1981_v0 = vld [vmem:[#allocation18] sm:$0xf]  ;;  %v4782_v49 = vmov 2  }
 0x3b1   : > { %v1567_v5 = vadd.f32 %v1565_v15, %v1542_v29  ;;  %v1956_v29 = vld [vmem:[#allocation18] sm:$0xf]  ;;  %v4781_v15 = vmov 21  }
 0x3b2   : > { %v1568_v43 = vadd.f32 %v1566_v33, %v1543_v17  ;;  %v2061_v17 = vld [vmem:[#allocation18] sm:$0xf] }
 0x3b3   : > { %v1575_v62 = vadd.f32 %v4778_v40, %v1567_v5  ;;  %v4783_v5 = vmov 12   ;;  %v2086_v33 = vld [vmem:[#allocation18] sm:$0xf] }
 0x3b4   : > { %v1576_v24 = vadd.f32 %v4778_v40, %v1568_v43  ;;  %v4784_v40 = vmov 17   ;;  %v4785_v43 = vmov 22  }
 0x3b5   : > { %v2682_v21 = vmul.f32 -1.442695, %v1575_v62 }
 0x3b6   : > { %v2683_v48 = vmul.f32 -1.442695, %v1576_v24 }
 0x3b7   : > { %2960 = vpow2.f32 %v2682_v21  ;;  %v2192_v21 = vld [vmem:[#allocation18] sm:$0xf] }
 0x3b8   : > { %2962 = vpow2.f32 %v2683_v48  ;;  %v2242_v48 = vld [vmem:[#allocation18] sm:$0xf] }
 0x3be   : > { %v1602_v42 = vpop.permute.xlu1 %1601 }
 0x3bf   : > { %v1621_v22 = vpop.permute.xlu0 %1620  ;;  %v1615_v45 = vmul.f32 %v1608_v37, %v1602_v42  ;;  %v1616_v11 = vmul.f32 %v1612_v39, %v1602_v42 }
 0x3c0   : > { %v1634_v56 = vmul.f32 %v1627_v12, %v1621_v22  ;;  %v1635_v25 = vmul.f32 %v1631_v2, %v1621_v22 }
 0x3c1   : > { %v2961_v4 = vpop.eup %2960 }
 0x3c2   : > { %v1583_v19 = vadd.f32 1.0, %v2961_v4  ;;  %v2963_v54 = vpop.eup %2962  ;;  %v1636_v3 = vadd.f32 %v1634_v56, %v1615_v45  ;;  %v1637_v36 = vadd.f32 %v1635_v25, %v1616_v11  ;;  %v4787_v4 = vmov 18  }
 0x3c3   : > { %v1584_v58 = vadd.f32 1.0, %v2963_v54  ;;  %v1642_v38 = vpop.permute.xlu1 %1641  ;;  %v4788_v54 = vmov 4  }
 0x3c4   : > { %2964 = vrcp.f32 %v1583_v19  ;;  %v1684_v60 = vpop.permute.xlu0 %1683  ;;  %v2334_v19 = vld [vmem:[#allocation18] sm:$0xf] }
 0x3c5   : > { %2966 = vrcp.f32 %v1584_v58  ;;  %v2348_v58 = vld [vmem:[#allocation18] sm:$0xf] }
 0x3c8   : > { %v1663_v26 = vpop.permute.xlu1 %1662 }
 0x3c9   : > { %v4307_v39 = vpop.permute.xlu0 %1755 }
 0x3cd   : > { %v1868_v45 = vpop.permute.xlu0 %1867 }
 0x3ce   : > { %v2965_v16 = vpop.eup %2964 }
 0x3cf   : > { %v2967_v53 = vpop.eup %2966  ;;  %v1589_v23 = vmul.f32 %v2965_v16, %v1575_v62  ;;  %v2111_v62 = vld [vmem:[#allocation18] sm:$0xf]  ;;  %v4789_v16 = vmov 9  }
 0x3d0   : > { %v1590_v55 = vmul.f32 %v2967_v53, %v1576_v24  ;;  %v4786_v24 = vmov 8   ;;  %v2373_v53 = vld [vmem:[#allocation18] sm:$0xf] }
 0x3d2   : > { %v1593_v61 = vcombine.low %v1589_v23, %v1590_v55  ;;  %v4790_v23 = vmov 14   ;;  %v2423_v55 = vld [vmem:[#allocation18] sm:$0xf] }
 0x3d4   : > { %v1594_v10 = vrot.slane %v1593_v61, 6  ;;  %v4791_v61 = vmov 24  }
 0x3d6   : > { %1596 = vst [vmem:[#allocation2] sm:$0xcc] %v1594_v10  ;;  %v4295_v10 = vpop.permute.xlu1 %1740 }
 0x3da   : > { %v1870_v42 = vpop.permute.xlu1 %1869 }
 0x3dd   : > { %v1639_v52 = vld [vmem:[#allocation2 + $0x2] ss:$4 sm:$0x3]  ;;  %v1660_v41 = vld [vmem:[#allocation2 + $0x3] ss:$4 sm:$0x3] }
 0x3de   : > { %v1648_v63 = vrot.slane %v1639_v52, %v4779_v51  ;;  %v1652_v31 = vrot.slane %v1639_v52, %v4780_v20  ;;  %v1669_v57 = vrot.slane %v1660_v41, %v4779_v51  ;;  %v1673_v34 = vrot.slane %v1660_v41, %v4780_v20  ;;  %v4297_v35 = vpop.permute.xlu1 %1780  ;;  %v1714_v52 = vld [vmem:[#allocation21] ss:$8 sm:$0x7]  ;;  %v2154_v41 = vpop.permute.xlu0 %2153 }
 0x3e0   : > { %v1655_v32 = vmul.f32 %v1648_v63, %v1642_v38  ;;  %v1656_v9 = vmul.f32 %v1652_v31, %v1642_v38  ;;  %v1676_v59 = vmul.f32 %v1669_v57, %v1663_v26  ;;  %v1677_v44 = vmul.f32 %v1673_v34, %v1663_v26  ;;  %v4792_v63 = vld [vmem:[#allocation33_spill] sm:$0xff] }
 0x3e1   : > { %v1727_v31 = vrot.slane %v1714_v52, %v4792_v63  ;;  %v1871_v57 = vrot.slane %v1868_v45, 4 }
 0x3e2   : > { %v1657_v18 = vadd.f32 %v1655_v32, %v1636_v3  ;;  %v1658_v13 = vadd.f32 %v1656_v9, %v1637_v36  ;;  %v4299_v50 = vpop.permute.xlu1 %1805  ;;  %v2312_v34 = vpop.permute.xlu0 %2311 }
 0x3e4   : > { %v1678_v46 = vadd.f32 %v1676_v59, %v1657_v18  ;;  %v1679_v28 = vadd.f32 %v1677_v44, %v1658_v13  ;;  %v1873_v59 = vsel %vm913_vm8, %v1871_v57, %v1870_v42  ;;  %v2157_v44 = vrot.slane %v2154_v41, 4 }
 0x3e6   : > { %v1686_v1 = vadd.f32 %v1684_v60, %v1678_v46  ;;  %v1687_v47 = vadd.f32 %v1684_v60, %v1679_v28  ;;  %v2156_v22 = vpop.permute.xlu1 %2155 }
 0x3e8   : > { %v1690_v6 = vadd.f32 %v1688_v7, %v1686_v1  ;;  %v1691_v14 = vadd.f32 %v1689_v8, %v1687_v47  ;;  %v1700_v27 = vcombine.low %v1686_v1, %v1687_v47  ;;  %v2159_v8 = vsel %vm1240_vm10, %v2157_v44, %v2156_v22 }
 0x3e9   : > { %v1872_v1 = vsel %vm913_vm8, %v1871_v57, %v1868_v45  ;;  %vm4796_vm8 = vcmask 1022976  }
 0x3ea   : > { %1692 = vst [vmem:[%s4279_s20] sm:$0xf] %v1690_v6  ;;  %1693 = vst [vmem:[%s4279_s20 + $0x8] sm:$0xf] %v1691_v14  ;;  %1701 = vrot.lane.b32.xlu1 %v1700_v27, %s3369_s29  ;;  %v2310_v38 = vpop.permute.xlu1 %2309  ;;  %v1719_v6 = vrot.slane %v1714_v52, %v4779_v51  ;;  %v1723_v14 = vrot.slane %v1714_v52, %v4780_v20 }
 0x3eb   : > { %v2313_v32 = vrot.slane %v2310_v38, 4 }
 0x3ed   : > { %v2315_v60 = vsel %vm1422_vm9, %v2313_v32, %v2312_v34 }
 0x3ee   : > { %1961 = vperm.xlu1 %2915, %v1956_v29   ;;  %v4301_v12 = vpop.permute.xlu1 %1830  ;;  %v2314_v29 = vsel %vm1422_vm9, %v2313_v32, %v2310_v38 }
 0x3f2   : > { %2916 = vset.pattern.permute.xlu1 %v4781_v15  ;;  %v4303_v2 = vpop.permute.xlu1 %1896 }
 0x3f3   : > { %1986 = vperm.xlu1 %2916, %v1981_v0   ;;  %v2158_v0 = vsel %vm1240_vm10, %v2157_v44, %v2154_v41 }
 0x3f6   : > { %v4305_v37 = vpop.permute.xlu1 %1936 }
 0x3f7   : > { %2917 = vset.pattern.permute.xlu1 %v4782_v49 }
 0x3f8   : > { %2026 = vperm.xlu1 %2917, %v2022_v30   ;;  %v1729_v30 = vcombine.low %v1719_v6, %v1723_v14 }
 0x3fc   : > { %2919 = vset.pattern.permute.xlu1 %v4783_v5 }
 0x3fd   : > { %2066 = vperm.xlu1 %2919, %v2061_v17  }
 0x401   : > { %2920 = vset.pattern.permute.xlu1 %v4784_v40 }
 0x402   : > { %2091 = vperm.xlu1 %2920, %v2086_v33  }
 0x406   : > { %2921 = vset.pattern.permute.xlu1 %v4785_v43 }
 0x407   : > { %2116 = vperm.xlu1 %2921, %v2111_v62  }
 0x40b   : > { %2923 = vset.pattern.permute.xlu1 %v4786_v24 }
 0x40c   : > { %2197 = vperm.xlu1 %2923, %v2192_v21  }
 0x410   : > { %2925 = vset.pattern.permute.xlu1 %v4787_v4  ;;  %v4365_v4 = vpop.permute.xlu0 %1911 }
 0x411   : > { %2247 = vperm.xlu1 %2925, %v2242_v48  }
 0x415   : > { %2927 = vset.pattern.permute.xlu1 %v4788_v54  ;;  %v4369_v54 = vpop.permute.xlu0 %2041 }
 0x416   : > { %2338 = vperm.xlu1 %2927, %v2334_v19  }
 0x41a   : > { %2928 = vset.pattern.permute.xlu1 %v4789_v16  ;;  %v4373_v16 = vpop.permute.xlu0 %2182 }
 0x41b   : > { %2353 = vperm.xlu1 %2928, %v2348_v58  }
 0x41f   : > { %2929 = vset.pattern.permute.xlu1 %v4790_v23  ;;  %v4377_v23 = vpop.permute.xlu0 %2222 }
 0x420   : > { %2378 = vperm.xlu1 %2929, %v2373_v53  }
 0x424   : > { %2931 = vset.pattern.permute.xlu1 %v4791_v61  ;;  %v4381_v61 = vpop.permute.xlu0 %2272 }
 0x425   : > { %2428 = vperm.xlu1 %2931, %v2423_v55  }
 0x428   : > { %v4385_v22 = vpop.permute.xlu0 %2403 }
 0x45c   : > { %v1702_v56 = vpop.permute.xlu1 %1701 }
 0x45d   : > { %v1703_v25 = vrot.slane %v1702_v56, 4 }
 0x45f   : > { %v1704_v11 = vsel %vm697_vm6, %v1703_v25, %v1702_v56  ;;  %1711 = vst.msk [vmem:[#allocation4 + $0x8] sm:$0xf] %vm1694_vm5, %v1703_v25  ;;  %v4389_v56 = vpop.permute.xlu0 %2451  ;;  %vm4795_vm6 = vcmask 1031168  }
 0x460   : > { %1710 = vst.msk [vmem:[#allocation4] sm:$0xff] %vm1709_vm15, %v1704_v11 }
 0x466   : > { %v1713_v26 = vld [vmem:[#allocation4 + $0x8] sm:$0xf] }
 0x467   : > { %v2007_v3 = vld [vmem:[#allocation4 + $0x8] sm:$0xf]  ;;  %v1712_v9 = vld [vmem:[#allocation4] sm:$0xff]  ;;  %v1732_v18 = vmul.f32 %v1727_v31, %v1713_v26 }
 0x468   : > { %v1851_v36 = vld [vmem:[#allocation4 + $0x8] sm:$0xf]  ;;  %2012 = vrot.lane.b32.xlu0 %v2007_v3, %s4793_s27  ;;  %2010 = vrot.lane.b32.xlu1 %v1712_v9, %s4793_s27  ;;  %v1876_v27 = vmul.f32 %v1872_v1, %v1712_v9  ;;  %v2318_v15 = vmul.f32 %v2314_v29, %v1712_v9  ;;  %v2162_v49 = vmul.f32 %v2158_v0, %v1712_v9 }
 0x469   : > { %v2293_v13 = vld [vmem:[#allocation4 + $0x8] sm:$0xf]  ;;  %v1877_v46 = vmul.f32 %v1873_v59, %v1851_v36  ;;  %1735 = vst.msk [vmem:[#allocation5 + $0x8] sm:$0xf] %vm1734_vm14, %v1732_v18  ;;  %v4329_v17 = vmul.f32 %v1729_v30, %v1712_v9 }
 0x46a   : > { %v2319_v28 = vmul.f32 %v2315_v60, %v2293_v13  ;;  %v2137_v7 = vld [vmem:[#allocation4 + $0x8] sm:$0xf] }
 0x46b   : > { %v2163_v47 = vmul.f32 %v2159_v8, %v2137_v7  ;;  %v4336_v20 = vcombine.high %v4329_v17, %v4329_v17 }
 0x46c   : > { %1882 = vrot.lane.b32.xlu0 %v1877_v46, %s4794_s12  ;;  %2324 = vrot.lane.b32.xlu1 %v2319_v28, %s3381_s22 }
 0x46d   : > { %v4355_v62 = vpop.permute.xlu1 %1961 }
 0x470   : > { %2168 = vrot.lane.b32.xlu0 %v2163_v47, %s3382_s26  ;;  %1880 = vrot.lane.b32.xlu1 %v1876_v27, %s4794_s12  ;;  %v1752_v51 = vld [vmem:[#allocation5 + $0x8] sm:$0xf] }
 0x471   : > { %v1777_v5 = vld [vmem:[#allocation5 + $0x8] sm:$0xf] }
 0x472   : > { %v1802_v33 = vld [vmem:[#allocation5 + $0x8] sm:$0xf]  ;;  %v4357_v43 = vpop.permute.xlu1 %1986 }
 0x473   : > { %v1827_v40 = vld [vmem:[#allocation5 + $0x8] sm:$0xf] }
 0x474   : > { %2322 = vrot.lane.b32.xlu0 %v2318_v15, %s3381_s22  ;;  %2166 = vrot.lane.b32.xlu1 %v2162_v49, %s3382_s26  ;;  %v1746_v49 = vmul.f32 %v4295_v10, %v4329_v17  ;;  %s2475_s26 = scalar_lea.sflag [#allocation8], %s3746_s1 }
 0x477   : > { %v4359_v21 = vpop.permute.xlu1 %2026 }
 0x478   : > { %1765 = vrot.lane.b32.xlu0 %v1752_v51, %s3385_s24  ;;  %1761 = vrot.lane.b32.xlu1 %v4329_v17, %s3385_s24  ;;  %v1747_v51 = vmul.f32 %v4336_v20, %v4295_v10 }
 0x47c   : > { %1790 = vrot.lane.b32.xlu0 %v1777_v5, %s3386_s17  ;;  %1763 = vrot.lane.b32.xlu1 %v4336_v20, %s3385_s24  ;;  %v4361_v24 = vpop.permute.xlu1 %2066 }
 0x480   : > { %1815 = vrot.lane.b32.xlu0 %v1802_v33, %s3383_s10  ;;  %1788 = vrot.lane.b32.xlu1 %v4336_v20, %s3386_s17 }
 0x481   : > { %v4363_v48 = vpop.permute.xlu1 %2091 }
 0x484   : > { %1840 = vrot.lane.b32.xlu0 %v1827_v40, %s3384_s30  ;;  %1813 = vrot.lane.b32.xlu1 %v4336_v20, %s3383_s10 }
 0x486   : > { %v4367_v19 = vpop.permute.xlu1 %2116 }
 0x488   : > { %1786 = vrot.lane.b32.xlu0 %v4329_v17, %s3386_s17  ;;  %1838 = vrot.lane.b32.xlu1 %v4336_v20, %s3384_s30 }
 0x48b   : > { %v4371_v58 = vpop.permute.xlu1 %2197 }
 0x48c   : > { %1811 = vrot.lane.b32.xlu0 %v4329_v17, %s3383_s10 }
 0x490   : > { %1836 = vrot.lane.b32.xlu0 %v4329_v17, %s3384_s30  ;;  %v4375_v53 = vpop.permute.xlu1 %2247 }
 0x495   : > { %v4379_v55 = vpop.permute.xlu1 %2338 }
 0x49a   : > { %v4383_v42 = vpop.permute.xlu1 %2353 }
 0x49f   : > { %v4387_v38 = vpop.permute.xlu1 %2378 }
 0x4a4   : > { %v4391_v25 = vpop.permute.xlu1 %2428 }
 0x4da   : > { %v4393_v45 = vpop.permute.xlu0 %2012  ;;  %v4395_v11 = vpop.permute.xlu1 %2010 }
 0x4db   : > { %v2015_v20 = vrot.slane %v4393_v45, 4 }
 0x4de   : > { %v1883_v52 = vpop.permute.xlu0 %1882  ;;  %v4398_v41 = vpop.permute.xlu1 %2324 }
 0x4df   : > { %1891 = vst.msk [vmem:[#allocation5 + $0x8] sm:$0xf] %vm1734_vm14, %v1883_v52  ;;  %v1885_v57 = vrot.slane %v1883_v52, 4  ;;  %v2327_v18 = vrot.slane %v4398_v41, 4 }
 0x4e2   : > { %v4400_v63 = vpop.permute.xlu0 %2168  ;;  %v1881_v31 = vpop.permute.xlu1 %1880 }
 0x4e3   : > { %v1884_v34 = vrot.slane %v1881_v31, 4 }
 0x4e5   : > { %v1886_v26 = vsel %vm939_vm12, %v1884_v34, %v1885_v57 }
 0x4e6   : > { %v2323_v3 = vpop.permute.xlu0 %2322  ;;  %v1908_v36 = vld [vmem:[#allocation5 + $0x8] sm:$0xf]  ;;  %v4405_v13 = vsel %vm941_vm13, %v1881_v31, %v1886_v26  ;;  %v4407_v44 = vpop.permute.xlu1 %2166 }
 0x4e7   : > { %v1933_v32 = vld [vmem:[#allocation5 + $0x8] sm:$0xf]  ;;  %v2326_v59 = vrot.slane %v2323_v3, 4  ;;  %1921 = vrot.lane.b32.xlu0 %v1908_v36, %s3385_s24  ;;  %1917 = vrot.lane.b32.xlu1 %v4405_v13, %s3385_s24  ;;  %v1916_v8 = vcombine.high %v4405_v13, %v4405_v13 }
 0x4e8   : > { %v1958_v9 = vld [vmem:[#allocation5 + $0x8] sm:$0xf] }
 0x4e9   : > { %v1983_v60 = vld [vmem:[#allocation5 + $0x8] sm:$0xf]  ;;  %v2328_v46 = vsel %vm939_vm12, %v2326_v59, %v2327_v18 }
 0x4ea   : > { %2021 = vst.msk [vmem:[#allocation5 + $0x8] sm:$0xf] %vm1734_vm14, %v4393_v45  ;;  %v4416_v28 = vsel %vm1449_vm0, %v2323_v3, %v2328_v46  ;;  %v1766_v7 = vpop.permute.xlu0 %1765  ;;  %v1762_v1 = vpop.permute.xlu1 %1761 }
 0x4eb   : > { %1946 = vrot.lane.b32.xlu0 %v1933_v32, %s3386_s17  ;;  %2332 = vst [vmem:[#allocation5] sm:$0xff] %v4416_v28  ;;  %1919 = vrot.lane.b32.xlu1 %v1916_v8, %s3385_s24 }
 0x4ee   : > { %v1791_v47 = vpop.permute.xlu0 %1790  ;;  %v1764_v6 = vpop.permute.xlu1 %1763 }
 0x4ef   : > { %1971 = vrot.lane.b32.xlu0 %v1958_v9, %s3383_s10  ;;  %v1767_v0 = vsel %vm791_vm1, %v1762_v1, %v1764_v6  ;;  %v1768_v15 = vsel %vm791_vm1, %v1764_v6, %v1766_v7  ;;  %1944 = vrot.lane.b32.xlu1 %v1916_v8, %s3386_s17 }
 0x4f0   : > { %v1771_v5 = vmul.f32 %v1767_v0, %v4307_v39  ;;  %v1772_v33 = vmul.f32 %v1768_v15, %v4307_v39  ;;  %v2014_v39 = vrot.slane %v4395_v11, 4 }
 0x4f1   : > { %v2038_v14 = vld [vmem:[#allocation5 + $0x8] sm:$0xf] }
 0x4f2   : > { %v2113_v27 = vld [vmem:[#allocation5 + $0x8] sm:$0xf]  ;;  %v1816_v40 = vpop.permute.xlu0 %1815  ;;  %v1773_v52 = vadd.f32 %v1771_v5, %v1746_v49  ;;  %v1774_v31 = vadd.f32 %v1772_v33, %v1747_v51  ;;  %v1789_v57 = vpop.permute.xlu1 %1788  ;;  %v1903_v33 = vmul.f32 %v1916_v8, %v4303_v2 }
 0x4f3   : > { %v2063_v29 = vld [vmem:[#allocation5 + $0x8] sm:$0xf]  ;;  %1996 = vrot.lane.b32.xlu0 %v1983_v60, %s3384_s30  ;;  %v1793_v34 = vsel %vm817_vm2, %v1789_v57, %v1791_v47  ;;  %1969 = vrot.lane.b32.xlu1 %v1916_v8, %s3383_s10  ;;  %v2016_v47 = vsel %vm939_vm12, %v2014_v39, %v2015_v20 }
 0x4f4   : > { %v2088_v30 = vld [vmem:[#allocation5 + $0x8] sm:$0xf]  ;;  %v1797_v17 = vmul.f32 %v1793_v34, %v4297_v35 }
 0x4f5   : > { %2177 = vst.msk [vmem:[#allocation5 + $0x8] sm:$0xf] %vm1734_vm14, %v4400_v63 }
 0x4f6   : > { %v1841_v10 = vpop.permute.xlu0 %1840  ;;  %v1799_v26 = vadd.f32 %v1797_v17, %v1774_v31  ;;  %v1814_v3 = vpop.permute.xlu1 %1813  ;;  %v1902_v17 = vmul.f32 %v4303_v2, %v4405_v13  ;;  %v2171_v2 = vrot.slane %v4400_v63, 4 }
 0x4f7   : > { %1942 = vrot.lane.b32.xlu0 %v4405_v13, %s3386_s17  ;;  %v1818_v36 = vsel %vm843_vm3, %v1814_v3, %v1816_v40  ;;  %1994 = vrot.lane.b32.xlu1 %v1916_v8, %s3384_s30 }
 0x4f8   : > { %v1822_v59 = vmul.f32 %v1818_v36, %v4299_v50 }
 0x4fa   : > { %v1787_v46 = vpop.permute.xlu0 %1786  ;;  %v1824_v45 = vadd.f32 %v1822_v59, %v1799_v26  ;;  %v1839_v1 = vpop.permute.xlu1 %1838 }
 0x4fb   : > { %v1792_v7 = vsel %vm817_vm2, %v1787_v46, %v1789_v57  ;;  %1967 = vrot.lane.b32.xlu0 %v4405_v13, %s3383_s10  ;;  %v1843_v6 = vsel %vm869_vm4, %v1839_v1, %v1841_v10  ;;  %2126 = vrot.lane.b32.xlu1 %v2113_v27, %s3384_s30  ;;  %v4538_v10 = vcombine.high %v4416_v28, %v4416_v28 }
 0x4fc   : > { %v2219_v32 = vld [vmem:[#allocation5 + $0x8] sm:$0xf]  ;;  %v1847_v0 = vmul.f32 %v1843_v6, %v4301_v12  ;;  %v1796_v15 = vmul.f32 %v1792_v7, %v4297_v35 }
 0x4fd   : > { %v2194_v9 = vld [vmem:[#allocation5 + $0x8] sm:$0xf] }
 0x4fe   : > { %v2244_v18 = vld [vmem:[#allocation5 + $0x8] sm:$0xf]  ;;  %v1812_v49 = vpop.permute.xlu0 %1811  ;;  %v1849_v51 = vadd.f32 %v1847_v0, %v1824_v45  ;;  %v1798_v35 = vadd.f32 %v1796_v15, %v1773_v52 }
 0x4ff   : > { %v2269_v60 = vld [vmem:[#allocation5 + $0x8] sm:$0xf]  ;;  %v1817_v5 = vsel %vm843_vm3, %v1812_v49, %v1814_v3  ;;  %1992 = vrot.lane.b32.xlu0 %v4405_v13, %s3384_s30 }
 0x500   : > { %2333 = vst.msk [vmem:[#allocation5 + $0x8] sm:$0xf] %vm1734_vm14, %v4398_v41  ;;  %v4458_v41 = vsel %vm4795_vm6, %v4395_v11, %v2016_v47  ;;  %v1821_v40 = vmul.f32 %v1817_v5, %v4299_v50  ;;  %v4467_v27 = vadd.f32 %v1903_v33, %v1849_v51 }
 0x501   : > { %2047 = vrot.lane.b32.xlu1 %v4458_v41, %s3385_s24  ;;  %v4471_v11 = vcombine.high %v4458_v41, %v4458_v41 }
 0x502   : > { %v1837_v31 = vpop.permute.xlu0 %1836  ;;  %v1823_v34 = vadd.f32 %v1821_v40, %v1798_v35 }
 0x503   : > { %v1842_v57 = vsel %vm869_vm4, %v1837_v31, %v1839_v1  ;;  %2051 = vrot.lane.b32.xlu0 %v2038_v14, %s3385_s24 }
 0x504   : > { %v1846_v8 = vmul.f32 %v1842_v57, %v4301_v12  ;;  %v2170_v12 = vrot.slane %v4407_v44, 4 }
 0x505   : > { %2049 = vrot.lane.b32.xlu1 %v4471_v11, %s3385_s24 }
 0x506   : > { %v1848_v50 = vadd.f32 %v1846_v8, %v1823_v34  ;;  %v2172_v13 = vsel %vm939_vm12, %v2170_v12, %v2171_v2 }
 0x507   : > { %2076 = vrot.lane.b32.xlu0 %v2063_v29, %s3386_s17  ;;  %v4500_v14 = vsel %vm4796_vm8, %v4407_v44, %v2172_v13  ;;  %v2400_v44 = vld [vmem:[#allocation5 + $0x8] sm:$0xf] }
 0x508   : > { %v4483_v52 = vadd.f32 %v1902_v17, %v1848_v50  ;;  %v4511_v63 = vcombine.high %v4500_v14, %v4500_v14  ;;  %v2350_v29 = vld [vmem:[#allocation5 + $0x8] sm:$0xf]  ;;  %v2033_v17 = vmul.f32 %v4471_v11, %v4359_v21 }
 0x509   : > { %2074 = vrot.lane.b32.xlu1 %v4471_v11, %s3386_s17  ;;  %v2425_v20 = vld [vmem:[#allocation5 + $0x8] sm:$0xf] }
 0x50b   : > { %2101 = vrot.lane.b32.xlu0 %v2088_v30, %s3383_s10  ;;  %v2375_v30 = vld [vmem:[#allocation5 + $0x8] sm:$0xf] }
 0x50d   : > { %2099 = vrot.lane.b32.xlu1 %v4471_v11, %s3383_s10 }
 0x50f   : > { %2072 = vrot.lane.b32.xlu0 %v4458_v41, %s3386_s17 }
 0x511   : > { %2124 = vrot.lane.b32.xlu1 %v4471_v11, %s3384_s30 }
 0x513   : > { %2097 = vrot.lane.b32.xlu0 %v4458_v41, %s3383_s10 }
 0x515   : > { %2207 = vrot.lane.b32.xlu1 %v2194_v9, %s3385_s24 }
 0x517   : > { %2122 = vrot.lane.b32.xlu0 %v4458_v41, %s3384_s30 }
 0x519   : > { %2203 = vrot.lane.b32.xlu1 %v4500_v14, %s3385_s24 }
 0x51b   : > { %2232 = vrot.lane.b32.xlu0 %v2219_v32, %s3386_s17 }
 0x51d   : > { %2228 = vrot.lane.b32.xlu1 %v4500_v14, %s3386_s17 }
 0x51f   : > { %2257 = vrot.lane.b32.xlu0 %v2244_v18, %s3383_s10 }
 0x521   : > { %2230 = vrot.lane.b32.xlu1 %v4511_v63, %s3386_s17 }
 0x523   : > { %2282 = vrot.lane.b32.xlu0 %v2269_v60, %s3384_s30 }
 0x525   : > { %2255 = vrot.lane.b32.xlu1 %v4511_v63, %s3383_s10 }
 0x527   : > { %2253 = vrot.lane.b32.xlu0 %v4500_v14, %s3383_s10 }
 0x529   : > { %2280 = vrot.lane.b32.xlu1 %v4511_v63, %s3384_s30 }
 0x52b   : > { %2278 = vrot.lane.b32.xlu0 %v4500_v14, %s3384_s30 }
 0x52d   : > { %2413 = vrot.lane.b32.xlu1 %v2400_v44, %s3383_s10 }
 0x52f   : > { %2205 = vrot.lane.b32.xlu0 %v4511_v63, %s3385_s24 }
 0x531   : > { %2359 = vrot.lane.b32.xlu1 %v4416_v28, %s3385_s24 }
 0x533   : > { %2363 = vrot.lane.b32.xlu0 %v2350_v29, %s3385_s24 }
 0x535   : > { %2409 = vrot.lane.b32.xlu1 %v4416_v28, %s3383_s10 }
 0x537   : > { %2388 = vrot.lane.b32.xlu0 %v2375_v30, %s3386_s17 }
 0x539   : > { %2434 = vrot.lane.b32.xlu1 %v4416_v28, %s3384_s30 }
 0x53b   : > { %2384 = vrot.lane.b32.xlu0 %v4416_v28, %s3386_s17 }
 0x53d   : > { %2361 = vrot.lane.b32.xlu1 %v4538_v10, %s3385_s24  ;;  %s4797_s24 = sld [smem:[#allocation37_spill]] }
 0x53f   : > { %2411 = vrot.lane.b32.xlu0 %v4538_v10, %s3383_s10  ;;  %s3250_s10 = scalar_lea.vmem %s4640_s18, 256 }
 0x540   : > { %p3251_p1 = scmp.ne.s32.totalorder %s4640_s18, %s3250_s10 }
 0x541   : > { %2386 = vrot.lane.b32.xlu1 %v4538_v10, %s3386_s17 }
 0x542   : > { %p3252_p2 = pnand %p3251_p1, %p4798_p3 }
 0x543   : > { %2438 = vrot.lane.b32.xlu0 %v2425_v20, %s3384_s30 }
 0x544   : > { %p3253_p0 = pneg %p3252_p2 }
 0x545   : > { %2436 = vrot.lane.b32.xlu1 %v4538_v10, %s3384_s30 }
 0x559   : > { %v1922_v39 = vpop.permute.xlu0 %1921  ;;  %v1918_v26 = vpop.permute.xlu1 %1917 }
 0x55d   : > { %v1947_v3 = vpop.permute.xlu0 %1946  ;;  %v1920_v36 = vpop.permute.xlu1 %1919 }
 0x55e   : > { %v1924_v9 = vsel %vm791_vm1, %v1920_v36, %v1922_v39  ;;  %v1923_v47 = vsel %vm791_vm1, %v1918_v26, %v1920_v36 }
 0x55f   : > { %v1928_v60 = vmul.f32 %v1924_v9, %v4365_v4  ;;  %v1927_v33 = vmul.f32 %v1923_v47, %v4365_v4 }
 0x561   : > { %v1972_v32 = vpop.permute.xlu0 %1971  ;;  %v1945_v18 = vpop.permute.xlu1 %1944  ;;  %v1930_v6 = vadd.f32 %v1928_v60, %v4467_v27  ;;  %v1929_v12 = vadd.f32 %v1927_v33, %v4483_v52 }
 0x562   : > { %v1949_v59 = vsel %vm817_vm2, %v1945_v18, %v1947_v3  ;;  %v2032_v3 = vmul.f32 %v4359_v21, %v4458_v41 }
 0x563   : > { %v1953_v45 = vmul.f32 %v1949_v59, %v4305_v37 }
 0x565   : > { %v1997_v46 = vpop.permute.xlu0 %1996  ;;  %v1970_v7 = vpop.permute.xlu1 %1969  ;;  %v1955_v51 = vadd.f32 %v1953_v45, %v1930_v6 }
 0x566   : > { %v1974_v1 = vsel %vm843_vm3, %v1970_v7, %v1972_v32 }
 0x567   : > { %v1978_v0 = vmul.f32 %v1974_v1, %v4355_v62 }
 0x569   : > { %v1943_v15 = vpop.permute.xlu0 %1942  ;;  %v1995_v5 = vpop.permute.xlu1 %1994  ;;  %v1980_v35 = vadd.f32 %v1978_v0, %v1955_v51 }
 0x56a   : > { %v1948_v49 = vsel %vm817_vm2, %v1943_v15, %v1945_v18  ;;  %v1999_v40 = vsel %vm869_vm4, %v1995_v5, %v1997_v46 }
 0x56b   : > { %v2003_v31 = vmul.f32 %v1999_v40, %v4357_v43  ;;  %v1952_v57 = vmul.f32 %v1948_v49, %v4305_v37 }
 0x56d   : > { %v1968_v34 = vpop.permute.xlu0 %1967  ;;  %v2005_v27 = vadd.f32 %v2003_v31, %v1980_v35  ;;  %v2127_v50 = vpop.permute.xlu1 %2126  ;;  %v1954_v13 = vadd.f32 %v1952_v57, %v1929_v12  ;;  %v2188_v35 = vmul.f32 %v4373_v16, %v4500_v14 }
 0x56e   : > { %v1973_v8 = vsel %vm843_vm3, %v1968_v34, %v1970_v7 }
 0x56f   : > { %v1977_v2 = vmul.f32 %v1973_v8, %v4355_v62  ;;  %v2035_v4 = vadd.f32 %v2033_v17, %v2005_v27 }
 0x571   : > { %v1993_v44 = vpop.permute.xlu0 %1992  ;;  %v1979_v20 = vadd.f32 %v1977_v2, %v1954_v13 }
 0x572   : > { %v1998_v29 = vsel %vm869_vm4, %v1993_v44, %v1995_v5 }
 0x573   : > { %v2048_v30 = vpop.permute.xlu1 %2047  ;;  %v2002_v37 = vmul.f32 %v1998_v29, %v4357_v43 }
 0x575   : > { %v2004_v39 = vadd.f32 %v2002_v37, %v1979_v20  ;;  %v2052_v26 = vpop.permute.xlu0 %2051 }
 0x577   : > { %v2050_v36 = vpop.permute.xlu1 %2049  ;;  %v2034_v11 = vadd.f32 %v2032_v3, %v2004_v39 }
 0x578   : > { %v2053_v18 = vsel %vm791_vm1, %v2048_v30, %v2050_v36  ;;  %v2054_v8 = vsel %vm791_vm1, %v2050_v36, %v2052_v26 }
 0x579   : > { %v2077_v32 = vpop.permute.xlu0 %2076  ;;  %v2057_v45 = vmul.f32 %v2053_v18, %v4369_v54  ;;  %v2058_v12 = vmul.f32 %v2054_v8, %v4369_v54  ;;  %v2344_v8 = vmul.f32 %v4379_v55, %v4416_v28 }
 0x57b   : > { %v2075_v52 = vpop.permute.xlu1 %2074  ;;  %v2059_v41 = vadd.f32 %v2057_v45, %v2034_v11  ;;  %v2060_v20 = vadd.f32 %v2058_v12, %v2035_v4 }
 0x57c   : > { %v2079_v17 = vsel %vm817_vm2, %v2075_v52, %v2077_v32 }
 0x57d   : > { %v2102_v9 = vpop.permute.xlu0 %2101  ;;  %v2083_v29 = vmul.f32 %v2079_v17, %v4361_v24 }
 0x57f   : > { %v2100_v62 = vpop.permute.xlu1 %2099  ;;  %v2085_v3 = vadd.f32 %v2083_v29, %v2060_v20 }
 0x580   : > { %v2104_v13 = vsel %vm843_vm3, %v2100_v62, %v2102_v9 }
 0x581   : > { %v2073_v59 = vpop.permute.xlu0 %2072  ;;  %v2108_v14 = vmul.f32 %v2104_v13, %v4363_v48 }
 0x582   : > { %v2078_v60 = vsel %vm817_vm2, %v2073_v59, %v2075_v52 }
 0x583   : > { %v2125_v46 = vpop.permute.xlu1 %2124  ;;  %v2082_v43 = vmul.f32 %v2078_v60, %v4361_v24  ;;  %v2110_v36 = vadd.f32 %v2108_v14, %v2085_v3  ;;  %v2189_v24 = vmul.f32 %v4511_v63, %v4373_v16 }
 0x584   : > { %v2129_v30 = vsel %vm869_vm4, %v2125_v46, %v2127_v50 }
 0x585   : > { %v2098_v7 = vpop.permute.xlu0 %2097  ;;  %v2084_v6 = vadd.f32 %v2082_v43, %v2059_v41  ;;  %v2133_v26 = vmul.f32 %v2129_v30, %v4367_v19 }
 0x586   : > { %v2103_v1 = vsel %vm843_vm3, %v2098_v7, %v2100_v62 }
 0x587   : > { %v2208_v21 = vpop.permute.xlu1 %2207  ;;  %v2107_v47 = vmul.f32 %v2103_v1, %v4363_v48  ;;  %v2135_v54 = vadd.f32 %v2133_v26, %v2110_v36 }
 0x589   : > { %v2123_v0 = vpop.permute.xlu0 %2122  ;;  %v2109_v51 = vadd.f32 %v2107_v47, %v2084_v6  ;;  %v2191_v18 = vadd.f32 %v2189_v24, %v2135_v54  ;;  %v2457_v54 = vld [vmem:[%s3752_s21 + $0x8] sm:$0xf0] }
 0x58a   : > { %v2128_v15 = vsel %vm869_vm4, %v2123_v0, %v2125_v46 }
 0x58b   : > { %v2204_v49 = vpop.permute.xlu1 %2203  ;;  %v2132_v5 = vmul.f32 %v2128_v15, %v4367_v19 }
 0x58d   : > { %v2134_v33 = vadd.f32 %v2132_v5, %v2109_v51  ;;  %v2233_v40 = vpop.permute.xlu0 %2232 }
 0x58f   : > { %v2229_v31 = vpop.permute.xlu1 %2228  ;;  %v2190_v57 = vadd.f32 %v2188_v35, %v2134_v33 }
 0x591   : > { %v2258_v34 = vpop.permute.xlu0 %2257 }
 0x593   : > { %v2231_v27 = vpop.permute.xlu1 %2230 }
 0x594   : > { %v2234_v52 = vsel %vm817_vm2, %v2229_v31, %v2231_v27  ;;  %v2235_v9 = vsel %vm817_vm2, %v2231_v27, %v2233_v40  ;;  %v2345_v27 = vmul.f32 %v4538_v10, %v4379_v55 }
 0x595   : > { %v2283_v2 = vpop.permute.xlu0 %2282  ;;  %v2238_v60 = vmul.f32 %v2234_v52, %v4377_v23  ;;  %v2239_v46 = vmul.f32 %v2235_v9, %v4377_v23 }
 0x597   : > { %v2256_v44 = vpop.permute.xlu1 %2255 }
 0x598   : > { %v2260_v43 = vsel %vm843_vm3, %v2256_v44, %v2258_v34 }
 0x599   : > { %v2254_v37 = vpop.permute.xlu0 %2253  ;;  %v2264_v6 = vmul.f32 %v2260_v43, %v4375_v53 }
 0x59a   : > { %v2259_v45 = vsel %vm843_vm3, %v2254_v37, %v2256_v44 }
 0x59b   : > { %v2281_v39 = vpop.permute.xlu1 %2280  ;;  %v2263_v47 = vmul.f32 %v2259_v45, %v4375_v53 }
 0x59c   : > { %v2285_v0 = vsel %vm869_vm4, %v2281_v39, %v2283_v2 }
 0x59d   : > { %v2279_v11 = vpop.permute.xlu0 %2278  ;;  %v2289_v33 = vmul.f32 %v2285_v0, %v4381_v61 }
 0x59f   : > { %v2414_v32 = vpop.permute.xlu1 %2413 }
 0x5a1   : > { %v2206_v50 = vpop.permute.xlu0 %2205 }
 0x5a2   : > { %v2209_v4 = vsel %vm791_vm1, %v2204_v49, %v2206_v50  ;;  %v2210_v48 = vsel %vm791_vm1, %v2206_v50, %v2208_v21 }
 0x5a3   : > { %v2360_v62 = vpop.permute.xlu1 %2359  ;;  %v2213_v19 = vmul.f32 %v2209_v4, %v4371_v58  ;;  %v2214_v59 = vmul.f32 %v2210_v48, %v4371_v58  ;;  %v2284_v58 = vsel %vm869_vm4, %v2279_v11, %v2281_v39  ;;  %v2461_v48 = vrot.slane %v2457_v54, 4 }
 0x5a4   : > { %v2288_v5 = vmul.f32 %v2284_v58, %v4381_v61 }
 0x5a5   : > { %v2215_v16 = vadd.f32 %v2213_v19, %v2190_v57  ;;  %v2216_v63 = vadd.f32 %v2214_v59, %v2191_v18  ;;  %v2364_v7 = vpop.permute.xlu0 %2363 }
 0x5a7   : > { %v2410_v1 = vpop.permute.xlu1 %2409  ;;  %v2240_v41 = vadd.f32 %v2238_v60, %v2215_v16  ;;  %v2241_v21 = vadd.f32 %v2239_v46, %v2216_v63 }
 0x5a9   : > { %v2389_v15 = vpop.permute.xlu0 %2388  ;;  %v2265_v23 = vadd.f32 %v2263_v47, %v2240_v41  ;;  %v2266_v49 = vadd.f32 %v2264_v6, %v2241_v21 }
 0x5ab   : > { %v2435_v51 = vpop.permute.xlu1 %2434  ;;  %v2290_v35 = vadd.f32 %v2288_v5, %v2265_v23  ;;  %v2291_v31 = vadd.f32 %v2289_v33, %v2266_v49 }
 0x5ad   : > { %v2385_v40 = vpop.permute.xlu0 %2384  ;;  %v2346_v61 = vadd.f32 %v2344_v8, %v2290_v35  ;;  %v2347_v13 = vadd.f32 %v2345_v27, %v2291_v31 }
 0x5af   : > { %v2362_v57 = vpop.permute.xlu1 %2361 }
 0x5b0   : > { %v2365_v34 = vsel %vm791_vm1, %v2360_v62, %v2362_v57  ;;  %v2366_v53 = vsel %vm791_vm1, %v2362_v57, %v2364_v7 }
 0x5b1   : > { %v2369_v17 = vmul.f32 %v2365_v34, %v4383_v42  ;;  %v2370_v12 = vmul.f32 %v2366_v53, %v4383_v42  ;;  %v2412_v2 = vpop.permute.xlu0 %2411 }
 0x5b2   : > { %v2415_v29 = vsel %vm843_vm3, %v2410_v1, %v2412_v2  ;;  %v2416_v30 = vsel %vm843_vm3, %v2412_v2, %v2414_v32  ;;  %v2456_v32 = vld [vmem:[%s3752_s21] sm:$0xf0]  ;;  %s2690_s21 = sshll.u32 %s3464_s19, 8  ;;  %s3387_s19 = smov [#allocation23]  }
 0x5b3   : > { %v2387_v44 = vpop.permute.xlu1 %2386  ;;  %v2371_v14 = vadd.f32 %v2369_v17, %v2346_v61  ;;  %v2372_v55 = vadd.f32 %v2370_v12, %v2347_v13  ;;  %v2419_v39 = vmul.f32 %v2415_v29, %v4385_v22  ;;  %v2420_v3 = vmul.f32 %v2416_v30, %v4385_v22  ;;  %s4638_s22 = scalar_lea.hbm %s4797_s24, %s2690_s21  ;;  %s3254_s30 = sshll.u32 %s3387_s19, 4  ;;  %s3255_s30 = int_to_ptr.vmem [resolvable:$false] %s3254_s30 }
 0x5b4   : > { %v2390_v20 = vsel %vm817_vm2, %v2385_v40, %v2387_v44  ;;  %v2391_v28 = vsel %vm817_vm2, %v2387_v44, %v2389_v15  ;;  %v2460_v22 = vrot.slane %v2456_v32, 4  ;;  %s3256_s27 = scalar_lea.vmem %s3255_s30, 512  ;;  %p3257_p6 = scmp.lt.s32.totalorder %s4640_s18, %s3255_s30 }
 0x5b5   : > { %v2394_v10 = vmul.f32 %v2390_v20, %v4387_v38  ;;  %v2395_v42 = vmul.f32 %v2391_v28, %v4387_v38  ;;  %v2439_v37 = vpop.permute.xlu0 %2438  ;;  %p3258_p4 = scmp.lt.s32.totalorder %s3256_s27, %s3250_s10 }
 0x5b7   : > { %v2396_v26 = vadd.f32 %v2394_v10, %v2371_v14  ;;  %v2397_v36 = vadd.f32 %v2395_v42, %v2372_v55  ;;  %v2437_v11 = vpop.permute.xlu1 %2436  ;;  %p3259_p11 = por %p3258_p4, %p3257_p6 }
 0x5b8   : > { %v2440_v52 = vsel %vm869_vm4, %v2435_v51, %v2437_v11  ;;  %v2441_v9 = vsel %vm869_vm4, %v2437_v11, %v2439_v37 }
 0x5b9   : > { %v2421_v24 = vadd.f32 %v2419_v39, %v2396_v26  ;;  %v2422_v50 = vadd.f32 %v2420_v3, %v2397_v36  ;;  %v2444_v38 = vmul.f32 %v2440_v52, %v4391_v25  ;;  %v2445_v4 = vmul.f32 %v2441_v9, %v4391_v25  ;;  %p3260_p8 = pnand %p3259_p11, %p3253_p0 }
 0x5bb   : > { %v2446_v62 = vadd.f32 %v2444_v38, %v2421_v24  ;;  %v2447_v18 = vadd.f32 %v2445_v4, %v2422_v50 }
 0x5bd   : > { %v2454_v19 = vadd.f32 %v4389_v56, %v2446_v62  ;;  %v2455_v59 = vadd.f32 %v4389_v56, %v2447_v18 }
 0x5bf   : > { %v2464_v60 = vadd.f32 %v2460_v22, %v2454_v19  ;;  %v2465_v46 = vadd.f32 %v2461_v48, %v2455_v59 }
 0x5c1   : > { %v2468_v45 = vrot.slane %v2464_v60, 4  ;;  %v2469_v43 = vrot.slane %v2465_v46, 4 }
 0x5c3   : > { %2472 = vst [vmem:[%s4279_s20] sm:$0xf0] %v2468_v45  ;;  %2473 = vst [vmem:[%s4279_s20 + $0x8] sm:$0xf0] %v2469_v43 }
 0x5c4   : > { %3263 = shalt.err (!%p3260_p8)
}
 0x5c5   : > { %s3264_s1 = scalar_lea.hbm %s4638_s22, 256  ;;  %s3268_s21 = scalar_lea.hbm %s4797_s24, 512 }
 0x5c6   : > { %p3265_p5 = scmp.ne.s32.totalorder %s4638_s22, %s3264_s1  ;;  %p3269_p10 = scmp.lt.u32.totalorder %s4638_s22, %s4797_s24 }
 0x5c7   : > { %p3270_p12 = scmp.lt.u32.totalorder %s3268_s21, %s3264_s1  ;;  %p3272_p1 = scmp.lt.u32.totalorder %s3264_s1, %s4638_s22 }
 0x5c8   : > { %p3266_p9 = pnand %p3265_p5, %p4798_p3 }
 0x5c9   : > { %p3271_p13 = por %p3270_p12, %p3269_p10 }
 0x5ca   : > { %p3267_p7 = pneg %p3266_p9 }
 0x5cb   : > { %p3273_p2 = por %p3272_p1, %p3271_p13 }
 0x5cd   : > { %p3274_p0 = pnand %p3273_p2, %p3267_p7 }
 0x5cf   : > { %3277 = shalt.err (!%p3274_p0)
}
 0x5d0   : > { %2729 = dma.vmem_to_hbm [thread:$0]  (%p4798_p3), %s4640_s18, 256, %s4638_s22, %s2475_s26  }
 0x5d1 PF: > { %s2501_s10 = sand.u32 1, %s3324_s13   ;;  %p4799_p6 = scmp.ne.s32.totalorder %s4746_s23, 0 }
 0x5d2   : > { %p4800_p4 = scmp.ge.s32.totalorder %s3336_s16, 2  ;;  %s2502_s19 = scalar_lea.sflag [#allocation8], %s2501_s10 }
 0x5d4   : > { %p2764_p11 = pnand %p4800_p4, %p4799_p6 }
 0x5d6   : > { %3319 = dma.done.wait (!%p2764_p11), %s2502_s19, 256  }
 0x5d7   : > { %3321 = vsyncadd (!%p2764_p11), %s2502_s19, 4294967040  ;;  %p28_p8 = scmp.ge.s32.totalorder %s3676_s25, 4   ;;  %s4801_s13 = smov %s3328_s14 }
 0x5d8   : > { %s4802_s14 = smov %s3332_s15  ;;  %s4803_s15 = smov %s3688_s28 }
 0x5d9   : > { %s4804_s16 = smov %s3676_s25  ;;  %30 = sbr.rel (!%p28_p8) target bundleno = 13 (0xd), region = 154 }
 0x5e0   :  { %2507 = vsyncpa [#allocation7], 1 }
 0x5e1   :  { %2509 = vsyncpa [#allocation7 + $0x1], 1 }
 0x5e2   :  { %2510 = vsyncpa [#allocation10], 1 }
 0x5e3   :  { %2511 = vsyncpa [#allocation13], 1 }
 0x5e4   :  { %2512 = vsyncpa [#allocation16], 1 }
 0x5e5   :  { %2513 = vsyncpa [#allocation19], 1 }
 0x5e6   :  { %2514 = vsyncpa [#allocation22], 1 }
 0x5e7   :  { %2515 = vsyncpa [#allocation8], 1 }
 0x5e8   :  { %2517 = vsyncpa [#allocation8 + $0x1], 1 }

</bundles_post_ra>
